<compile_context>
chip_gen: v7x
topology: tpu7x:2x2x1
jax: 0.10.0
libtpu: 0.0.40
codegen_flags: <defaults>
</compile_context>

<pallas_src>
import functools

import jax
import jax.numpy as jnp
from jax.experimental import pallas as pl
from jax.experimental.pallas import tpu as pltpu


_VMEM_LIMIT = 32 * 1024 * 1024  # safe on every generation (v7x has only 64 MiB physical VMEM)


def _round_up(x, m):
    return ((x + m - 1) // m) * m


def _pick_tile(dim, cap, align):
    """Largest multiple of `align` that divides `dim` and is <= cap (dim must be align-aligned)."""
    assert dim % align == 0, (dim, align)
    t = min(dim, max(align, (cap // align) * align))
    while dim % t:
        t -= align
    return t


# ----------------------------- Pallas kernels ------------------------------

def _gemm_kernel(x_ref, w_ref, b_ref, o_ref, acc_ref, *, relu):
    # Tiled conv-as-GEMM: bf16 MXU matmul accumulated into an f32 VMEM scratch across K tiles;
    # folded-BN bias + optional ReLU epilogue in f32 on the last K step; bf16 store.
    k = pl.program_id(2)

    @pl.when(k == 0)
    def _():
        acc_ref[...] = jnp.zeros_like(acc_ref)

    acc_ref[...] += jnp.dot(x_ref[...], w_ref[...],
                            preferred_element_type=jnp.float32)

    @pl.when(k == pl.num_programs(2) - 1)
    def _():
        out = acc_ref[...] + b_ref[...]
        if relu:
            out = jnp.maximum(out, 0.0)
        o_ref[...] = out.astype(o_ref.dtype)


def gemm_bias_act(x, w, b, relu=False, out_dtype=jnp.bfloat16):
    """out = act(x @ w + b); x:(M,K) w:(K,N) b:(N,). Output dtype `out_dtype` (bf16 intermediates)."""
    M, K = x.shape
    K2, N = w.shape
    assert K == K2 and N % 128 == 0

    x_bf = x.astype(jnp.bfloat16)
    w_bf = w.astype(jnp.bfloat16)
    b2 = b.reshape(1, N).astype(jnp.float32)

    # M: pad up to the chosen tile (16-aligned for bf16 lhs sublane packing).
    tm = min(256, _round_up(max(M, 16), 16))
    Mp = _round_up(M, tm)
    if Mp != M:
        x_bf = jnp.pad(x_bf, ((0, Mp - M), (0, 0)))

    # K: zero-pad to a lane multiple (exact: padded columns multiply zeros).
    Kp = _round_up(K, 128)
    if Kp != K:
        x_bf = jnp.pad(x_bf, ((0, 0), (0, Kp - K)))
        w_bf = jnp.pad(w_bf, ((0, Kp - K), (0, 0)))
    tk = _pick_tile(Kp, 512, 128)

    # N: big tiles, but keep >=2 j-programs when N allows (v7x megacore).
    tn_cap = 1024 if N < 256 else min(1024, N // 2)
    tn = _pick_tile(N, tn_cap, 128)

    grid = (Mp // tm, N // tn, Kp // tk)

    out = pl.pallas_call(
        functools.partial(_gemm_kernel, relu=relu),
        grid=grid,
        in_specs=[
            pl.BlockSpec((tm, tk), lambda i, j, k: (i, k)),
            pl.BlockSpec((tk, tn), lambda i, j, k: (k, j)),
            pl.BlockSpec((1, tn), lambda i, j, k: (0, j)),
        ],
        out_specs=pl.BlockSpec((tm, tn), lambda i, j, k: (i, j)),
        out_shape=jax.ShapeDtypeStruct((Mp, N), out_dtype),
        scratch_shapes=[pltpu.VMEM((tm, tn), jnp.float32)],
        compiler_params=pltpu.CompilerParams(
            dimension_semantics=("parallel", "parallel", "arbitrary"),
            vmem_limit_bytes=_VMEM_LIMIT,
        ),
    )(x_bf, w_bf, b2)
    return out[:M]


def _maxpool3_dense_kernel(x_ref, o_ref, *, H, W):
    # Dense (stride-1) 3x3 max over the padded NHWC slab via 9 static shifted slices in VMEM.
    m = x_ref[0:H, 0:W, :]
    for dh in range(3):
        for dw in range(3):
            if dh == 0 and dw == 0:
                continue
            m = jnp.maximum(m, x_ref[dh:dh + H, dw:dw + W, :])
    o_ref[...] = m


def maxpool_3x3_s2(x_nhwc):
    """MaxPool2d(kernel=3, stride=2, padding=1): dense 3x3 max in-kernel, stride-2 subsample in XLA."""
    B, H, W, C = x_nhwc.shape
    assert C % 128 == 0
    Ho = (H + 2 - 3) // 2 + 1
    Wo = (W + 2 - 3) // 2 + 1
    neg = float(jnp.finfo(x_nhwc.dtype).min)
    xp = jnp.pad(x_nhwc, ((0, 0), (1, 1), (1, 1), (0, 0)), constant_values=neg)
    Hp, Wp = H + 2, W + 2

    tc = _pick_tile(C, 256, 128)  # modest C tile keeps the slab block small on v7x's 64 MiB VMEM
    dense = pl.pallas_call(
        functools.partial(_maxpool3_dense_kernel, H=H, W=W),
        grid=(B, C // tc),
        in_specs=[pl.BlockSpec((None, Hp, Wp, tc), lambda b, c: (b, 0, 0, c))],
        out_specs=pl.BlockSpec((None, H, W, tc), lambda b, c: (b, 0, 0, c)),
        out_shape=jax.ShapeDtypeStruct((B, H, W, C), x_nhwc.dtype),
        compiler_params=pltpu.CompilerParams(
            dimension_semantics=("parallel", "parallel"),
            vmem_limit_bytes=_VMEM_LIMIT,
        ),
    )(xp)
    # stride-2 subsample of the dense max == 3x3/s2/pad1 maxpool (window centers at even coords)
    return dense[:, 0:2 * Ho:2, 0:2 * Wo:2, :]


def _avgpool_embed_kernel(f_ref, w_ref, b_ref, o_ref, acc_ref):
    # AdaptiveAvgPool2d(1) + view + nn.Linear fused; C is the (reduction) grid axis.
    # Spatial sum and the tiny embed matmul stay in f32; 1/HW is folded into the f32 weights.
    k = pl.program_id(0)

    @pl.when(k == 0)
    def _():
        acc_ref[...] = jnp.zeros_like(acc_ref)

    pooled = jnp.sum(f_ref[...].astype(jnp.float32), axis=1)  # (B, tc) f32
    acc_ref[...] += jnp.dot(pooled, w_ref[...], preferred_element_type=jnp.float32)

    @pl.when(k == pl.num_programs(0) - 1)
    def _():
        o_ref[...] = (acc_ref[...] + b_ref[...]).astype(o_ref.dtype)


def avgpool_embed(feats_bhwc, w, b):
    B, Hh, Ww, C = feats_bhwc.shape
    HW = Hh * Ww
    assert C % 128 == 0
    f = feats_bhwc.reshape(B, HW, C)
    HWp = _round_up(HW, 8)
    if HWp != HW:  # zero rows don't change the spatial sum
        f = jnp.pad(f, ((0, 0), (0, HWp - HW), (0, 0)))

    E = w.shape[1]
    Ep = _round_up(E, 128)  # lane-dense output; slice back after the kernel
    w_eff = w.astype(jnp.float32) / float(HW)  # fold 1/HW into f32 weights
    b_eff = b.astype(jnp.float32)
    if Ep != E:
        w_eff = jnp.pad(w_eff, ((0, 0), (0, Ep - E)))
        b_eff = jnp.pad(b_eff, (0, Ep - E))
    b2 = b_eff.reshape(1, Ep)

    tc = _pick_tile(C, 2048, 128)  # single grid step for C=2048
    out = pl.pallas_call(
        _avgpool_embed_kernel,
        grid=(C // tc,),
        in_specs=[
            pl.BlockSpec((B, HWp, tc), lambda k: (0, 0, k)),
            pl.BlockSpec((tc, Ep), lambda k: (k, 0)),
            pl.BlockSpec((1, Ep), lambda k: (0, 0)),
        ],
        out_specs=pl.BlockSpec((B, Ep), lambda k: (0, 0)),
        out_shape=jax.ShapeDtypeStruct((B, Ep), jnp.float32),
        scratch_shapes=[pltpu.VMEM((B, Ep), jnp.float32)],
        compiler_params=pltpu.CompilerParams(
            dimension_semantics=("arbitrary",),
            vmem_limit_bytes=_VMEM_LIMIT,
        ),
    )(f, w_eff, b2)
    return out[:, :E]


# ------------------------------- JAX glue -----------------------------------

def _im2col(x_nhwc, kh, kw, stride, pad):
    B, H, W, C = x_nhwc.shape
    xp = jnp.pad(x_nhwc, ((0, 0), (pad, pad), (pad, pad), (0, 0)))
    Ho = (H + 2 * pad - kh) // stride + 1
    Wo = (W + 2 * pad - kw) // stride + 1
    cols = []
    for i in range(kh):
        for j in range(kw):
            cols.append(xp[:, i:i + stride * Ho:stride, j:j + stride * Wo:stride, :])
    patches = jnp.stack(cols, axis=0)  # [kh*kw, B, Ho, Wo, C]
    return patches, Ho, Wo


def conv_bn_act(x_nhwc, w, b, stride, pad, relu):
    """Conv (BN folded into w/b) + optional ReLU as a tiled GEMM; bf16 output."""
    kh, kw, cin, cout = w.shape
    B, H, W, _ = x_nhwc.shape
    if kh == 1 and kw == 1 and stride == 1 and pad == 0:
        Ho, Wo = H, W
        lhs = x_nhwc.reshape(B * H * W, cin)
    else:
        patches, Ho, Wo = _im2col(x_nhwc, kh, kw, stride, pad)
        lhs = jnp.transpose(patches, (1, 2, 3, 0, 4)).reshape(B * Ho * Wo, kh * kw * cin)
    rhs = w.reshape(kh * kw * cin, cout)
    out = gemm_bias_act(lhs, rhs, b, relu=relu, out_dtype=jnp.bfloat16)
    return out.reshape(B, Ho, Wo, cout)


def encoder_cnn_forward(images_nchw, params):
    # images: NCHW float32 (PyTorch convention) -> NHWC bf16 for the kernels
    x = jnp.transpose(images_nchw, (0, 2, 3, 1)).astype(jnp.bfloat16)

    # stem: conv7x7/s2 + BN + ReLU (128 lane-dense channels), then maxpool3x3/s2
    x = conv_bn_act(x, params["stem_w"], params["stem_b"], stride=2, pad=3, relu=True)
    x = maxpool_3x3_s2(x)

    # one synthetic bottleneck stage (1x1 -> 3x3 -> 1x1 to 2048 ch, projection shortcut)
    identity = x
    y = conv_bn_act(x, params["c1_w"], params["c1_b"], stride=1, pad=0, relu=True)
    y = conv_bn_act(y, params["c2_w"], params["c2_b"], stride=1, pad=1, relu=True)

    # c3 conv + projection shortcut fused into ONE GEMM via K-concatenation (identical math):
    #   relu(y @ c3_w + c3_b + identity @ proj_w + proj_b)
    #     == relu(concat([y, identity], -1) @ concat([c3_w, proj_w], 0) + (c3_b + proj_b))
    B, Hh, Ww, mid = y.shape
    cid = identity.shape[-1]
    feat = params["c3_w"].shape[-1]
    M = B * Hh * Ww
    lhs = jnp.concatenate([y.reshape(M, mid), identity.reshape(M, cid)], axis=-1)
    rhs = jnp.concatenate([params["c3_w"].reshape(mid, feat),
                           params["proj_w"].reshape(cid, feat)], axis=0)
    bias = params["c3_b"] + params["proj_b"]
    y = gemm_bias_act(lhs, rhs, bias, relu=True, out_dtype=jnp.bfloat16).reshape(B, Hh, Ww, feat)

    # global avg pool + flatten + Linear(2048, embed_size), fused in one tiled kernel
    feats = avgpool_embed(y, params["embed_w"], params["embed_b"])
    return feats  # [B, embed_size], float32


# --------------------------- deterministic params ----------------------------

def init_params(key, embed_size=32, feat_dim=2048, stem_ch=128, mid_ch=128):
    ks = jax.random.split(key, 12)

    def conv_w(k, kh, kw, cin, cout):
        fan_in = kh * kw * cin
        return jax.random.normal(k, (kh, kw, cin, cout), jnp.float32) / jnp.sqrt(float(fan_in))

    def bn_params(k, c):
        k1, k2, k3, k4 = jax.random.split(k, 4)
        gamma = 1.0 + 0.1 * jax.random.normal(k1, (c,), jnp.float32)
        beta = 0.1 * jax.random.normal(k2, (c,), jnp.float32)
        mean = 0.1 * jax.random.normal(k3, (c,), jnp.float32)
        var = 1.0 + 0.1 * jax.random.uniform(k4, (c,), jnp.float32)
        return gamma, beta, mean, var

    def fold(w, bnp, eps=1e-5):
        gamma, beta, mean, var = bnp
        scale = gamma / jnp.sqrt(var + eps)
        return w * scale, beta - mean * scale  # eval-mode BN folded into conv

    p = {}
    p["stem_w"], p["stem_b"] = fold(conv_w(ks[0], 7, 7, 3, stem_ch), bn_params(ks[1], stem_ch))
    p["c1_w"], p["c1_b"] = fold(conv_w(ks[2], 1, 1, stem_ch, mid_ch), bn_params(ks[3], mid_ch))
    p["c2_w"], p["c2_b"] = fold(conv_w(ks[4], 3, 3, mid_ch, mid_ch), bn_params(ks[5], mid_ch))
    p["c3_w"], p["c3_b"] = fold(conv_w(ks[6], 1, 1, mid_ch, feat_dim), bn_params(ks[7], feat_dim))
    p["proj_w"], p["proj_b"] = fold(conv_w(ks[8], 1, 1, stem_ch, feat_dim), bn_params(ks[9], feat_dim))
    # self.embed = nn.Linear(resnet.fc.in_features (=2048), embed_size)
    p["embed_w"] = jax.random.normal(ks[10], (feat_dim, embed_size), jnp.float32) / jnp.sqrt(float(feat_dim))
    p["embed_b"] = 0.01 * jax.random.normal(ks[11], (embed_size,), jnp.float32)
    return p


if __name__ == "__main__":
    key = jax.random.PRNGKey(0)
    k_img, k_par = jax.random.split(key)

    batch, embed_size = 2, 32
    images = jax.random.normal(k_img, (batch, 3, 16, 16), jnp.float32)  # NCHW, like PyTorch
    params = init_params(k_par, embed_size=embed_size, feat_dim=2048)

    feats = jax.jit(encoder_cnn_forward)(images, params)
    feats = jax.block_until_ready(feats)

    assert feats.shape == (batch, embed_size), feats.shape
    assert feats.dtype == jnp.float32, feats.dtype
    assert bool(jnp.all(jnp.isfinite(feats)))
    print("KERNEL_OK")
</pallas_src>

<mosaic_0001>
module attributes {stable_mosaic.version = 11 : i64} {
  func.func @_gemm_kernel(%arg0: i32, %arg1: i32, %arg2: i32, %arg3: memref<128x256xbf16, #tpu.memory_space<vmem>>, %arg4: memref<256x128xbf16, #tpu.memory_space<vmem>>, %arg5: memref<1x128xf32, #tpu.memory_space<vmem>>, %arg6: memref<128x128xbf16, #tpu.memory_space<vmem>>, %arg7: memref<128x128xf32, #tpu.memory_space<vmem>>) attributes {dimension_semantics = [#tpu.dimension_semantics<parallel>, #tpu.dimension_semantics<parallel>, #tpu.dimension_semantics<arbitrary>], iteration_bounds = array<i64: 1, 1, 1>, scalar_prefetch = 0 : i64, scratch_operands = 1 : i64, tpu.core_type = #tpu.core_type<tc>, window_params = [{transform_indices = @transform_0, window_bounds = array<i64: 128, 256>}, {transform_indices = @transform_1, window_bounds = array<i64: 256, 128>}, {transform_indices = @transform_2, window_bounds = array<i64: 1, 128>}, {transform_indices = @transform_3, window_bounds = array<i64: 128, 128>}]} {
    %c0_i32 = arith.constant 0 : i32
    %0 = arith.cmpi eq, %arg2, %c0_i32 : i32
    %1 = arith.extui %0 : i1 to i32
    %c0_i32_0 = arith.constant 0 : i32
    %2 = arith.cmpi ne, %1, %c0_i32_0 : i32
    scf.if %2 {
      %cst_10 = arith.constant 0.000000e+00 : f32
      %12 = vector.broadcast %cst_10 : f32 to vector<128x128xf32>
      %c0_11 = arith.constant 0 : index
      %c0_12 = arith.constant 0 : index
      %13 = vector.load %arg7[%c0_11, %c0_12] : memref<128x128xf32, #tpu.memory_space<vmem>>, vector<128x128xf32>
      tpu.vector_store %arg7[%c0_11, %c0_12], %12 {strides = array<i32>} : memref<128x128xf32, #tpu.memory_space<vmem>>, vector<128x128xf32>,
    } else {
    }
    %c0 = arith.constant 0 : index
    %c0_1 = arith.constant 0 : index
    %3 = vector.load %arg7[%c0, %c0_1] : memref<128x128xf32, #tpu.memory_space<vmem>>, vector<128x128xf32>
    %c0_2 = arith.constant 0 : index
    %c0_3 = arith.constant 0 : index
    %4 = vector.load %arg3[%c0_2, %c0_3] : memref<128x256xbf16, #tpu.memory_space<vmem>>, vector<128x256xbf16>
    %c0_4 = arith.constant 0 : index
    %c0_5 = arith.constant 0 : index
    %5 = vector.load %arg4[%c0_4, %c0_5] : memref<256x128xbf16, #tpu.memory_space<vmem>>, vector<256x128xbf16>
    %cst = arith.constant dense<0.000000e+00> : vector<128x128xf32>
    %6 = tpu.matmul %4, %5, %cst {dimension_numbers = #tpu.dot_dimension_numbers<[1], [0], [0], [1], [0, 0, 1, 1], [], []>} : vector<128x256xbf16>, vector<256x128xbf16>, vector<128x128xf32> -> vector<128x128xf32>
    %7 = arith.addf %3, %6 : vector<128x128xf32>
    %c0_6 = arith.constant 0 : index
    %c0_7 = arith.constant 0 : index
    %8 = vector.load %arg7[%c0_6, %c0_7] : memref<128x128xf32, #tpu.memory_space<vmem>>, vector<128x128xf32>
    tpu.vector_store %arg7[%c0_6, %c0_7], %7 {strides = array<i32>} : memref<128x128xf32, #tpu.memory_space<vmem>>, vector<128x128xf32>,
    %c0_i32_8 = arith.constant 0 : i32
    %9 = arith.cmpi eq, %arg2, %c0_i32_8 : i32
    %10 = arith.extui %9 : i1 to i32
    %c0_i32_9 = arith.constant 0 : i32
    %11 = arith.cmpi ne, %10, %c0_i32_9 : i32
    scf.if %11 {
      %c0_10 = arith.constant 0 : index
      %c0_11 = arith.constant 0 : index
      %12 = vector.load %arg7[%c0_10, %c0_11] : memref<128x128xf32, #tpu.memory_space<vmem>>, vector<128x128xf32>
      %c0_12 = arith.constant 0 : index
      %c0_13 = arith.constant 0 : index
      %13 = vector.load %arg5[%c0_12, %c0_13] : memref<1x128xf32, #tpu.memory_space<vmem>>, vector<1x128xf32>
      %14 = vector.broadcast %13 : vector<1x128xf32> to vector<128x128xf32>
      %15 = arith.addf %12, %14 : vector<128x128xf32>
      %cst_14 = arith.constant 0.000000e+00 : f32
      %16 = vector.broadcast %cst_14 : f32 to vector<128x128xf32>
      %17 = arith.maximumf %15, %16 : vector<128x128xf32>
      %18 = arith.truncf %17 : vector<128x128xf32> to vector<128x128xbf16>
      %c0_15 = arith.constant 0 : index
      %c0_16 = arith.constant 0 : index
      %19 = vector.load %arg6[%c0_15, %c0_16] : memref<128x128xbf16, #tpu.memory_space<vmem>>, vector<128x128xbf16>
      tpu.vector_store %arg6[%c0_15, %c0_16], %18 {strides = array<i32>} : memref<128x128xbf16, #tpu.memory_space<vmem>>, vector<128x128xbf16>,
    } else {
    }
    return
  }
  func.func @transform_0(%arg0: i32, %arg1: i32, %arg2: i32) -> (i32, i32) {
    %c0_i32 = arith.constant 0 : i32
    return %arg0, %arg2 : i32, i32
  }
  func.func @transform_1(%arg0: i32, %arg1: i32, %arg2: i32) -> (i32, i32) {
    %c0_i32 = arith.constant 0 : i32
    return %arg2, %arg1 : i32, i32
  }
  func.func @transform_2(%arg0: i32, %arg1: i32, %arg2: i32) -> (i32, i32) {
    %c0_i32 = arith.constant 0 : i32
    %c0_i32_0 = arith.constant 0 : i32
    return %c0_i32, %arg1 : i32, i32
  }
  func.func @transform_3(%arg0: i32, %arg1: i32, %arg2: i32) -> (i32, i32) {
    %c0_i32 = arith.constant 0 : i32
    return %arg0, %arg1 : i32, i32
  }
}

module attributes {stable_mosaic.version = 11 : i64} {
  func.func @_maxpool3_dense_kernel(%arg0: i32, %arg1: i32, %arg2: memref<1x10x10x128xbf16, #tpu.memory_space<vmem>>, %arg3: memref<1x8x8x128xbf16, #tpu.memory_space<vmem>>) attributes {dimension_semantics = [#tpu.dimension_semantics<parallel>, #tpu.dimension_semantics<parallel>], iteration_bounds = array<i64: 2, 1>, scalar_prefetch = 0 : i64, scratch_operands = 0 : i64, tpu.core_type = #tpu.core_type<tc>, window_params = [{transform_indices = @transform_0, window_bounds = array<i64: 1, 10, 10, 128>}, {transform_indices = @transform_1, window_bounds = array<i64: 1, 8, 8, 128>}]} {
    %c0 = arith.constant 0 : index
    %c0_0 = arith.constant 0 : index
    %c0_1 = arith.constant 0 : index
    %c0_2 = arith.constant 0 : index
    %0 = vector.load %arg2[%c0, %c0_0, %c0_1, %c0_2] : memref<1x10x10x128xbf16, #tpu.memory_space<vmem>>, vector<1x8x8x128xbf16>
    %1 = vector.shape_cast %0 : vector<1x8x8x128xbf16> to vector<8x8x128xbf16>
    %c0_3 = arith.constant 0 : index
    %c0_4 = arith.constant 0 : index
    %c1 = arith.constant 1 : index
    %c0_5 = arith.constant 0 : index
    %2 = vector.load %arg2[%c0_3, %c0_4, %c1, %c0_5] : memref<1x10x10x128xbf16, #tpu.memory_space<vmem>>, vector<1x8x8x128xbf16>
    %3 = vector.shape_cast %2 : vector<1x8x8x128xbf16> to vector<8x8x128xbf16>
    %4 = arith.maximumf %1, %3 : vector<8x8x128xbf16>
    %c0_6 = arith.constant 0 : index
    %c0_7 = arith.constant 0 : index
    %c2 = arith.constant 2 : index
    %c0_8 = arith.constant 0 : index
    %5 = vector.load %arg2[%c0_6, %c0_7, %c2, %c0_8] : memref<1x10x10x128xbf16, #tpu.memory_space<vmem>>, vector<1x8x8x128xbf16>
    %6 = vector.shape_cast %5 : vector<1x8x8x128xbf16> to vector<8x8x128xbf16>
    %7 = arith.maximumf %4, %6 : vector<8x8x128xbf16>
    %c0_9 = arith.constant 0 : index
    %c1_10 = arith.constant 1 : index
    %c0_11 = arith.constant 0 : index
    %c0_12 = arith.constant 0 : index
    %8 = vector.load %arg2[%c0_9, %c1_10, %c0_11, %c0_12] : memref<1x10x10x128xbf16, #tpu.memory_space<vmem>>, vector<1x8x8x128xbf16>
    %9 = vector.shape_cast %8 : vector<1x8x8x128xbf16> to vector<8x8x128xbf16>
    %10 = arith.maximumf %7, %9 : vector<8x8x128xbf16>
    %c0_13 = arith.constant 0 : index
    %c1_14 = arith.constant 1 : index
    %c1_15 = arith.constant 1 : index
    %c0_16 = arith.constant 0 : index
    %11 = vector.load %arg2[%c0_13, %c1_14, %c1_15, %c0_16] : memref<1x10x10x128xbf16, #tpu.memory_space<vmem>>, vector<1x8x8x128xbf16>
    %12 = vector.shape_cast %11 : vector<1x8x8x128xbf16> to vector<8x8x128xbf16>
    %13 = arith.maximumf %10, %12 : vector<8x8x128xbf16>
    %c0_17 = arith.constant 0 : index
    %c1_18 = arith.constant 1 : index
    %c2_19 = arith.constant 2 : index
    %c0_20 = arith.constant 0 : index
    %14 = vector.load %arg2[%c0_17, %c1_18, %c2_19, %c0_20] : memref<1x10x10x128xbf16, #tpu.memory_space<vmem>>, vector<1x8x8x128xbf16>
    %15 = vector.shape_cast %14 : vector<1x8x8x128xbf16> to vector<8x8x128xbf16>
    %16 = arith.maximumf %13, %15 : vector<8x8x128xbf16>
    %c0_21 = arith.constant 0 : index
    %c2_22 = arith.constant 2 : index
    %c0_23 = arith.constant 0 : index
    %c0_24 = arith.constant 0 : index
    %17 = vector.load %arg2[%c0_21, %c2_22, %c0_23, %c0_24] : memref<1x10x10x128xbf16, #tpu.memory_space<vmem>>, vector<1x8x8x128xbf16>
    %18 = vector.shape_cast %17 : vector<1x8x8x128xbf16> to vector<8x8x128xbf16>
    %19 = arith.maximumf %16, %18 : vector<8x8x128xbf16>
    %c0_25 = arith.constant 0 : index
    %c2_26 = arith.constant 2 : index
    %c1_27 = arith.constant 1 : index
    %c0_28 = arith.constant 0 : index
    %20 = vector.load %arg2[%c0_25, %c2_26, %c1_27, %c0_28] : memref<1x10x10x128xbf16, #tpu.memory_space<vmem>>, vector<1x8x8x128xbf16>
    %21 = vector.shape_cast %20 : vector<1x8x8x128xbf16> to vector<8x8x128xbf16>
    %22 = arith.maximumf %19, %21 : vector<8x8x128xbf16>
    %c0_29 = arith.constant 0 : index
    %c2_30 = arith.constant 2 : index
    %c2_31 = arith.constant 2 : index
    %c0_32 = arith.constant 0 : index
    %23 = vector.load %arg2[%c0_29, %c2_30, %c2_31, %c0_32] : memref<1x10x10x128xbf16, #tpu.memory_space<vmem>>, vector<1x8x8x128xbf16>
    %24 = vector.shape_cast %23 : vector<1x8x8x128xbf16> to vector<8x8x128xbf16>
    %25 = arith.maximumf %22, %24 : vector<8x8x128xbf16>
    %c0_33 = arith.constant 0 : index
    %c0_34 = arith.constant 0 : index
    %c0_35 = arith.constant 0 : index
    %c0_36 = arith.constant 0 : index
    %26 = vector.load %arg3[%c0_33, %c0_34, %c0_35, %c0_36] : memref<1x8x8x128xbf16, #tpu.memory_space<vmem>>, vector<1x8x8x128xbf16>
    %27 = vector.shape_cast %26 : vector<1x8x8x128xbf16> to vector<8x8x128xbf16>
    %28 = vector.shape_cast %25 : vector<8x8x128xbf16> to vector<1x8x8x128xbf16>
    tpu.vector_store %arg3[%c0_33, %c0_34, %c0_35, %c0_36], %28 {strides = array<i32>} : memref<1x8x8x128xbf16, #tpu.memory_space<vmem>>, vector<1x8x8x128xbf16>,
    return
  }
  func.func @transform_0(%arg0: i32, %arg1: i32) -> (i32, i32, i32, i32) {
    %c0_i32 = arith.constant 0 : i32
    %c0_i32_0 = arith.constant 0 : i32
    %c0_i32_1 = arith.constant 0 : i32
    return %arg0, %c0_i32, %c0_i32_0, %arg1 : i32, i32, i32, i32
  }
  func.func @transform_1(%arg0: i32, %arg1: i32) -> (i32, i32, i32, i32) {
    %c0_i32 = arith.constant 0 : i32
    %c0_i32_0 = arith.constant 0 : i32
    %c0_i32_1 = arith.constant 0 : i32
    return %arg0, %c0_i32, %c0_i32_0, %arg1 : i32, i32, i32, i32
  }
}

module attributes {stable_mosaic.version = 11 : i64} {
  func.func @_gemm_kernel(%arg0: i32, %arg1: i32, %arg2: i32, %arg3: memref<32x128xbf16, #tpu.memory_space<vmem>>, %arg4: memref<128x128xbf16, #tpu.memory_space<vmem>>, %arg5: memref<1x128xf32, #tpu.memory_space<vmem>>, %arg6: memref<32x128xbf16, #tpu.memory_space<vmem>>, %arg7: memref<32x128xf32, #tpu.memory_space<vmem>>) attributes {dimension_semantics = [#tpu.dimension_semantics<parallel>, #tpu.dimension_semantics<parallel>, #tpu.dimension_semantics<arbitrary>], iteration_bounds = array<i64: 1, 1, 1>, scalar_prefetch = 0 : i64, scratch_operands = 1 : i64, tpu.core_type = #tpu.core_type<tc>, window_params = [{transform_indices = @transform_0, window_bounds = array<i64: 32, 128>}, {transform_indices = @transform_1, window_bounds = array<i64: 128, 128>}, {transform_indices = @transform_2, window_bounds = array<i64: 1, 128>}, {transform_indices = @transform_3, window_bounds = array<i64: 32, 128>}]} {
    %c0_i32 = arith.constant 0 : i32
    %0 = arith.cmpi eq, %arg2, %c0_i32 : i32
    %1 = arith.extui %0 : i1 to i32
    %c0_i32_0 = arith.constant 0 : i32
    %2 = arith.cmpi ne, %1, %c0_i32_0 : i32
    scf.if %2 {
      %cst_10 = arith.constant 0.000000e+00 : f32
      %12 = vector.broadcast %cst_10 : f32 to vector<32x128xf32>
      %c0_11 = arith.constant 0 : index
      %c0_12 = arith.constant 0 : index
      %13 = vector.load %arg7[%c0_11, %c0_12] : memref<32x128xf32, #tpu.memory_space<vmem>>, vector<32x128xf32>
      tpu.vector_store %arg7[%c0_11, %c0_12], %12 {strides = array<i32>} : memref<32x128xf32, #tpu.memory_space<vmem>>, vector<32x128xf32>,
    } else {
    }
    %c0 = arith.constant 0 : index
    %c0_1 = arith.constant 0 : index
    %3 = vector.load %arg7[%c0, %c0_1] : memref<32x128xf32, #tpu.memory_space<vmem>>, vector<32x128xf32>
    %c0_2 = arith.constant 0 : index
    %c0_3 = arith.constant 0 : index
    %4 = vector.load %arg3[%c0_2, %c0_3] : memref<32x128xbf16, #tpu.memory_space<vmem>>, vector<32x128xbf16>
    %c0_4 = arith.constant 0 : index
    %c0_5 = arith.constant 0 : index
    %5 = vector.load %arg4[%c0_4, %c0_5] : memref<128x128xbf16, #tpu.memory_space<vmem>>, vector<128x128xbf16>
    %cst = arith.constant dense<0.000000e+00> : vector<32x128xf32>
    %6 = tpu.matmul %4, %5, %cst {dimension_numbers = #tpu.dot_dimension_numbers<[1], [0], [0], [1], [0, 0, 1, 1], [], []>} : vector<32x128xbf16>, vector<128x128xbf16>, vector<32x128xf32> -> vector<32x128xf32>
    %7 = arith.addf %3, %6 : vector<32x128xf32>
    %c0_6 = arith.constant 0 : index
    %c0_7 = arith.constant 0 : index
    %8 = vector.load %arg7[%c0_6, %c0_7] : memref<32x128xf32, #tpu.memory_space<vmem>>, vector<32x128xf32>
    tpu.vector_store %arg7[%c0_6, %c0_7], %7 {strides = array<i32>} : memref<32x128xf32, #tpu.memory_space<vmem>>, vector<32x128xf32>,
    %c0_i32_8 = arith.constant 0 : i32
    %9 = arith.cmpi eq, %arg2, %c0_i32_8 : i32
    %10 = arith.extui %9 : i1 to i32
    %c0_i32_9 = arith.constant 0 : i32
    %11 = arith.cmpi ne, %10, %c0_i32_9 : i32
    scf.if %11 {
      %c0_10 = arith.constant 0 : index
      %c0_11 = arith.constant 0 : index
      %12 = vector.load %arg7[%c0_10, %c0_11] : memref<32x128xf32, #tpu.memory_space<vmem>>, vector<32x128xf32>
      %c0_12 = arith.constant 0 : index
      %c0_13 = arith.constant 0 : index
      %13 = vector.load %arg5[%c0_12, %c0_13] : memref<1x128xf32, #tpu.memory_space<vmem>>, vector<1x128xf32>
      %14 = vector.broadcast %13 : vector<1x128xf32> to vector<32x128xf32>
      %15 = arith.addf %12, %14 : vector<32x128xf32>
      %cst_14 = arith.constant 0.000000e+00 : f32
      %16 = vector.broadcast %cst_14 : f32 to vector<32x128xf32>
      %17 = arith.maximumf %15, %16 : vector<32x128xf32>
      %18 = arith.truncf %17 : vector<32x128xf32> to vector<32x128xbf16>
      %c0_15 = arith.constant 0 : index
      %c0_16 = arith.constant 0 : index
      %19 = vector.load %arg6[%c0_15, %c0_16] : memref<32x128xbf16, #tpu.memory_space<vmem>>, vector<32x128xbf16>
      tpu.vector_store %arg6[%c0_15, %c0_16], %18 {strides = array<i32>} : memref<32x128xbf16, #tpu.memory_space<vmem>>, vector<32x128xbf16>,
    } else {
    }
    return
  }
  func.func @transform_0(%arg0: i32, %arg1: i32, %arg2: i32) -> (i32, i32) {
    %c0_i32 = arith.constant 0 : i32
    return %arg0, %arg2 : i32, i32
  }
  func.func @transform_1(%arg0: i32, %arg1: i32, %arg2: i32) -> (i32, i32) {
    %c0_i32 = arith.constant 0 : i32
    return %arg2, %arg1 : i32, i32
  }
  func.func @transform_2(%arg0: i32, %arg1: i32, %arg2: i32) -> (i32, i32) {
    %c0_i32 = arith.constant 0 : i32
    %c0_i32_0 = arith.constant 0 : i32
    return %c0_i32, %arg1 : i32, i32
  }
  func.func @transform_3(%arg0: i32, %arg1: i32, %arg2: i32) -> (i32, i32) {
    %c0_i32 = arith.constant 0 : i32
    return %arg0, %arg1 : i32, i32
  }
}

module attributes {stable_mosaic.version = 11 : i64} {
  func.func @_gemm_kernel(%arg0: i32, %arg1: i32, %arg2: i32, %arg3: memref<32x384xbf16, #tpu.memory_space<vmem>>, %arg4: memref<384x128xbf16, #tpu.memory_space<vmem>>, %arg5: memref<1x128xf32, #tpu.memory_space<vmem>>, %arg6: memref<32x128xbf16, #tpu.memory_space<vmem>>, %arg7: memref<32x128xf32, #tpu.memory_space<vmem>>) attributes {dimension_semantics = [#tpu.dimension_semantics<parallel>, #tpu.dimension_semantics<parallel>, #tpu.dimension_semantics<arbitrary>], iteration_bounds = array<i64: 1, 1, 3>, scalar_prefetch = 0 : i64, scratch_operands = 1 : i64, tpu.core_type = #tpu.core_type<tc>, window_params = [{transform_indices = @transform_0, window_bounds = array<i64: 32, 384>}, {transform_indices = @transform_1, window_bounds = array<i64: 384, 128>}, {transform_indices = @transform_2, window_bounds = array<i64: 1, 128>}, {transform_indices = @transform_3, window_bounds = array<i64: 32, 128>}]} {
    %c0_i32 = arith.constant 0 : i32
    %0 = arith.cmpi eq, %arg2, %c0_i32 : i32
    %1 = arith.extui %0 : i1 to i32
    %c0_i32_0 = arith.constant 0 : i32
    %2 = arith.cmpi ne, %1, %c0_i32_0 : i32
    scf.if %2 {
      %cst_9 = arith.constant 0.000000e+00 : f32
      %12 = vector.broadcast %cst_9 : f32 to vector<32x128xf32>
      %c0_10 = arith.constant 0 : index
      %c0_11 = arith.constant 0 : index
      %13 = vector.load %arg7[%c0_10, %c0_11] : memref<32x128xf32, #tpu.memory_space<vmem>>, vector<32x128xf32>
      tpu.vector_store %arg7[%c0_10, %c0_11], %12 {strides = array<i32>} : memref<32x128xf32, #tpu.memory_space<vmem>>, vector<32x128xf32>,
    } else {
    }
    %c0 = arith.constant 0 : index
    %c0_1 = arith.constant 0 : index
    %3 = vector.load %arg7[%c0, %c0_1] : memref<32x128xf32, #tpu.memory_space<vmem>>, vector<32x128xf32>
    %c0_2 = arith.constant 0 : index
    %c0_3 = arith.constant 0 : index
    %4 = vector.load %arg3[%c0_2, %c0_3] : memref<32x384xbf16, #tpu.memory_space<vmem>>, vector<32x384xbf16>
    %c0_4 = arith.constant 0 : index
    %c0_5 = arith.constant 0 : index
    %5 = vector.load %arg4[%c0_4, %c0_5] : memref<384x128xbf16, #tpu.memory_space<vmem>>, vector<384x128xbf16>
    %cst = arith.constant dense<0.000000e+00> : vector<32x128xf32>
    %6 = tpu.matmul %4, %5, %cst {dimension_numbers = #tpu.dot_dimension_numbers<[1], [0], [0], [1], [0, 0, 1, 1], [], []>} : vector<32x384xbf16>, vector<384x128xbf16>, vector<32x128xf32> -> vector<32x128xf32>
    %7 = arith.addf %3, %6 : vector<32x128xf32>
    %c0_6 = arith.constant 0 : index
    %c0_7 = arith.constant 0 : index
    %8 = vector.load %arg7[%c0_6, %c0_7] : memref<32x128xf32, #tpu.memory_space<vmem>>, vector<32x128xf32>
    tpu.vector_store %arg7[%c0_6, %c0_7], %7 {strides = array<i32>} : memref<32x128xf32, #tpu.memory_space<vmem>>, vector<32x128xf32>,
    %c2_i32 = arith.constant 2 : i32
    %9 = arith.cmpi eq, %arg2, %c2_i32 : i32
    %10 = arith.extui %9 : i1 to i32
    %c0_i32_8 = arith.constant 0 : i32
    %11 = arith.cmpi ne, %10, %c0_i32_8 : i32
    scf.if %11 {
      %c0_9 = arith.constant 0 : index
      %c0_10 = arith.constant 0 : index
      %12 = vector.load %arg7[%c0_9, %c0_10] : memref<32x128xf32, #tpu.memory_space<vmem>>, vector<32x128xf32>
      %c0_11 = arith.constant 0 : index
      %c0_12 = arith.constant 0 : index
      %13 = vector.load %arg5[%c0_11, %c0_12] : memref<1x128xf32, #tpu.memory_space<vmem>>, vector<1x128xf32>
      %14 = vector.broadcast %13 : vector<1x128xf32> to vector<32x128xf32>
      %15 = arith.addf %12, %14 : vector<32x128xf32>
      %cst_13 = arith.constant 0.000000e+00 : f32
      %16 = vector.broadcast %cst_13 : f32 to vector<32x128xf32>
      %17 = arith.maximumf %15, %16 : vector<32x128xf32>
      %18 = arith.truncf %17 : vector<32x128xf32> to vector<32x128xbf16>
      %c0_14 = arith.constant 0 : index
      %c0_15 = arith.constant 0 : index
      %19 = vector.load %arg6[%c0_14, %c0_15] : memref<32x128xbf16, #tpu.memory_space<vmem>>, vector<32x128xbf16>
      tpu.vector_store %arg6[%c0_14, %c0_15], %18 {strides = array<i32>} : memref<32x128xbf16, #tpu.memory_space<vmem>>, vector<32x128xbf16>,
    } else {
    }
    return
  }
  func.func @transform_0(%arg0: i32, %arg1: i32, %arg2: i32) -> (i32, i32) {
    %c0_i32 = arith.constant 0 : i32
    return %arg0, %arg2 : i32, i32
  }
  func.func @transform_1(%arg0: i32, %arg1: i32, %arg2: i32) -> (i32, i32) {
    %c0_i32 = arith.constant 0 : i32
    return %arg2, %arg1 : i32, i32
  }
  func.func @transform_2(%arg0: i32, %arg1: i32, %arg2: i32) -> (i32, i32) {
    %c0_i32 = arith.constant 0 : i32
    %c0_i32_0 = arith.constant 0 : i32
    return %c0_i32, %arg1 : i32, i32
  }
  func.func @transform_3(%arg0: i32, %arg1: i32, %arg2: i32) -> (i32, i32) {
    %c0_i32 = arith.constant 0 : i32
    return %arg0, %arg1 : i32, i32
  }
}

module attributes {stable_mosaic.version = 11 : i64} {
  func.func @_gemm_kernel(%arg0: i32, %arg1: i32, %arg2: i32, %arg3: memref<32x256xbf16, #tpu.memory_space<vmem>>, %arg4: memref<256x1024xbf16, #tpu.memory_space<vmem>>, %arg5: memref<1x1024xf32, #tpu.memory_space<vmem>>, %arg6: memref<32x1024xbf16, #tpu.memory_space<vmem>>, %arg7: memref<32x1024xf32, #tpu.memory_space<vmem>>) attributes {dimension_semantics = [#tpu.dimension_semantics<parallel>, #tpu.dimension_semantics<parallel>, #tpu.dimension_semantics<arbitrary>], iteration_bounds = array<i64: 1, 2, 1>, scalar_prefetch = 0 : i64, scratch_operands = 1 : i64, tpu.core_type = #tpu.core_type<tc>, window_params = [{transform_indices = @transform_0, window_bounds = array<i64: 32, 256>}, {transform_indices = @transform_1, window_bounds = array<i64: 256, 1024>}, {transform_indices = @transform_2, window_bounds = array<i64: 1, 1024>}, {transform_indices = @transform_3, window_bounds = array<i64: 32, 1024>}]} {
    %c0_i32 = arith.constant 0 : i32
    %0 = arith.cmpi eq, %arg2, %c0_i32 : i32
    %1 = arith.extui %0 : i1 to i32
    %c0_i32_0 = arith.constant 0 : i32
    %2 = arith.cmpi ne, %1, %c0_i32_0 : i32
    scf.if %2 {
      %cst_10 = arith.constant 0.000000e+00 : f32
      %12 = vector.broadcast %cst_10 : f32 to vector<32x1024xf32>
      %c0_11 = arith.constant 0 : index
      %c0_12 = arith.constant 0 : index
      %13 = vector.load %arg7[%c0_11, %c0_12] : memref<32x1024xf32, #tpu.memory_space<vmem>>, vector<32x1024xf32>
      tpu.vector_store %arg7[%c0_11, %c0_12], %12 {strides = array<i32>} : memref<32x1024xf32, #tpu.memory_space<vmem>>, vector<32x1024xf32>,
    } else {
    }
    %c0 = arith.constant 0 : index
    %c0_1 = arith.constant 0 : index
    %3 = vector.load %arg7[%c0, %c0_1] : memref<32x1024xf32, #tpu.memory_space<vmem>>, vector<32x1024xf32>
    %c0_2 = arith.constant 0 : index
    %c0_3 = arith.constant 0 : index
    %4 = vector.load %arg3[%c0_2, %c0_3] : memref<32x256xbf16, #tpu.memory_space<vmem>>, vector<32x256xbf16>
    %c0_4 = arith.constant 0 : index
    %c0_5 = arith.constant 0 : index
    %5 = vector.load %arg4[%c0_4, %c0_5] : memref<256x1024xbf16, #tpu.memory_space<vmem>>, vector<256x1024xbf16>
    %cst = arith.constant dense<0.000000e+00> : vector<32x1024xf32>
    %6 = tpu.matmul %4, %5, %cst {dimension_numbers = #tpu.dot_dimension_numbers<[1], [0], [0], [1], [0, 0, 1, 1], [], []>} : vector<32x256xbf16>, vector<256x1024xbf16>, vector<32x1024xf32> -> vector<32x1024xf32>
    %7 = arith.addf %3, %6 : vector<32x1024xf32>
    %c0_6 = arith.constant 0 : index
    %c0_7 = arith.constant 0 : index
    %8 = vector.load %arg7[%c0_6, %c0_7] : memref<32x1024xf32, #tpu.memory_space<vmem>>, vector<32x1024xf32>
    tpu.vector_store %arg7[%c0_6, %c0_7], %7 {strides = array<i32>} : memref<32x1024xf32, #tpu.memory_space<vmem>>, vector<32x1024xf32>,
    %c0_i32_8 = arith.constant 0 : i32
    %9 = arith.cmpi eq, %arg2, %c0_i32_8 : i32
    %10 = arith.extui %9 : i1 to i32
    %c0_i32_9 = arith.constant 0 : i32
    %11 = arith.cmpi ne, %10, %c0_i32_9 : i32
    scf.if %11 {
      %c0_10 = arith.constant 0 : index
      %c0_11 = arith.constant 0 : index
      %12 = vector.load %arg7[%c0_10, %c0_11] : memref<32x1024xf32, #tpu.memory_space<vmem>>, vector<32x1024xf32>
      %c0_12 = arith.constant 0 : index
      %c0_13 = arith.constant 0 : index
      %13 = vector.load %arg5[%c0_12, %c0_13] : memref<1x1024xf32, #tpu.memory_space<vmem>>, vector<1x1024xf32>
      %14 = vector.broadcast %13 : vector<1x1024xf32> to vector<32x1024xf32>
      %15 = arith.addf %12, %14 : vector<32x1024xf32>
      %cst_14 = arith.constant 0.000000e+00 : f32
      %16 = vector.broadcast %cst_14 : f32 to vector<32x1024xf32>
      %17 = arith.maximumf %15, %16 : vector<32x1024xf32>
      %18 = arith.truncf %17 : vector<32x1024xf32> to vector<32x1024xbf16>
      %c0_15 = arith.constant 0 : index
      %c0_16 = arith.constant 0 : index
      %19 = vector.load %arg6[%c0_15, %c0_16] : memref<32x1024xbf16, #tpu.memory_space<vmem>>, vector<32x1024xbf16>
      tpu.vector_store %arg6[%c0_15, %c0_16], %18 {strides = array<i32>} : memref<32x1024xbf16, #tpu.memory_space<vmem>>, vector<32x1024xbf16>,
    } else {
    }
    return
  }
  func.func @transform_0(%arg0: i32, %arg1: i32, %arg2: i32) -> (i32, i32) {
    %c0_i32 = arith.constant 0 : i32
    return %arg0, %arg2 : i32, i32
  }
  func.func @transform_1(%arg0: i32, %arg1: i32, %arg2: i32) -> (i32, i32) {
    %c0_i32 = arith.constant 0 : i32
    return %arg2, %arg1 : i32, i32
  }
  func.func @transform_2(%arg0: i32, %arg1: i32, %arg2: i32) -> (i32, i32) {
    %c0_i32 = arith.constant 0 : i32
    %c0_i32_0 = arith.constant 0 : i32
    return %c0_i32, %arg1 : i32, i32
  }
  func.func @transform_3(%arg0: i32, %arg1: i32, %arg2: i32) -> (i32, i32) {
    %c0_i32 = arith.constant 0 : i32
    return %arg0, %arg1 : i32, i32
  }
}

module attributes {stable_mosaic.version = 11 : i64} {
  func.func @_avgpool_embed_kernel(%arg0: i32, %arg1: memref<2x16x2048xbf16, #tpu.memory_space<vmem>>, %arg2: memref<2048x128xf32, #tpu.memory_space<vmem>>, %arg3: memref<1x128xf32, #tpu.memory_space<vmem>>, %arg4: memref<2x128xf32, #tpu.memory_space<vmem>>, %arg5: memref<2x128xf32, #tpu.memory_space<vmem>>) attributes {dimension_semantics = [#tpu.dimension_semantics<arbitrary>], iteration_bounds = array<i64: 1>, scalar_prefetch = 0 : i64, scratch_operands = 1 : i64, tpu.core_type = #tpu.core_type<tc>, window_params = [{transform_indices = @transform_0, window_bounds = array<i64: 2, 16, 2048>}, {transform_indices = @transform_1, window_bounds = array<i64: 2048, 128>}, {pipeline_mode = #tpu.pipeline_mode<synchronous>, transform_indices = @transform_2, window_bounds = array<i64: 1, 128>}, {pipeline_mode = #tpu.pipeline_mode<synchronous>, transform_indices = @transform_3, window_bounds = array<i64: 2, 128>}]} {
    %c0_i32 = arith.constant 0 : i32
    %0 = arith.cmpi eq, %arg0, %c0_i32 : i32
    %1 = arith.extui %0 : i1 to i32
    %c0_i32_0 = arith.constant 0 : i32
    %2 = arith.cmpi ne, %1, %c0_i32_0 : i32
    scf.if %2 {
      %cst_12 = arith.constant 0.000000e+00 : f32
      %14 = vector.broadcast %cst_12 : f32 to vector<2x128xf32>
      %c0_13 = arith.constant 0 : index
      %c0_14 = arith.constant 0 : index
      %15 = vector.load %arg5[%c0_13, %c0_14] : memref<2x128xf32, #tpu.memory_space<vmem>>, vector<2x128xf32>
      tpu.vector_store %arg5[%c0_13, %c0_14], %14 {strides = array<i32>} : memref<2x128xf32, #tpu.memory_space<vmem>>, vector<2x128xf32>,
    } else {
    }
    %c0 = arith.constant 0 : index
    %c0_1 = arith.constant 0 : index
    %c0_2 = arith.constant 0 : index
    %3 = vector.load %arg1[%c0, %c0_1, %c0_2] : memref<2x16x2048xbf16, #tpu.memory_space<vmem>>, vector<2x16x2048xbf16>
    %4 = arith.extf %3 : vector<2x16x2048xbf16> to vector<2x16x2048xf32>
    %cst = arith.constant dense<0.000000e+00> : vector<2x2048xf32>
    %5 = vector.multi_reduction <add>, %4, %cst [1] : vector<2x16x2048xf32> to vector<2x2048xf32>
    %c0_3 = arith.constant 0 : index
    %c0_4 = arith.constant 0 : index
    %6 = vector.load %arg5[%c0_3, %c0_4] : memref<2x128xf32, #tpu.memory_space<vmem>>, vector<2x128xf32>
    %c0_5 = arith.constant 0 : index
    %c0_6 = arith.constant 0 : index
    %7 = vector.load %arg2[%c0_5, %c0_6] : memref<2048x128xf32, #tpu.memory_space<vmem>>, vector<2048x128xf32>
    %cst_7 = arith.constant dense<0.000000e+00> : vector<2x128xf32>
    %8 = tpu.matmul %5, %7, %cst_7 {dimension_numbers = #tpu.dot_dimension_numbers<[1], [0], [0], [1], [0, 0, 1, 1], [], []>} : vector<2x2048xf32>, vector<2048x128xf32>, vector<2x128xf32> -> vector<2x128xf32>
    %9 = arith.addf %6, %8 : vector<2x128xf32>
    %c0_8 = arith.constant 0 : index
    %c0_9 = arith.constant 0 : index
    %10 = vector.load %arg5[%c0_8, %c0_9] : memref<2x128xf32, #tpu.memory_space<vmem>>, vector<2x128xf32>
    tpu.vector_store %arg5[%c0_8, %c0_9], %9 {strides = array<i32>} : memref<2x128xf32, #tpu.memory_space<vmem>>, vector<2x128xf32>,
    %c0_i32_10 = arith.constant 0 : i32
    %11 = arith.cmpi eq, %arg0, %c0_i32_10 : i32
    %12 = arith.extui %11 : i1 to i32
    %c0_i32_11 = arith.constant 0 : i32
    %13 = arith.cmpi ne, %12, %c0_i32_11 : i32
    scf.if %13 {
      %c0_12 = arith.constant 0 : index
      %c0_13 = arith.constant 0 : index
      %14 = vector.load %arg5[%c0_12, %c0_13] : memref<2x128xf32, #tpu.memory_space<vmem>>, vector<2x128xf32>
      %c0_14 = arith.constant 0 : index
      %c0_15 = arith.constant 0 : index
      %15 = vector.load %arg3[%c0_14, %c0_15] : memref<1x128xf32, #tpu.memory_space<vmem>>, vector<1x128xf32>
      %16 = vector.broadcast %15 : vector<1x128xf32> to vector<2x128xf32>
      %17 = arith.addf %14, %16 : vector<2x128xf32>
      %c0_16 = arith.constant 0 : index
      %c0_17 = arith.constant 0 : index
      %18 = vector.load %arg4[%c0_16, %c0_17] : memref<2x128xf32, #tpu.memory_space<vmem>>, vector<2x128xf32>
      tpu.vector_store %arg4[%c0_16, %c0_17], %17 {strides = array<i32>} : memref<2x128xf32, #tpu.memory_space<vmem>>, vector<2x128xf32>,
    } else {
    }
    return
  }
  func.func @transform_0(%arg0: i32) -> (i32, i32, i32) {
    %c0_i32 = arith.constant 0 : i32
    %c0_i32_0 = arith.constant 0 : i32
    %c0_i32_1 = arith.constant 0 : i32
    return %c0_i32, %c0_i32_0, %arg0 : i32, i32, i32
  }
  func.func @transform_1(%arg0: i32) -> (i32, i32) {
    %c0_i32 = arith.constant 0 : i32
    %c0_i32_0 = arith.constant 0 : i32
    return %arg0, %c0_i32 : i32, i32
  }
  func.func @transform_2(%arg0: i32) -> (i32, i32) {
    %c0_i32 = arith.constant 0 : i32
    %c0_i32_0 = arith.constant 0 : i32
    %c0_i32_1 = arith.constant 0 : i32
    return %c0_i32, %c0_i32_0 : i32, i32
  }
  func.func @transform_3(%arg0: i32) -> (i32, i32) {
    %c0_i32 = arith.constant 0 : i32
    %c0_i32_0 = arith.constant 0 : i32
    %c0_i32_1 = arith.constant 0 : i32
    return %c0_i32, %c0_i32_0 : i32, i32
  }
}

</mosaic_0001>

<bundles_post_ra>
// kernel: encoder_cnn_forward.6
= control target key start
LH: loop header
LB: loop body
LE: loop exit
PB: predicated region body
PF: predicated region fallthrough
CT: control target
= control target key end

     0   :  { %s939_s1 = inlined_call_operand.vmem [shape: bf16[256,128], index: 1, kind: input, shape index: {}]   ;;  %s940_s0 = inlined_call_operand.vmem [shape: bf16[128,256], index: 0, kind: input, shape index: {}]   ;;  %s941_s2 = inlined_call_operand.vmem [shape: f32[1,128], index: 2, kind: input, shape index: {}]   ;;  %s942_s3 = inlined_call_operand.vmem [shape: bf16[128,128], index: 3, kind: output, shape index: {}]  }
   0x1   :  { %v738_v0 = vld [vmem:[%s939_s1 + $0x40] sm:$0xff]   ;;  %v740_v2 = vld [vmem:[%s939_s1 + $0x48] sm:$0xff]   ;;  %v742_v4 = vld [vmem:[%s939_s1 + $0x50] sm:$0xff]  }
   0x2   :  { %v739_v1 = vld [vmem:[%s939_s1] sm:$0xff]   ;;  %658 = vmatprep.subr.bf16.mxu0 %v738_v0  ;;  %722 = vmatprep.subr.bf16.mxu1 %v738_v0  ;;  %v741_v3 = vld [vmem:[%s939_s1 + $0x8] sm:$0xff]   ;;  %v743_v5 = vld [vmem:[%s939_s1 + $0x10] sm:$0xff]  }
   0x3   :  { %659 = vmatpush3.bf16.msra.mxu0 %v739_v1  ;;  %730 = vmatpush3.bf16.msra.mxu1 %v739_v1  ;;  %v744_v6 = vld [vmem:[%s939_s1 + $0x58] sm:$0xff]   ;;  %v746_v8 = vld [vmem:[%s939_s1 + $0x60] sm:$0xff]   ;;  %v748_v10 = vld [vmem:[%s939_s1 + $0x68] sm:$0xff]  }
   0x4   :  { %660 = vmatprep.subr.bf16.mxu0 %v740_v2  ;;  %723 = vmatprep.subr.bf16.mxu1 %v740_v2  ;;  %v745_v7 = vld [vmem:[%s939_s1 + $0x18] sm:$0xff]   ;;  %v747_v9 = vld [vmem:[%s939_s1 + $0x20] sm:$0xff]   ;;  %v749_v13 = vld [vmem:[%s939_s1 + $0x28] sm:$0xff]  }
   0x5   :  { %v756_v11 = vld [vmem:[%s940_s0 + $0x4] ss:$8 sps:$4 sm:$0xff]   ;;  %v750_v14 = vld [vmem:[%s939_s1 + $0x70] sm:$0xff]   ;;  %v752_v16 = vld [vmem:[%s939_s1 + $0x78] sm:$0xff]  }
   0x6   :  { %v759_v12 = vld [vmem:[%s940_s0 + $0x44] ss:$8 sps:$4 sm:$0xff]   ;;  %307 = vmatprep.mubr.bf16.mxu0 %v756_v11  ;;  %v751_v15 = vld [vmem:[%s939_s1 + $0x30] sm:$0xff]   ;;  %v753_v17 = vld [vmem:[%s939_s1 + $0x38] sm:$0xff]  }
   0x7   :  { %661 = vmatpush3.bf16.msra.mxu0 %v741_v3  ;;  %731 = vmatpush3.bf16.msra.mxu1 %v741_v3  ;;  %v754_v18 = vld [vmem:[%s940_s0] ss:$8 sps:$4 sm:$0xff]   ;;  %v760_v20 = vld [vmem:[%s940_s0 + $0x14] ss:$8 sps:$4 sm:$0xff]   ;;  %v764_v22 = vld [vmem:[%s940_s0 + $0x10] ss:$8 sps:$4 sm:$0xff]  }
   0x8   :  { %662 = vmatprep.subr.bf16.mxu0 %v742_v4  ;;  %724 = vmatprep.subr.bf16.mxu1 %v742_v4  ;;  %v757_v19 = vld [vmem:[%s940_s0 + $0x40] ss:$8 sps:$4 sm:$0xff]   ;;  %v762_v21 = vld [vmem:[%s940_s0 + $0x54] ss:$8 sps:$4 sm:$0xff]   ;;  %v765_v23 = vld [vmem:[%s940_s0 + $0x50] ss:$8 sps:$4 sm:$0xff]  }
   0x9   :  { %339 = vmatprep.mubr.bf16.mxu1 %v759_v12  ;;  %v766_v24 = vld [vmem:[%s940_s0 + $0x24] ss:$8 sps:$4 sm:$0xff]   ;;  %v770_v26 = vld [vmem:[%s940_s0 + $0x20] ss:$8 sps:$4 sm:$0xff]   ;;  %v772_v28 = vld [vmem:[%s940_s0 + $0x34] ss:$8 sps:$4 sm:$0xff]  }
   0xa   :  { %v768_v25 = vld [vmem:[%s940_s0 + $0x64] ss:$8 sps:$4 sm:$0xff]   ;;  %v771_v27 = vld [vmem:[%s940_s0 + $0x60] ss:$8 sps:$4 sm:$0xff]   ;;  %v774_v29 = vld [vmem:[%s940_s0 + $0x74] ss:$8 sps:$4 sm:$0xff]  }
   0xb   :  { %663 = vmatpush3.bf16.msra.mxu0 %v743_v5  ;;  %732 = vmatpush3.bf16.msra.mxu1 %v743_v5  ;;  %v776_v30 = vld [vmem:[%s940_s0 + $0x30] ss:$8 sps:$4 sm:$0xff]   ;;  %v897_v35 = vld [vmem:[%s941_s2] ss:$0 sm:$0xff] }
   0xc   :  { %664 = vmatprep.subr.bf16.mxu0 %v744_v6  ;;  %725 = vmatprep.subr.bf16.mxu1 %v744_v6  ;;  %v777_v31 = vld [vmem:[%s940_s0 + $0x70] ss:$8 sps:$4 sm:$0xff]  }
   0xf   :  { %665 = vmatpush3.bf16.msra.mxu0 %v745_v7  ;;  %733 = vmatpush3.bf16.msra.mxu1 %v745_v7 }
  0x10   :  { %666 = vmatprep.subr.bf16.mxu0 %v746_v8  ;;  %726 = vmatprep.subr.bf16.mxu1 %v746_v8 }
  0x13   :  { %667 = vmatpush3.bf16.msra.mxu0 %v747_v9  ;;  %734 = vmatpush3.bf16.msra.mxu1 %v747_v9 }
  0x14   :  { %668 = vmatprep.subr.bf16.mxu0 %v748_v10  ;;  %727 = vmatprep.subr.bf16.mxu1 %v748_v10 }
  0x17   :  { %669 = vmatpush3.bf16.msra.mxu0 %v749_v13  ;;  %735 = vmatpush3.bf16.msra.mxu1 %v749_v13 }
  0x18   :  { %670 = vmatprep.subr.bf16.mxu0 %v750_v14  ;;  %728 = vmatprep.subr.bf16.mxu1 %v750_v14 }
  0x1b   :  { %671 = vmatpush3.bf16.msra.mxu0 %v751_v15  ;;  %736 = vmatpush3.bf16.msra.mxu1 %v751_v15 }
  0x1c   :  { %672 = vmatprep.subr.bf16.mxu0 %v752_v16  ;;  %729 = vmatprep.subr.bf16.mxu1 %v752_v16 }
  0x1f   :  { %673 = vmatpush3.bf16.msra.mxu0 %v753_v17  ;;  %737 = vmatpush3.bf16.msra.mxu1 %v753_v17 }
  0x22   :  { %308 = vmatmul.mubr.bf16.vlgmr.msra.gmra.mrb[0].mxu0 %v754_v18  ;;  %340 = vmatmul.mubr.bf16.vlgmr.msra.gmra.mrb[0].mxu1 %v757_v19 }
  0x23   :  { %315 = vmatprep.mubr.bf16.mxu0 %v760_v20  ;;  %347 = vmatprep.mubr.bf16.mxu1 %v762_v21 }
  0x2a   :  { %316 = vmatmul.mubr.bf16.gmra.mrb[4].mxu0 %v764_v22  ;;  %348 = vmatmul.mubr.bf16.gmra.mrb[4].mxu1 %v765_v23 }
  0x2b   :  { %323 = vmatprep.mubr.bf16.mxu0 %v766_v24  ;;  %355 = vmatprep.mubr.bf16.mxu1 %v768_v25 }
  0x32   :  { %324 = vmatmul.mubr.bf16.gmra.mrb[8].mxu0 %v770_v26  ;;  %356 = vmatmul.mubr.bf16.gmra.mrb[8].mxu1 %v771_v27 }
  0x33   :  { %331 = vmatprep.mubr.bf16.mxu0 %v772_v28  ;;  %363 = vmatprep.mubr.bf16.mxu1 %v774_v29 }
  0x3a   :  { %332 = vmatmul.mubr.bf16.gmra.mrb[12].mxu0 %v776_v30  ;;  %364 = vmatmul.mubr.bf16.gmra.mrb[12].mxu1 %v777_v31 }
  0xf5   :  { %v674_v32 = vpop.f32.mrb[0].mxu0  ;;  %v698_v33 = vpop.f32.mrb[0].mxu1 }
  0xf6   :  { %v675_v34 = vpop.f32.mrb[1].mxu0  ;;  %v699_v36 = vpop.f32.mrb[1].mxu1 }
  0xf7   :  { %v676_v37 = vadd.f32 %v675_v34, %v674_v32  ;;  %v700_v38 = vadd.f32 %v699_v36, %v698_v33  ;;  %v677_v39 = vpop.f32.mrb[2].mxu0  ;;  %v701_v40 = vpop.f32.mrb[2].mxu1 }
  0xf8   :  { %v678_v41 = vpop.f32.mrb[3].mxu0  ;;  %v702_v42 = vpop.f32.mrb[3].mxu1 }
  0xf9   :  { %v430_v43 = vadd.f32 %v676_v37, %v897_v35  ;;  %v438_v44 = vadd.f32 %v700_v38, %v897_v35  ;;  %v679_v45 = vadd.f32 %v678_v41, %v677_v39  ;;  %v703_v46 = vadd.f32 %v702_v42, %v701_v40 }
  0xfb   :  { %v431_v47 = vadd.f32 %v679_v45, %v897_v35  ;;  %v439_v48 = vadd.f32 %v703_v46, %v897_v35  ;;  %v446_v49 = vmax.f32 %v430_v43, 0.0  ;;  %v454_v50 = vmax.f32 %v438_v44, 0.0 }
  0xfd   :  { %v447_v51 = vmax.f32 %v431_v47, 0.0  ;;  %v455_v52 = vmax.f32 %v439_v48, 0.0  ;;  %v680_v53 = vpop.f32.mrb[4].mxu0  ;;  %v704_v54 = vpop.f32.mrb[4].mxu1 }
  0xfe   :  { %v681_v55 = vpop.f32.mrb[5].mxu0  ;;  %v705_v56 = vpop.f32.mrb[5].mxu1 }
  0xff   :  { %v614_v57 = vpack.c.bf16 %v447_v51, %v446_v49  ;;  %v634_v58 = vpack.c.bf16 %v455_v52, %v454_v50  ;;  %v682_v59 = vadd.f32 %v681_v55, %v680_v53  ;;  %v706_v60 = vadd.f32 %v705_v56, %v704_v54  ;;  %v683_v61 = vpop.f32.mrb[6].mxu0  ;;  %v707_v62 = vpop.f32.mrb[6].mxu1 }
 0x100   :  { %v684_v63 = vpop.f32.mrb[7].mxu0  ;;  %v708_v0 = vpop.f32.mrb[7].mxu1 }
 0x101   :  { %615 = vst [vmem:[%s942_s3] sm:$0xff] %v614_v57   ;;  %654 = vst [vmem:[%s942_s3 + $0x20] sm:$0xff] %v634_v58   ;;  %v432_v1 = vadd.f32 %v682_v59, %v897_v35  ;;  %v440_v2 = vadd.f32 %v706_v60, %v897_v35  ;;  %v685_v3 = vadd.f32 %v684_v63, %v683_v61 }
 0x102   :  { %v709_v4 = vadd.f32 %v708_v0, %v707_v62 }
 0x103   :  { %v433_v5 = vadd.f32 %v685_v3, %v897_v35  ;;  %v448_v7 = vmax.f32 %v432_v1, 0.0  ;;  %v456_v8 = vmax.f32 %v440_v2, 0.0 }
 0x104   :  { %v441_v6 = vadd.f32 %v709_v4, %v897_v35 }
 0x105   :  { %v449_v9 = vmax.f32 %v433_v5, 0.0  ;;  %v686_v11 = vpop.f32.mrb[8].mxu0  ;;  %v710_v12 = vpop.f32.mrb[8].mxu1 }
 0x106   :  { %v457_v10 = vmax.f32 %v441_v6, 0.0  ;;  %v687_v13 = vpop.f32.mrb[9].mxu0  ;;  %v711_v14 = vpop.f32.mrb[9].mxu1 }
 0x107   :  { %v619_v15 = vpack.c.bf16 %v449_v9, %v448_v7  ;;  %v688_v17 = vadd.f32 %v687_v13, %v686_v11  ;;  %v712_v18 = vadd.f32 %v711_v14, %v710_v12  ;;  %v689_v19 = vpop.f32.mrb[10].mxu0  ;;  %v713_v20 = vpop.f32.mrb[10].mxu1 }
 0x108   :  { %v639_v16 = vpack.c.bf16 %v457_v10, %v456_v8  ;;  %v690_v21 = vpop.f32.mrb[11].mxu0  ;;  %v714_v22 = vpop.f32.mrb[11].mxu1 }
 0x109   :  { %651 = vst [vmem:[%s942_s3 + $0x8] sm:$0xff] %v619_v15   ;;  %v434_v23 = vadd.f32 %v688_v17, %v897_v35  ;;  %v442_v24 = vadd.f32 %v712_v18, %v897_v35  ;;  %v691_v25 = vadd.f32 %v690_v21, %v689_v19  ;;  %v715_v26 = vadd.f32 %v714_v22, %v713_v20 }
 0x10a   :  { %655 = vst [vmem:[%s942_s3 + $0x28] sm:$0xff] %v639_v16  }
 0x10b   :  { %v435_v27 = vadd.f32 %v691_v25, %v897_v35  ;;  %v443_v28 = vadd.f32 %v715_v26, %v897_v35  ;;  %v450_v29 = vmax.f32 %v434_v23, 0.0  ;;  %v458_v30 = vmax.f32 %v442_v24, 0.0 }
 0x10d   :  { %v451_v31 = vmax.f32 %v435_v27, 0.0  ;;  %v459_v32 = vmax.f32 %v443_v28, 0.0  ;;  %v692_v33 = vpop.f32.mrb[12].mxu0  ;;  %v716_v34 = vpop.f32.mrb[12].mxu1 }
 0x10e   :  { %v693_v36 = vpop.f32.mrb[13].mxu0  ;;  %v717_v37 = vpop.f32.mrb[13].mxu1 }
 0x10f   :  { %v624_v38 = vpack.c.bf16 %v451_v31, %v450_v29  ;;  %v644_v39 = vpack.c.bf16 %v459_v32, %v458_v30  ;;  %v694_v40 = vadd.f32 %v693_v36, %v692_v33  ;;  %v718_v41 = vadd.f32 %v717_v37, %v716_v34  ;;  %v695_v42 = vpop.f32.mrb[14].mxu0  ;;  %v719_v43 = vpop.f32.mrb[14].mxu1 }
 0x110   :  { %v696_v44 = vpop.f32.mrb[15].mxu0  ;;  %v720_v45 = vpop.f32.mrb[15].mxu1 }
 0x111   :  { %652 = vst [vmem:[%s942_s3 + $0x10] sm:$0xff] %v624_v38   ;;  %656 = vst [vmem:[%s942_s3 + $0x30] sm:$0xff] %v644_v39   ;;  %v436_v46 = vadd.f32 %v694_v40, %v897_v35  ;;  %v444_v47 = vadd.f32 %v718_v41, %v897_v35  ;;  %v697_v48 = vadd.f32 %v696_v44, %v695_v42 }
 0x112   :  { %v721_v49 = vadd.f32 %v720_v45, %v719_v43 }
 0x113   :  { %v437_v50 = vadd.f32 %v697_v48, %v897_v35  ;;  %v452_v52 = vmax.f32 %v436_v46, 0.0  ;;  %v460_v53 = vmax.f32 %v444_v47, 0.0 }
 0x114   :  { %v445_v51 = vadd.f32 %v721_v49, %v897_v35 }
 0x115   :  { %v453_v54 = vmax.f32 %v437_v50, 0.0 }
 0x116   :  { %v461_v55 = vmax.f32 %v445_v51, 0.0 }
 0x117   :  { %v629_v56 = vpack.c.bf16 %v453_v54, %v452_v52 }
 0x118   :  { %v649_v57 = vpack.c.bf16 %v461_v55, %v460_v53 }
 0x119   :  { %653 = vst [vmem:[%s942_s3 + $0x18] sm:$0xff] %v629_v56  }
 0x11a   :  { %657 = vst [vmem:[%s942_s3 + $0x38] sm:$0xff] %v649_v57  }

// kernel: encoder_cnn_forward.7
= control target key start
LH: loop header
LB: loop body
LE: loop exit
PB: predicated region body
PF: predicated region fallthrough
CT: control target
= control target key end

     0   :  { %s1080_s6 = smov 0   ;;  %s1082_s7 = smov 0   ;;  %s1515_s0 = inlined_call_operand.vmem [shape: bf16[2,10,10,128], index: 0, kind: input, shape index: {}]   ;;  %s1516_s1 = inlined_call_operand.vmem [shape: bf16[2,8,8,128], index: 1, kind: output, shape index: {}]  }
   0x1   :  { %s1084_s8 = smov 0  }
   0x2 LB: > { %s23_s9 = sadd.s32 1, %s1064_s7  ;;  %p915_p0 = scmp.ge.s32.totalorder %s1068_s8, 1  ;;  %s1068_s8 = sphi %s1084_s8, %s11_s8   ;;  %s1064_s7 = sphi %s1082_s7, %s1522_s7   ;;  %s1060_s6 = sphi %s1080_s6, %s1521_s6  }
   0x3   : > { %p25_p1 = scmp.ge.s32.totalorder %s23_s9, 2  ;;  %p106_p2 = scmp.lt.s32.totalorder %s1068_s8, 3 }
   0x5   : > { %s1524_s9 = smov (%p25_p1, %s23_s9), 0  ;;  %p107_p3 = pnand %p915_p0, %p106_p2 }
   0x6   : > { %p132_p4 = scmp.lt.s32.totalorder (!%p107_p3), %s1060_s6, 1  ;;  %vm164_vm0 = vsmask.f32 (!%p107_p3), 3328  ;;  %vm165_vm1 = vsmask.f32 (!%p107_p3), 7440  ;;  %vm319_vm3 = vcmask (!%p107_p3), 1042432  }
   0x7   : > { %110 = sbr.rel (%p107_p3) target bundleno = 113 (0x71), region = 24  ;;  %vm1153_vm2 = vmor (!%p107_p3), %vm164_vm0, %vm165_vm1  ;;  %vm320_vm4 = vcmask (!%p107_p3), 1046532  }
   0x8   : > { %vm1209_vm5 = vmor (!%p107_p3), %vm319_vm3, %vm320_vm4 }
   0xe   : > { %s1526_s6 = smov (!%p132_p4, %s1060_s6), 1 }
   0xf   : > { %s1021_s10 = smul.u32 80, %s1526_s6  ;;  %s993_s14 = sshll.u32 %s1526_s6, 5 }
  0x10   : > { %s147_s17 = scalar_lea.vmem %s1516_s1, %s993_s14 }
  0x11   : > { %s1104_s13 = scalar_lea.vmem %s1515_s0, %s1021_s10 }
  0x12   : > { %v1107_v0 = vld [vmem:[%s1104_s13] sm:$0xf]  ;;  %v1110_v1 = vld [vmem:[%s1104_s13 + $0x8] sm:$0xf]  ;;  %v1113_v2 = vld [vmem:[%s1104_s13 + $0x4] sm:$0x1] }
  0x13   : > { %v1116_v3 = vld [vmem:[%s1104_s13 + $0x10] sm:$0xf]  ;;  %v1119_v4 = vld [vmem:[%s1104_s13 + $0xc] sm:$0x1]  ;;  %v1122_v5 = vld [vmem:[%s1104_s13 + $0x18] sm:$0xf] }
  0x14   : > { %v1125_v6 = vld [vmem:[%s1104_s13 + $0x20] sm:$0xf]  ;;  %v168_v7 = vshrl.u32 %v1107_v0, 16  ;;  %v171_v8 = vshll.u32 %v1107_v0, 16  ;;  %v177_v9 = vshll.u32 %v1113_v2, 16  ;;  %v182_v10 = vshrl.u32 %v1110_v1, 16 }
  0x15   : > { %v1132_v11 = vld [vmem:[%s1104_s13 + $0x14] sm:$0x1]  ;;  %v185_v12 = vshll.u32 %v1110_v1, 16  ;;  %v191_v13 = vshll.u32 %v1119_v4, 16  ;;  %v196_v14 = vshrl.u32 %v1116_v3, 16  ;;  %v199_v15 = vshll.u32 %v1116_v3, 16 }
  0x16   : > { %v1139_v16 = vld [vmem:[%s1104_s13 + $0x1c] sm:$0x1]  ;;  %v170_v17 = vrot.slane %v168_v7, 4  ;;  %v173_v18 = vrot.slane %v171_v8, 5  ;;  %v1141_v19 = vrot.slane %v177_v9, 5  ;;  %v184_v20 = vrot.slane %v182_v10, 4 }
  0x17   : > { %v187_v21 = vrot.slane %v185_v12, 5  ;;  %v1143_v22 = vrot.slane %v191_v13, 5  ;;  %v198_v23 = vrot.slane %v196_v14, 4  ;;  %v201_v24 = vrot.slane %v199_v15, 5  ;;  %v1149_v29 = vld [vmem:[%s1104_s13 + $0x24] sm:$0x1] }
  0x18   : > { %v174_v25 = vor.u32 %v173_v18, %v170_v17  ;;  %v205_v26 = vshll.u32 %v1132_v11, 16  ;;  %v210_v27 = vshrl.u32 %v1122_v5, 16  ;;  %v213_v28 = vshll.u32 %v1122_v5, 16  ;;  %v153_v35 = vld [vmem:[%s1104_s13 + $0x28] sm:$0xf] }
  0x19   : > { %v188_v31 = vor.u32 %v187_v21, %v184_v20  ;;  %v202_v32 = vor.u32 %v201_v24, %v198_v23  ;;  %v219_v33 = vshll.u32 %v1139_v16, 16  ;;  %v224_v34 = vshrl.u32 %v1125_v6, 16  ;;  %v1161_v40 = vld [vmem:[%s1104_s13 + $0x2c] sm:$0x1]  ;;  %v154_v45 = vld [vmem:[%s1104_s13 + $0x30] sm:$0xf] }
  0x1a   : > { %v175_v36 = vrot.slane %v174_v25, 4  ;;  %v207_v37 = vrot.slane %v205_v26, 5  ;;  %v212_v38 = vrot.slane %v210_v27, 4  ;;  %v215_v39 = vrot.slane %v213_v28, 5  ;;  %v1170_v50 = vld [vmem:[%s1104_s13 + $0x34] sm:$0x1] }
  0x1b   : > { %v189_v41 = vrot.slane %v188_v31, 4  ;;  %v203_v42 = vrot.slane %v202_v32, 4  ;;  %v221_v43 = vrot.slane %v219_v33, 5  ;;  %v226_v44 = vrot.slane %v224_v34, 4  ;;  %v1178_v55 = vld [vmem:[%s1104_s13 + $0x38] sm:$0xf] }
  0x1c   : > { %v180_v46 = vsel %vm1153_vm2, %v175_v36, %v1141_v19  ;;  %v216_v47 = vor.u32 %v215_v39, %v212_v38  ;;  %v227_v48 = vshll.u32 %v1125_v6, 16  ;;  %v233_v49 = vshll.u32 %v1149_v29, 16  ;;  %v1182_v60 = vld [vmem:[%s1104_s13 + $0x3c] sm:$0x1]  ;;  %v295_v26 = vld [vmem:[%s1104_s13] sm:$0xe] }
  0x1d   : > { %v194_v51 = vsel %vm1153_vm2, %v189_v41, %v1143_v22  ;;  %v208_v52 = vsel %vm1153_vm2, %v203_v42, %v207_v37  ;;  %v238_v53 = vshrl.u32 %v153_v35, 16  ;;  %v241_v54 = vshll.u32 %v153_v35, 16  ;;  %v296_v33 = vld [vmem:[%s1104_s13 + $0x8] sm:$0xe]  ;;  %v297_v38 = vld [vmem:[%s1104_s13 + $0x10] sm:$0xe] }
  0x1e   : > { %v217_v56 = vrot.slane %v216_v47, 4  ;;  %v229_v57 = vrot.slane %v227_v48, 5  ;;  %v235_v58 = vrot.slane %v233_v49, 5  ;;  %v247_v59 = vshll.u32 %v1161_v40, 16 }
  0x1f   : > { %v240_v61 = vrot.slane %v238_v53, 4  ;;  %v243_v62 = vrot.slane %v241_v54, 5  ;;  %v252_v63 = vshrl.u32 %v154_v45, 16  ;;  %v255_v7 = vshll.u32 %v154_v45, 16  ;;  %v301_v53 = vld [vmem:[%s1104_s13 + $0x30] sm:$0xe] }
  0x20   : > { %v222_v8 = vsel %vm1153_vm2, %v217_v56, %v221_v43  ;;  %v230_v9 = vor.u32 %v229_v57, %v226_v44  ;;  %v249_v10 = vrot.slane %v247_v59, 5  ;;  %v261_v12 = vshll.u32 %v1170_v50, 16  ;;  %v298_v43 = vld [vmem:[%s1104_s13 + $0x18] sm:$0xe] }
  0x21   : > { %v244_v13 = vor.u32 %v243_v62, %v240_v61  ;;  %v254_v14 = vrot.slane %v252_v63, 4  ;;  %v257_v15 = vrot.slane %v255_v7, 5  ;;  %v266_v17 = vshrl.u32 %v1178_v55, 16  ;;  %v302_v54 = vld [vmem:[%s1104_s13 + $0x38] sm:$0xe] }
  0x22   : > { %v231_v18 = vrot.slane %v230_v9, 4  ;;  %v263_v19 = vrot.slane %v261_v12, 5  ;;  %v269_v20 = vshll.u32 %v1178_v55, 16  ;;  %v275_v21 = vshll.u32 %v1182_v60, 16 }
  0x23   : > { %v245_v22 = vrot.slane %v244_v13, 4  ;;  %v258_v23 = vor.u32 %v257_v15, %v254_v14  ;;  %v268_v24 = vrot.slane %v266_v17, 4  ;;  %v1191_v25 = vmax.bf16 %v180_v46, %v1107_v0  ;;  %v299_v46 = vld [vmem:[%s1104_s13 + $0x20] sm:$0xe]  ;;  %v927_v17 = vld [vmem:[%s1104_s13 + $0x8] sm:$0xf] }
  0x24   : > { %v236_v27 = vsel %vm1153_vm2, %v231_v18, %v235_v58  ;;  %v271_v28 = vrot.slane %v269_v20, 5  ;;  %v277_v31 = vrot.slane %v275_v21, 5  ;;  %v1197_v32 = vmax.bf16 %v194_v51, %v1110_v1  ;;  %v928_v18 = vld [vmem:[%s1104_s13 + $0x10] sm:$0xf] }
  0x25   : > { %v250_v34 = vsel %vm1153_vm2, %v245_v22, %v249_v10  ;;  %v259_v36 = vrot.slane %v258_v23, 4  ;;  %v289_v37 = vmax.bf16 %v208_v52, %v1116_v3  ;;  %v290_v0 = vmax.bf16 %v222_v8, %v1122_v5  ;;  %v930_v22 = vld [vmem:[%s1104_s13 + $0x20] sm:$0xf]  ;;  %v931_v23 = vld [vmem:[%s1104_s13 + $0x28] sm:$0xf] }
  0x26   : > { %v272_v39 = vor.u32 %v271_v28, %v268_v24  ;;  %v291_v41 = vmax.bf16 %v236_v27, %v1125_v6  ;;  %v292_v42 = vmax.bf16 %v250_v34, %v153_v35  ;;  %v919_v44 = vrot.slane %v295_v26, 9  ;;  %v300_v35 = vld [vmem:[%s1104_s13 + $0x28] sm:$0xe]  ;;  %v1259_v27 = vld [vmem:[%s1104_s13 + $0x30] sm:$0xf] }
  0x27   : > { %v264_v3 = vsel %vm1153_vm2, %v259_v36, %v263_v19  ;;  %v324_v5 = vrot.slane %v1113_v2, 5  ;;  %v920_v47 = vrot.slane %v296_v33, 9  ;;  %v328_v48 = vrot.slane %v1119_v4, 5  ;;  %v929_v19 = vld [vmem:[%s1104_s13 + $0x18] sm:$0xf] }
  0x28   : > { %v273_v6 = vrot.slane %v272_v39, 4  ;;  %v293_v49 = vmax.bf16 %v264_v3, %v154_v45  ;;  %v921_v51 = vrot.slane %v297_v38, 9  ;;  %v332_v52 = vrot.slane %v1132_v11, 5  ;;  %v1262_v28 = vld [vmem:[%s1104_s13 + $0x38] sm:$0xf] }
  0x29   : > { %v325_v56 = vsel %vm1209_vm5, %v919_v44, %v324_v5  ;;  %v329_v57 = vsel %vm1209_vm5, %v920_v47, %v328_v48  ;;  %v922_v58 = vrot.slane %v298_v43, 9  ;;  %v336_v2 = vrot.slane %v1139_v16, 5  ;;  %v1271_v34 = vld [vmem:[%s1104_s13 + $0x14] sm:$0x1]  ;;  %v1274_v36 = vld [vmem:[%s1104_s13 + $0x40] sm:$0xf] }
  0x2a   : > { %v278_v4 = vsel %vm1153_vm2, %v273_v6, %v277_v31  ;;  %v333_v45 = vsel %vm1209_vm5, %v921_v51, %v332_v52  ;;  %v923_v59 = vrot.slane %v299_v46, 9  ;;  %v340_v11 = vrot.slane %v1149_v29, 5  ;;  %v1293_v6 = vld [vmem:[%s1104_s13 + $0x24] sm:$0x1] }
  0x2b   : > { %v294_v61 = vmax.bf16 %v278_v4, %v1178_v55  ;;  %v337_v62 = vsel %vm1209_vm5, %v922_v58, %v336_v2  ;;  %v924_v63 = vrot.slane %v300_v35, 9  ;;  %v344_v16 = vrot.slane %v1161_v40, 5 }
  0x2c   : > { %v341_v7 = vsel %vm1209_vm5, %v923_v59, %v340_v11  ;;  %v925_v8 = vrot.slane %v301_v53, 9  ;;  %v348_v9 = vrot.slane %v1170_v50, 5  ;;  %v926_v10 = vrot.slane %v302_v54, 9  ;;  %v1297_v59 = vld [vmem:[%s1104_s13 + $0x2c] sm:$0x1] }
  0x2d   : > { %v345_v29 = vsel %vm1209_vm5, %v924_v63, %v344_v16  ;;  %v352_v55 = vrot.slane %v1182_v60, 5  ;;  %v362_v12 = vmax.bf16 %v325_v56, %v1191_v25  ;;  %v363_v13 = vmax.bf16 %v329_v57, %v1197_v32  ;;  %v1256_v25 = vld [vmem:[%s1104_s13 + $0xc] sm:$0x1] }
  0x2e   : > { %v349_v40 = vsel %vm1209_vm5, %v925_v8, %v348_v9  ;;  %v364_v14 = vmax.bf16 %v333_v45, %v289_v37  ;;  %v365_v50 = vmax.bf16 %v337_v62, %v290_v0  ;;  %v366_v15 = vmax.bf16 %v341_v7, %v291_v41 }
  0x2f   : > { %v353_v60 = vsel %vm1209_vm5, %v926_v10, %v352_v55  ;;  %v367_v20 = vmax.bf16 %v345_v29, %v292_v42  ;;  %v368_v21 = vmax.bf16 %v349_v40, %v293_v49  ;;  %v1253_v24 = vmax.bf16 %v927_v17, %v362_v12  ;;  %v1288_v42 = vld [vmem:[%s1104_s13 + $0x1c] sm:$0x1]  ;;  %v1301_v10 = vld [vmem:[%s1104_s13 + $0x34] sm:$0x1] }
  0x30   : > { %v369_v26 = vmax.bf16 %v353_v60, %v294_v61  ;;  %v1264_v31 = vmax.bf16 %v928_v18, %v363_v13  ;;  %v1266_v32 = vmax.bf16 %v929_v19, %v364_v14  ;;  %v1268_v33 = vmax.bf16 %v930_v22, %v365_v50 }
  0x31   : > { %v1276_v37 = vmax.bf16 %v931_v23, %v366_v15  ;;  %v1279_v0 = vmax.bf16 %v1259_v27, %v367_v20  ;;  %v1282_v38 = vmax.bf16 %v1262_v28, %v368_v21  ;;  %v396_v39 = vshrl.u32 %v927_v17, 16 }
  0x32   : > { %v1285_v41 = vmax.bf16 %v1274_v36, %v369_v26  ;;  %v399_v43 = vshll.u32 %v927_v17, 16  ;;  %v405_v44 = vshll.u32 %v1256_v25, 16  ;;  %v410_v3 = vshrl.u32 %v928_v18, 16  ;;  %v1307_v17 = vld [vmem:[%s1104_s13 + $0x3c] sm:$0x1] }
  0x33   : > { %v398_v46 = vrot.slane %v396_v39, 4  ;;  %v413_v5 = vshll.u32 %v928_v18, 16  ;;  %v419_v47 = vshll.u32 %v1271_v34, 16  ;;  %v424_v48 = vshrl.u32 %v929_v19, 16  ;;  %v1317_v39 = vld [vmem:[%s1104_s13 + $0x44] sm:$0x1] }
  0x34   : > { %v401_v49 = vrot.slane %v399_v43, 5  ;;  %v407_v35 = vrot.slane %v405_v44, 5  ;;  %v412_v51 = vrot.slane %v410_v3, 4  ;;  %v427_v52 = vshll.u32 %v929_v19, 16 }
  0x35   : > { %v415_v53 = vrot.slane %v413_v5, 5  ;;  %v421_v54 = vrot.slane %v419_v47, 5  ;;  %v426_v56 = vrot.slane %v424_v48, 4  ;;  %v433_v57 = vshll.u32 %v1288_v42, 16 }
  0x36   : > { %v402_v58 = vor.u32 %v401_v49, %v398_v46  ;;  %v429_v2 = vrot.slane %v427_v52, 5  ;;  %v438_v4 = vshrl.u32 %v930_v22, 16  ;;  %v441_v45 = vshll.u32 %v930_v22, 16 }
  0x37   : > { %v416_v11 = vor.u32 %v415_v53, %v412_v51  ;;  %v435_v61 = vrot.slane %v433_v57, 5  ;;  %v447_v62 = vshll.u32 %v1293_v6, 16  ;;  %v452_v63 = vshrl.u32 %v931_v23, 16 }
  0x38   : > { %v403_v16 = vrot.slane %v402_v58, 4  ;;  %v430_v7 = vor.u32 %v429_v2, %v426_v56  ;;  %v440_v8 = vrot.slane %v438_v4, 4  ;;  %v443_v9 = vrot.slane %v441_v45, 5  ;;  %v943_v45 = vld [vmem:[%s1104_s13 + $0x8] sm:$0xe] }
  0x39   : > { %v417_v29 = vrot.slane %v416_v11, 4  ;;  %v449_v55 = vrot.slane %v447_v62, 5  ;;  %v454_v12 = vrot.slane %v452_v63, 4  ;;  %v455_v13 = vshll.u32 %v931_v23, 16 }
  0x3a   : > { %v408_v40 = vsel %vm1153_vm2, %v403_v16, %v407_v35  ;;  %v431_v14 = vrot.slane %v430_v7, 4  ;;  %v444_v50 = vor.u32 %v443_v9, %v440_v8  ;;  %v461_v15 = vshll.u32 %v1297_v59, 16  ;;  %v944_v16 = vld [vmem:[%s1104_s13 + $0x10] sm:$0xe]  ;;  %v945_v7 = vld [vmem:[%s1104_s13 + $0x18] sm:$0xe] }
  0x3b   : > { %v422_v18 = vsel %vm1153_vm2, %v417_v29, %v421_v54  ;;  %v457_v19 = vrot.slane %v455_v13, 5  ;;  %v466_v60 = vshrl.u32 %v1259_v27, 16  ;;  %v469_v20 = vshll.u32 %v1259_v27, 16 }
  0x3c   : > { %v436_v21 = vsel %vm1153_vm2, %v431_v14, %v435_v61  ;;  %v445_v22 = vrot.slane %v444_v50, 4  ;;  %v463_v23 = vrot.slane %v461_v15, 5  ;;  %v475_v26 = vshll.u32 %v1301_v10, 16 }
  0x3d   : > { %v458_v43 = vor.u32 %v457_v19, %v454_v12  ;;  %v468_v44 = vrot.slane %v466_v60, 4  ;;  %v471_v3 = vrot.slane %v469_v20, 5  ;;  %v480_v46 = vshrl.u32 %v1262_v28, 16 }
  0x3e   : > { %v450_v5 = vsel %vm1153_vm2, %v445_v22, %v449_v55  ;;  %v477_v47 = vrot.slane %v475_v26, 5  ;;  %v483_v27 = vshll.u32 %v1262_v28, 16  ;;  %v489_v48 = vshll.u32 %v1307_v17, 16 }
  0x3f   : > { %v459_v49 = vrot.slane %v458_v43, 4  ;;  %v472_v35 = vor.u32 %v471_v3, %v468_v44  ;;  %v482_v51 = vrot.slane %v480_v46, 4  ;;  %v494_v52 = vshrl.u32 %v1274_v36, 16 }
  0x40   : > { %v485_v53 = vrot.slane %v483_v27, 5  ;;  %v491_v54 = vrot.slane %v489_v48, 5  ;;  %v497_v56 = vshll.u32 %v1274_v36, 16  ;;  %v503_v57 = vshll.u32 %v1317_v39, 16 }
  0x41   : > { %v464_v58 = vsel %vm1153_vm2, %v459_v49, %v463_v23  ;;  %v473_v28 = vrot.slane %v472_v35, 4  ;;  %v496_v2 = vrot.slane %v494_v52, 4  ;;  %v515_v4 = vmax.bf16 %v408_v40, %v1253_v24  ;;  %v946_v24 = vld [vmem:[%s1104_s13 + $0x20] sm:$0xe]  ;;  %v947_v40 = vld [vmem:[%s1104_s13 + $0x28] sm:$0xe] }
  0x42   : > { %v486_v11 = vor.u32 %v485_v53, %v482_v51  ;;  %v499_v61 = vrot.slane %v497_v56, 5  ;;  %v505_v62 = vrot.slane %v503_v57, 5  ;;  %v516_v63 = vmax.bf16 %v422_v18, %v1264_v31  ;;  %v960_v53 = vld [vmem:[%s1104_s13 + $0x18] sm:$0xf] }
  0x43   : > { %v478_v36 = vsel %vm1153_vm2, %v473_v28, %v477_v47  ;;  %v517_v8 = vmax.bf16 %v436_v21, %v1266_v32  ;;  %v518_v9 = vmax.bf16 %v450_v5, %v1268_v33  ;;  %v519_v29 = vmax.bf16 %v464_v58, %v1276_v37  ;;  %v948_v37 = vld [vmem:[%s1104_s13 + $0x30] sm:$0xe]  ;;  %v949_v21 = vld [vmem:[%s1104_s13 + $0x38] sm:$0xe]  ;;  %v962_v58 = vld [vmem:[%s1104_s13 + $0x28] sm:$0xf] }
  0x44   : > { %v487_v55 = vrot.slane %v486_v11, 4  ;;  %v500_v12 = vor.u32 %v499_v61, %v496_v2  ;;  %v520_v13 = vmax.bf16 %v478_v36, %v1279_v0  ;;  %v951_v31 = vrot.slane %v943_v45, 9  ;;  %v950_v0 = vld [vmem:[%s1104_s13 + $0x40] sm:$0xe]  ;;  %v963_v28 = vld [vmem:[%s1104_s13 + $0x30] sm:$0xf] }
  0x45   : > { %v549_v14 = vrot.slane %v1256_v25, 5  ;;  %v952_v50 = vrot.slane %v944_v16, 9  ;;  %v553_v15 = vrot.slane %v1271_v34, 5  ;;  %v953_v18 = vrot.slane %v945_v7, 9  ;;  %v1386_v11 = vld [vmem:[%s1104_s13 + $0x38] sm:$0xf] }
  0x46   : > { %v492_v32 = vsel %vm1153_vm2, %v487_v55, %v491_v54  ;;  %v501_v33 = vrot.slane %v500_v12, 4  ;;  %v557_v19 = vrot.slane %v1288_v42, 5  ;;  %v954_v60 = vrot.slane %v946_v24, 9  ;;  %v961_v54 = vld [vmem:[%s1104_s13 + $0x20] sm:$0xf] }
  0x47   : > { %v521_v20 = vmax.bf16 %v492_v32, %v1282_v38  ;;  %v550_v22 = vsel %vm1209_vm5, %v951_v31, %v549_v14  ;;  %v554_v25 = vsel %vm1209_vm5, %v952_v50, %v553_v15  ;;  %v561_v34 = vrot.slane %v1293_v6, 5  ;;  %v1389_v61 = vld [vmem:[%s1104_s13 + $0x40] sm:$0xf]  ;;  %v1398_v7 = vld [vmem:[%s1104_s13 + $0x1c] sm:$0x1] }
  0x48   : > { %v506_v23 = vsel %vm1153_vm2, %v501_v33, %v505_v62  ;;  %v558_v26 = vsel %vm1209_vm5, %v953_v18, %v557_v19  ;;  %v955_v42 = vrot.slane %v947_v40, 9  ;;  %v565_v43 = vrot.slane %v1297_v59, 5  ;;  %v1401_v36 = vld [vmem:[%s1104_s13 + $0x48] sm:$0xf]  ;;  %v1415_v12 = vld [vmem:[%s1104_s13 + $0x24] sm:$0x1] }
  0x49   : > { %v522_v38 = vmax.bf16 %v506_v23, %v1285_v41  ;;  %v562_v44 = vsel %vm1209_vm5, %v954_v60, %v561_v34  ;;  %v956_v3 = vrot.slane %v948_v37, 9  ;;  %v569_v6 = vrot.slane %v1301_v10, 5  ;;  %v1420_v32 = vld [vmem:[%s1104_s13 + $0x2c] sm:$0x1] }
  0x4a   : > { %v566_v46 = vsel %vm1209_vm5, %v955_v42, %v565_v43  ;;  %v957_v5 = vrot.slane %v949_v21, 9  ;;  %v573_v47 = vrot.slane %v1307_v17, 5  ;;  %v958_v27 = vrot.slane %v950_v0, 9  ;;  %v959_v17 = vld [vmem:[%s1104_s13 + $0x10] sm:$0xf] }
  0x4b   : > { %v570_v41 = vsel %vm1209_vm5, %v956_v3, %v569_v6  ;;  %v577_v59 = vrot.slane %v1317_v39, 5  ;;  %v587_v48 = vmax.bf16 %v550_v22, %v515_v4  ;;  %v588_v49 = vmax.bf16 %v554_v25, %v516_v63  ;;  %v1383_v4 = vld [vmem:[%s1104_s13 + $0x14] sm:$0x1] }
  0x4c   : > { %v574_v10 = vsel %vm1209_vm5, %v957_v5, %v573_v47  ;;  %v589_v35 = vmax.bf16 %v558_v26, %v517_v8  ;;  %v590_v51 = vmax.bf16 %v562_v44, %v518_v9  ;;  %v591_v52 = vmax.bf16 %v566_v46, %v519_v29  ;;  %v1424_v42 = vld [vmem:[%s1104_s13 + $0x34] sm:$0x1] }
  0x4d   : > { %v578_v56 = vsel %vm1209_vm5, %v958_v27, %v577_v59  ;;  %v592_v39 = vmax.bf16 %v570_v41, %v520_v13  ;;  %v593_v57 = vmax.bf16 %v574_v10, %v521_v20  ;;  %v1380_v2 = vmax.bf16 %v959_v17, %v587_v48  ;;  %v1428_v27 = vld [vmem:[%s1104_s13 + $0x3c] sm:$0x1] }
  0x4e   : > { %v594_v45 = vmax.bf16 %v578_v56, %v522_v38  ;;  %v1391_v62 = vmax.bf16 %v960_v53, %v588_v49  ;;  %v1393_v63 = vmax.bf16 %v961_v54, %v589_v35  ;;  %v1395_v16 = vmax.bf16 %v962_v58, %v590_v51 }
  0x4f   : > { %v1403_v8 = vmax.bf16 %v963_v28, %v591_v52  ;;  %v1406_v9 = vmax.bf16 %v1386_v11, %v592_v39  ;;  %v1409_v29 = vmax.bf16 %v1389_v61, %v593_v57  ;;  %v621_v24 = vshrl.u32 %v959_v17, 16 }
  0x50   : > { %v1412_v55 = vmax.bf16 %v1401_v36, %v594_v45  ;;  %v624_v13 = vshll.u32 %v959_v17, 16  ;;  %v630_v31 = vshll.u32 %v1383_v4, 16  ;;  %v635_v40 = vshrl.u32 %v960_v53, 16  ;;  %v1434_v17 = vld [vmem:[%s1104_s13 + $0x44] sm:$0x1] }
  0x51   : > { %v623_v14 = vrot.slane %v621_v24, 4  ;;  %v638_v50 = vshll.u32 %v960_v53, 16  ;;  %v644_v15 = vshll.u32 %v1398_v7, 16  ;;  %v649_v18 = vshrl.u32 %v961_v54, 16  ;;  %v1444_v24 = vld [vmem:[%s1104_s13 + $0x4c] sm:$0x1] }
  0x52   : > { %v626_v33 = vrot.slane %v624_v13, 5  ;;  %v632_v37 = vrot.slane %v630_v31, 5  ;;  %v637_v19 = vrot.slane %v635_v40, 4  ;;  %v652_v60 = vshll.u32 %v961_v54, 16 }
  0x53   : > { %v640_v20 = vrot.slane %v638_v50, 5  ;;  %v646_v21 = vrot.slane %v644_v15, 5  ;;  %v651_v0 = vrot.slane %v649_v18, 4  ;;  %v658_v22 = vshll.u32 %v1415_v12, 16 }
  0x54   : > { %v627_v25 = vor.u32 %v626_v33, %v623_v14  ;;  %v654_v34 = vrot.slane %v652_v60, 5  ;;  %v663_v23 = vshrl.u32 %v962_v58, 16  ;;  %v666_v26 = vshll.u32 %v962_v58, 16 }
  0x55   : > { %v641_v43 = vor.u32 %v640_v20, %v637_v19  ;;  %v660_v38 = vrot.slane %v658_v22, 5  ;;  %v672_v44 = vshll.u32 %v1420_v32, 16  ;;  %v677_v3 = vshrl.u32 %v963_v28, 16 }
  0x56   : > { %v628_v6 = vrot.slane %v627_v25, 4  ;;  %v655_v46 = vor.u32 %v654_v34, %v651_v0  ;;  %v665_v5 = vrot.slane %v663_v23, 4  ;;  %v668_v47 = vrot.slane %v666_v26, 5  ;;  %v975_v26 = vld [vmem:[%s1104_s13 + $0x10] sm:$0xe] }
  0x57   : > { %v642_v41 = vrot.slane %v641_v43, 4  ;;  %v674_v59 = vrot.slane %v672_v44, 5  ;;  %v679_v48 = vrot.slane %v677_v3, 4  ;;  %v680_v49 = vshll.u32 %v963_v28, 16 }
  0x58   : > { %v633_v10 = vsel %vm1153_vm2, %v628_v6, %v632_v37  ;;  %v656_v35 = vrot.slane %v655_v46, 4  ;;  %v669_v51 = vor.u32 %v668_v47, %v665_v5  ;;  %v686_v52 = vshll.u32 %v1424_v42, 16  ;;  %v976_v6 = vld [vmem:[%s1104_s13 + $0x18] sm:$0xe]  ;;  %v977_v46 = vld [vmem:[%s1104_s13 + $0x20] sm:$0xe] }
  0x59   : > { %v647_v53 = vsel %vm1153_vm2, %v642_v41, %v646_v21  ;;  %v682_v54 = vrot.slane %v680_v49, 5  ;;  %v691_v56 = vshrl.u32 %v1386_v11, 16  ;;  %v694_v39 = vshll.u32 %v1386_v11, 16 }
  0x5a   : > { %v661_v57 = vsel %vm1153_vm2, %v656_v35, %v660_v38  ;;  %v670_v58 = vrot.slane %v669_v51, 4  ;;  %v688_v28 = vrot.slane %v686_v52, 5  ;;  %v700_v45 = vshll.u32 %v1428_v27, 16 }
  0x5b   : > { %v683_v13 = vor.u32 %v682_v54, %v679_v48  ;;  %v693_v31 = vrot.slane %v691_v56, 4  ;;  %v696_v40 = vrot.slane %v694_v39, 5  ;;  %v705_v14 = vshrl.u32 %v1389_v61, 16 }
  0x5c   : > { %v675_v50 = vsel %vm1153_vm2, %v670_v58, %v674_v59  ;;  %v702_v15 = vrot.slane %v700_v45, 5  ;;  %v708_v11 = vshll.u32 %v1389_v61, 16  ;;  %v714_v18 = vshll.u32 %v1434_v17, 16 }
  0x5d   : > { %v684_v33 = vrot.slane %v683_v13, 4  ;;  %v697_v37 = vor.u32 %v696_v40, %v693_v31  ;;  %v707_v19 = vrot.slane %v705_v14, 4  ;;  %v719_v60 = vshrl.u32 %v1401_v36, 16 }
  0x5e   : > { %v710_v20 = vrot.slane %v708_v11, 5  ;;  %v716_v21 = vrot.slane %v714_v18, 5  ;;  %v722_v0 = vshll.u32 %v1401_v36, 16  ;;  %v728_v22 = vshll.u32 %v1444_v24, 16 }
  0x5f   : > { %v689_v25 = vsel %vm1153_vm2, %v684_v33, %v688_v28  ;;  %v698_v61 = vrot.slane %v697_v37, 4  ;;  %v721_v34 = vrot.slane %v719_v60, 4  ;;  %v740_v23 = vmax.bf16 %v633_v10, %v1380_v2  ;;  %v978_v2 = vld [vmem:[%s1104_s13 + $0x28] sm:$0xe]  ;;  %v979_v10 = vld [vmem:[%s1104_s13 + $0x30] sm:$0xe] }
  0x60   : > { %v711_v43 = vor.u32 %v710_v20, %v707_v19  ;;  %v724_v38 = vrot.slane %v722_v0, 5  ;;  %v730_v44 = vrot.slane %v728_v22, 5  ;;  %v741_v3 = vmax.bf16 %v647_v53, %v1391_v62 }
  0x61   : > { %v703_v36 = vsel %vm1153_vm2, %v698_v61, %v702_v15  ;;  %v742_v5 = vmax.bf16 %v661_v57, %v1393_v63  ;;  %v743_v47 = vmax.bf16 %v675_v50, %v1395_v16  ;;  %v744_v41 = vmax.bf16 %v689_v25, %v1403_v8  ;;  %v980_v8 = vld [vmem:[%s1104_s13 + $0x38] sm:$0xe]  ;;  %v982_v57 = vld [vmem:[%s1104_s13 + $0x48] sm:$0xe] }
  0x62   : > { %v712_v59 = vrot.slane %v711_v43, 4  ;;  %v725_v48 = vor.u32 %v724_v38, %v721_v34  ;;  %v745_v49 = vmax.bf16 %v703_v36, %v1406_v9  ;;  %v983_v62 = vrot.slane %v975_v26, 9  ;;  %v981_v9 = vld [vmem:[%s1104_s13 + $0x40] sm:$0xe] }
  0x63   : > { %v774_v35 = vrot.slane %v1383_v4, 5  ;;  %v984_v51 = vrot.slane %v976_v6, 9  ;;  %v778_v52 = vrot.slane %v1398_v7, 5  ;;  %v985_v53 = vrot.slane %v977_v46, 9 }
  0x64   : > { %v717_v63 = vsel %vm1153_vm2, %v712_v59, %v716_v21  ;;  %v726_v16 = vrot.slane %v725_v48, 4  ;;  %v782_v54 = vrot.slane %v1415_v12, 5  ;;  %v986_v56 = vrot.slane %v978_v2, 9 }
  0x65   : > { %v746_v39 = vmax.bf16 %v717_v63, %v1409_v29  ;;  %v775_v4 = vsel %vm1209_vm5, %v983_v62, %v774_v35  ;;  %v779_v7 = vsel %vm1209_vm5, %v984_v51, %v778_v52  ;;  %v786_v58 = vrot.slane %v1420_v32, 5 }
  0x66   : > { %v731_v28 = vsel %vm1153_vm2, %v726_v16, %v730_v44  ;;  %v783_v45 = vsel %vm1209_vm5, %v985_v53, %v782_v54  ;;  %v987_v12 = vrot.slane %v979_v10, 9  ;;  %v790_v13 = vrot.slane %v1424_v42, 5 }
  0x67   : > { %v747_v29 = vmax.bf16 %v731_v28, %v1412_v55  ;;  %v787_v31 = vsel %vm1209_vm5, %v986_v56, %v786_v58  ;;  %v988_v40 = vrot.slane %v980_v8, 9  ;;  %v794_v14 = vrot.slane %v1428_v27, 5 }
  0x68   : > { %v791_v32 = vsel %vm1209_vm5, %v987_v12, %v790_v13  ;;  %v989_v30 = vrot.slane %v981_v9, 9  ;;  %v798_v50 = vrot.slane %v1434_v17, 5  ;;  %v990_v15 = vrot.slane %v982_v57, 9 }
  0x69   : > { %v795_v11 = vsel %vm1209_vm5, %v988_v40, %v794_v14  ;;  %v802_v42 = vrot.slane %v1444_v24, 5  ;;  %v812_v18 = vmax.bf16 %v775_v4, %v740_v23  ;;  %v813_v55 = vmax.bf16 %v779_v7, %v741_v3 }
  0x6a   : > { %v799_v27 = vsel %vm1209_vm5, %v989_v30, %v798_v50  ;;  %v814_v33 = vmax.bf16 %v783_v45, %v742_v5  ;;  %v815_v37 = vmax.bf16 %v787_v31, %v743_v47  ;;  %v816_v19 = vmax.bf16 %v791_v32, %v744_v41 }
  0x6b   : > { %v803_v17 = vsel %vm1209_vm5, %v990_v15, %v802_v42  ;;  %v817_v60 = vmax.bf16 %v795_v11, %v745_v49  ;;  %v818_v20 = vmax.bf16 %v799_v27, %v746_v39  ;;  %v1014_v21 = vcombine.low %v812_v18, %v813_v55 }
  0x6c   : > { %v819_v0 = vmax.bf16 %v803_v17, %v747_v29  ;;  %v1015_v24 = vcombine.low %v814_v33, %v815_v37 }
  0x6d   : > { %998 = vst [vmem:[%s147_s17] sm:$0xff] %v1014_v21   ;;  %v1017_v22 = vcombine.low %v816_v19, %v817_v60 }
  0x6e   : > { %1016 = vst [vmem:[%s147_s17 + $0x8] sm:$0xff] %v1015_v24   ;;  %v1019_v25 = vcombine.low %v818_v20, %v819_v0 }
  0x6f   : > { %1018 = vst [vmem:[%s147_s17 + $0x10] sm:$0xff] %v1017_v22  }
  0x70   : > { %1020 = vst [vmem:[%s147_s17 + $0x18] sm:$0xff] %v1019_v25  }
  0x71 PF: > { %s11_s8 = sadd.s32 1, %s1068_s8   ;;  %s1521_s6 = smov %s1064_s7 }
  0x72   : > { %p8_p5 = scmp.ge.s32.totalorder %s11_s8, 4   ;;  %s1522_s7 = smov %s1524_s9 }
  0x74   :  { %10 = sbr.rel (!%p8_p5) target bundleno = 2 (0x2), region = 56 }

// kernel: encoder_cnn_forward.8
= control target key start
LH: loop header
LB: loop body
LE: loop exit
PB: predicated region body
PF: predicated region fallthrough
CT: control target
= control target key end

     0   :  { %s339_s1 = inlined_call_operand.vmem [shape: bf16[128,128], index: 1, kind: input, shape index: {}]   ;;  %s340_s0 = inlined_call_operand.vmem [shape: bf16[32,128], index: 0, kind: input, shape index: {}]   ;;  %s341_s2 = inlined_call_operand.vmem [shape: f32[1,128], index: 2, kind: input, shape index: {}]   ;;  %s342_s3 = inlined_call_operand.vmem [shape: bf16[32,128], index: 3, kind: output, shape index: {}]  }
   0x1   :  { %v270_v0 = vld [vmem:[%s339_s1] sm:$0xff]   ;;  %v271_v1 = vld [vmem:[%s339_s1 + $0x8] sm:$0xff]   ;;  %v272_v2 = vld [vmem:[%s339_s1 + $0x10] sm:$0xff]  }
   0x2   :  { %250 = vmatprep.subr.bf16.mxu0 %v270_v0  ;;  %v273_v3 = vld [vmem:[%s339_s1 + $0x18] sm:$0xff]   ;;  %v278_v4 = vld [vmem:[%s340_s0] sm:$0xff]   ;;  %v275_v6 = vld [vmem:[%s339_s1 + $0x28] sm:$0xff]  }
   0x3   :  { %251 = vmatpush3.bf16.msra.mxu0 %v270_v0  ;;  %266 = vmatprep.mubr.bf16.mxu0 %v278_v4  ;;  %v274_v5 = vld [vmem:[%s339_s1 + $0x20] sm:$0xff]   ;;  %v276_v7 = vld [vmem:[%s339_s1 + $0x30] sm:$0xff]   ;;  %v277_v8 = vld [vmem:[%s339_s1 + $0x38] sm:$0xff]  }
   0x4   :  { %252 = vmatprep.subr.bf16.mxu0 %v271_v1  ;;  %v279_v9 = vld [vmem:[%s340_s0 + $0x8] sm:$0xff]   ;;  %v220_v10 = vld [vmem:[%s341_s2] ss:$0 sm:$0xff] }
   0x7   :  { %253 = vmatpush3.bf16.msra.mxu0 %v271_v1 }
   0x8   :  { %254 = vmatprep.subr.bf16.mxu0 %v272_v2 }
   0xb   :  { %255 = vmatpush3.bf16.msra.mxu0 %v272_v2 }
   0xc   :  { %256 = vmatprep.subr.bf16.mxu0 %v273_v3 }
   0xf   :  { %257 = vmatpush3.bf16.msra.mxu0 %v273_v3 }
  0x10   :  { %258 = vmatprep.subr.bf16.mxu0 %v274_v5 }
  0x13   :  { %259 = vmatpush3.bf16.msra.mxu0 %v274_v5 }
  0x14   :  { %260 = vmatprep.subr.bf16.mxu0 %v275_v6 }
  0x17   :  { %261 = vmatpush3.bf16.msra.mxu0 %v275_v6 }
  0x18   :  { %262 = vmatprep.subr.bf16.mxu0 %v276_v7 }
  0x1b   :  { %263 = vmatpush3.bf16.msra.mxu0 %v276_v7 }
  0x1c   :  { %264 = vmatprep.subr.bf16.mxu0 %v277_v8 }
  0x1f   :  { %265 = vmatpush3.bf16.msra.mxu0 %v277_v8 }
  0x22   :  { %267 = vmatmul.mubr.bf16.vlgmr.msra.gmra.mrb[0].mxu0 %v279_v9 }
  0xf5   :  { %v268_v11 = vpop.f32.mrb[0].mxu0 }
  0xf6   :  { %v180_v12 = vadd.f32 %v268_v11, %v220_v10  ;;  %v141_v13 = vpop.f32.mrb[1].mxu0 }
  0xf7   :  { %v178_v14 = vadd.f32 %v220_v10, %v141_v13  ;;  %v269_v15 = vpop.f32.mrb[2].mxu0 }
  0xf8   :  { %v181_v16 = vadd.f32 %v269_v15, %v220_v10  ;;  %v144_v17 = vpop.f32.mrb[3].mxu0  ;;  %v184_v19 = vmax.f32 %v180_v12, 0.0 }
  0xf9   :  { %v179_v18 = vadd.f32 %v220_v10, %v144_v17  ;;  %v182_v21 = vmax.f32 %v178_v14, 0.0 }
  0xfa   :  { %v185_v20 = vmax.f32 %v181_v16, 0.0 }
  0xfb   :  { %v183_v22 = vmax.f32 %v179_v18, 0.0 }
  0xfc   :  { %v237_v23 = vpack.c.bf16 %v185_v20, %v184_v19 }
  0xfd   :  { %v232_v24 = vpack.c.bf16 %v183_v22, %v182_v21 }
  0xfe   :  { %239 = vst [vmem:[%s342_s3 + $0x8] sm:$0xff] %v237_v23  }
  0xff   :  { %233 = vst [vmem:[%s342_s3] sm:$0xff] %v232_v24  }

// kernel: encoder_cnn_forward.9
= control target key start
LH: loop header
LB: loop body
LE: loop exit
PB: predicated region body
PF: predicated region fallthrough
CT: control target
= control target key end

     0   :  { %s1071_s12 = smov 0   ;;  %s1073_s13 = smov 0   ;;  %s1181_s0 = inlined_call_operand.vmem [shape: bf16[32,1152], index: 0, kind: input, shape index: {}]   ;;  %s1182_s1 = inlined_call_operand.vmem [shape: bf16[1152,128], index: 1, kind: input, shape index: {}]   ;;  %s1183_s2 = inlined_call_operand.vmem [shape: f32[1,128], index: 2, kind: input, shape index: {}]   ;;  %s1184_s3 = inlined_call_operand.vmem [shape: bf16[32,128], index: 3, kind: output, shape index: {}]  }
   0x1   :  { %s1075_s14 = smov 0   ;;  %s1077_s15 = smov 0  }
   0x2   :  { %s1079_s16 = smov 0  }
   0x3 LB: > { %s25_s17 = sadd.s32 1, %s1044_s15  ;;  %p48_p1 = scmp.ne.s32.totalorder %s1036_s13, %s1032_s12  ;;  %s1048_s16 = sphi %s1079_s16, %s13_s16   ;;  %s1044_s15 = sphi %s1077_s15, %s1188_s15   ;;  %s1040_s14 = sphi %s1075_s14, %s1187_s14   ;;  %s1036_s13 = sphi %s1073_s13, %s1186_s13   ;;  %s1032_s12 = sphi %s1071_s12, %s1185_s12  }
   0x4   : > { %p26_p0 = scmp.ge.s32.totalorder %s25_s17, 3  ;;  %p49_p2 = scmp.eq.s32.totalorder %s1048_s16, 0 }
   0x5   : > { %s41_s19 = sadd.s32 1, %s1036_s13  ;;  %p808_p5 = scmp.ge.s32.totalorder %s1048_s16, 3 }
   0x6   : > { %s1190_s17 = smov (%p26_p0, %s25_s17), 0  ;;  %p50_p3 = por %p49_p2, %p48_p1 }
   0x7   : > { %s37_s18 = ssub.s32 %s1044_s15, %s1190_s17  ;;  %162 = sbr.rel (%p808_p5) target bundleno = 23 (0x17), region = 20 }
   0x8   : > { %p39_p4 = scmp.eq.s32.totalorder %s37_s18, 0 }
   0xa   : > { %s1106_s20 = scalar_select %p39_p4, %s1036_s13, %s41_s19  }
   0xe   : > { %165 = sbr.rel (!%p50_p3) target bundleno = 23 (0x17), region = 24  ;;  %s167_s21 = sand.u32 (%p50_p3), 1, %s1036_s13  }
   0xf   : > { %s861_s22 = smul.u32 (%p50_p3), 12, %s1044_s15 }
  0x10   : > { %s935_s23 = smul.u32 (%p50_p3), 48, %s167_s21 }
  0x11   : > { %s175_s26 = scalar_lea.vmem (%p50_p3), %s1181_s0, %s861_s22 }
  0x12   : > { %v190_v0 = vld [vmem:[%s175_s26] sm:$0xff] (%p50_p3)  ;;  %v194_v2 = vld [vmem:[%s175_s26 + $0x48] sm:$0xff] (%p50_p3)  ;;  %s169_s27 = scalar_lea.vmem (%p50_p3), [#allocation3], %s935_s23  ;;  %v814_v6 = vld [vmem:[%s175_s26 + $0x50] sm:$0xf] (%p50_p3) }
  0x13   : > { %v192_v1 = vld [vmem:[%s175_s26 + $0x24] sm:$0xff] (%p50_p3)  ;;  %191 = vst [vmem:[%s169_s27] sm:$0xff] (%p50_p3), %v190_v0  ;;  %195 = vst [vmem:[%s169_s27 + $0x18] sm:$0xff] (%p50_p3), %v194_v2  ;;  %v196_v3 = vld [vmem:[%s175_s26 + $0x6c] sm:$0xff] (%p50_p3) }
  0x14   : > { %193 = vst [vmem:[%s169_s27 + $0xc] sm:$0xff] (%p50_p3), %v192_v1  ;;  %v810_v4 = vld [vmem:[%s175_s26 + $0x8] sm:$0xf] (%p50_p3)  ;;  %v812_v5 = vld [vmem:[%s175_s26 + $0x2c] sm:$0xf] (%p50_p3)  ;;  %197 = vst [vmem:[%s169_s27 + $0x24] sm:$0xff] (%p50_p3), %v196_v3 }
  0x15   : > { %811 = vst [vmem:[%s169_s27 + $0x8] sm:$0xf] %v810_v4  ;;  %813 = vst [vmem:[%s169_s27 + $0x14] sm:$0xf] %v812_v5  ;;  %v816_v7 = vld [vmem:[%s175_s26 + $0x74] sm:$0xf] }
  0x16   : > { %815 = vst [vmem:[%s169_s27 + $0x20] sm:$0xf] %v814_v6  ;;  %817 = vst [vmem:[%s169_s27 + $0x2c] sm:$0xf] %v816_v7 }
  0x17 PF: > { %p818_p6 = scmp.ge.s32.totalorder %s1048_s16, 1  ;;  %p229_p7 = scmp.lt.s32.totalorder %s1048_s16, 4 }
  0x19   : > { %p230_p8 = pnand %p818_p6, %p229_p7 }
  0x1a   : > { %s236_s28 = sand.u32 (!%p230_p8), 1, %s1032_s12   ;;  %s275_s29 = smul.u32 (!%p230_p8), 48, %s1040_s14 }
  0x1b   : > { %233 = sbr.rel (%p230_p8) target bundleno = 318 (0x13e), region = 54  ;;  %p820_p10 = scmp.ne.s32.totalorder (!%p230_p8), %s1040_s14, 0 }
  0x1c   : > { %s936_s30 = smul.u32 (!%p230_p8), 48, %s236_s28  ;;  %p276_p9 = scmp.lt.s32.totalorder (!%p230_p8), %s275_s29, 143 }
  0x1e   : > { %s1123_s8 = scalar_lea.vmem (!%p230_p8), [#allocation3], %s936_s30 }
  0x22   : > { %s1192_s29 = smov (!%p276_p9, %s275_s29), 143  ;;  %300 = sbr.rel (%p820_p10) target bundleno = 41 (0x29), region = 62 }
  0x23   : > { %s819_s4 = sshll.u32 %s1192_s29, 2  ;;  %v1050_v8 = vmov (!%p820_p10), 0.0  }
  0x24   : > { %s1121_s7 = scalar_lea.vmem %s1182_s1, %s819_s4  ;;  %301 = vst [vmem:[#allocation2] sm:$0xff] (!%p820_p10), %v1050_v8  ;;  %302 = vst [vmem:[#allocation2 + $0x8] sm:$0xff] (!%p820_p10), %v1050_v8 }
  0x25   : > { %303 = vst [vmem:[#allocation2 + $0x10] sm:$0xff] (!%p820_p10), %v1050_v8  ;;  %304 = vst [vmem:[#allocation2 + $0x18] sm:$0xff] (!%p820_p10), %v1050_v8 }
  0x29 PF: > { %v978_v9 = vld [vmem:[%s1121_s7 + $0x40] sm:$0xff]   ;;  %v981_v12 = vld [vmem:[%s1121_s7 + $0x48] sm:$0xff]   ;;  %v984_v15 = vld [vmem:[%s1121_s7 + $0x50] sm:$0xff]   ;;  %p851_p11 = scmp.ne.s32.totalorder %s1040_s14, 2 }
  0x2a   : > { %v979_v10 = vld [vmem:[%s1121_s7] sm:$0xff]   ;;  %877 = vmatprep.subr.bf16.mxu0 %v978_v9  ;;  %v982_v13 = vld [vmem:[%s1121_s7 + $0x8] sm:$0xff]   ;;  %v985_v16 = vld [vmem:[%s1121_s7 + $0x10] sm:$0xff]  }
  0x2b   : > { %v980_v11 = vld [vmem:[%s1121_s7 + $0x80] sm:$0xff]   ;;  %878 = vmatpush3.bf16.msra.mxu0 %v979_v10  ;;  %v983_v14 = vld [vmem:[%s1121_s7 + $0x88] sm:$0xff]   ;;  %v986_v17 = vld [vmem:[%s1121_s7 + $0x90] sm:$0xff]  }
  0x2c   : > { %915 = vmatprep.subr.bf16.mxu1 %v980_v11  ;;  %879 = vmatprep.subr.bf16.mxu0 %v981_v12  ;;  %v987_v18 = vld [vmem:[%s1121_s7 + $0x58] sm:$0xff]   ;;  %v990_v21 = vld [vmem:[%s1121_s7 + $0x60] sm:$0xff]   ;;  %v993_v24 = vld [vmem:[%s1121_s7 + $0x68] sm:$0xff]  }
  0x2d   : > { %916 = vmatpush3.bf16.msra.mxu1 %v980_v11  ;;  %v988_v19 = vld [vmem:[%s1121_s7 + $0x18] sm:$0xff]   ;;  %v992_v22 = vld [vmem:[%s1121_s7 + $0xa0] sm:$0xff]   ;;  %v995_v25 = vld [vmem:[%s1121_s7 + $0xa8] sm:$0xff]  }
  0x2e   : > { %917 = vmatprep.subr.bf16.mxu1 %v983_v14  ;;  %v989_v20 = vld [vmem:[%s1121_s7 + $0x98] sm:$0xff]   ;;  %v991_v23 = vld [vmem:[%s1121_s7 + $0x20] sm:$0xff]   ;;  %v994_v26 = vld [vmem:[%s1121_s7 + $0x28] sm:$0xff]  }
  0x2f   : > { %880 = vmatpush3.bf16.msra.mxu0 %v982_v13  ;;  %v996_v27 = vld [vmem:[%s1121_s7 + $0x70] sm:$0xff]   ;;  %v999_v30 = vld [vmem:[%s1121_s7 + $0x78] sm:$0xff]   ;;  %v305_v45 = vld [vmem:[#allocation2] sm:$0xff] }
  0x30   : > { %881 = vmatprep.subr.bf16.mxu0 %v984_v15  ;;  %v997_v28 = vld [vmem:[%s1121_s7 + $0x30] sm:$0xff]   ;;  %v1001_v31 = vld [vmem:[%s1121_s7 + $0xb8] sm:$0xff]   ;;  %v306_v50 = vld [vmem:[#allocation2 + $0x8] sm:$0xff] }
  0x31   : > { %918 = vmatpush3.bf16.msra.mxu1 %v983_v14  ;;  %v998_v29 = vld [vmem:[%s1121_s7 + $0xb0] sm:$0xff]   ;;  %v1000_v34 = vld [vmem:[%s1121_s7 + $0x38] sm:$0xff]   ;;  %v852_v5 = vld [vmem:[%s1183_s2] ss:$0 sm:$0xff] (!%p851_p11) }
  0x32   : > { %919 = vmatprep.subr.bf16.mxu1 %v986_v17  ;;  %v1004_v32 = vld [vmem:[%s1123_s8 + $0x4] ss:$12 sps:$4 sm:$0xff]   ;;  %v1005_v33 = vld [vmem:[%s1123_s8 + $0x8] ss:$12 sps:$4 sm:$0xff]   ;;  %v1002_v35 = vld [vmem:[%s1123_s8] ss:$12 sps:$4 sm:$0xff]  }
  0x33   : > { %882 = vmatpush3.bf16.msra.mxu0 %v985_v16  ;;  %573 = vmatprep.mubr.bf16.mxu0 %v1004_v32  ;;  %v1007_v36 = vld [vmem:[%s1123_s8 + $0x1c] ss:$12 sps:$4 sm:$0xff]   ;;  %v1006_v37 = vld [vmem:[%s1123_s8 + $0x20] ss:$12 sps:$4 sm:$0xff]   ;;  %v1009_v38 = vld [vmem:[%s1123_s8 + $0x18] ss:$12 sps:$4 sm:$0xff]  }
  0x34   : > { %883 = vmatprep.subr.bf16.mxu0 %v987_v18  ;;  %931 = vmatprep.mubr.bf16.mxu1 %v1005_v33  ;;  %v307_v59 = vld [vmem:[#allocation2 + $0x10] sm:$0xff]  ;;  %v308_v63 = vld [vmem:[#allocation2 + $0x18] sm:$0xff] }
  0x35   : > { %920 = vmatpush3.bf16.msra.mxu1 %v986_v17 }
  0x36   : > { %921 = vmatprep.subr.bf16.mxu1 %v989_v20 }
  0x37   : > { %884 = vmatpush3.bf16.msra.mxu0 %v988_v19 }
  0x38   : > { %885 = vmatprep.subr.bf16.mxu0 %v990_v21 }
  0x39   : > { %922 = vmatpush3.bf16.msra.mxu1 %v989_v20 }
  0x3a   : > { %923 = vmatprep.subr.bf16.mxu1 %v992_v22 }
  0x3b   : > { %886 = vmatpush3.bf16.msra.mxu0 %v991_v23 }
  0x3c   : > { %887 = vmatprep.subr.bf16.mxu0 %v993_v24 }
  0x3d   : > { %924 = vmatpush3.bf16.msra.mxu1 %v992_v22 }
  0x3e   : > { %925 = vmatprep.subr.bf16.mxu1 %v995_v25 }
  0x3f   : > { %888 = vmatpush3.bf16.msra.mxu0 %v994_v26 }
  0x40   : > { %889 = vmatprep.subr.bf16.mxu0 %v996_v27 }
  0x41   : > { %926 = vmatpush3.bf16.msra.mxu1 %v995_v25 }
  0x42   : > { %927 = vmatprep.subr.bf16.mxu1 %v998_v29 }
  0x43   : > { %890 = vmatpush3.bf16.msra.mxu0 %v997_v28 }
  0x44   : > { %891 = vmatprep.subr.bf16.mxu0 %v999_v30 }
  0x45   : > { %928 = vmatpush3.bf16.msra.mxu1 %v998_v29 }
  0x46   : > { %929 = vmatprep.subr.bf16.mxu1 %v1001_v31 }
  0x47   : > { %892 = vmatpush3.bf16.msra.mxu0 %v1000_v34 }
  0x49   : > { %930 = vmatpush3.bf16.msra.mxu1 %v1001_v31 }
  0x4a   : > { %574 = vmatmul.mubr.bf16.vlgmr.msra.gmra.mrb[0].mxu0 %v1002_v35 }
  0x4b   : > { %581 = vmatprep.mubr.bf16.mxu0 %v1007_v36 }
  0x4c   : > { %932 = vmatmul.mubr.bf16.vlgmr.msra.gmra.mrb[0].mxu1 %v1006_v37 }
  0x52   : > { %582 = vmatmul.mubr.bf16.gmra.mrb[4].mxu0 %v1009_v38 }
 0x11d   : > { %v893_v39 = vpop.f32.mrb[0].mxu0 }
 0x11e   : > { %v894_v40 = vpop.f32.mrb[1].mxu0 }
 0x11f   : > { %v895_v41 = vadd.f32 %v894_v40, %v893_v39  ;;  %v896_v42 = vpop.f32.mrb[2].mxu0  ;;  %v933_v43 = vpop.f32.mrb[0].mxu1 }
 0x120   : > { %v897_v44 = vpop.f32.mrb[3].mxu0  ;;  %v624_v46 = vpop.f32.mrb[1].mxu1 }
 0x121   : > { %v898_v47 = vadd.f32 %v897_v44, %v896_v42  ;;  %v625_v48 = vadd.f32 %v895_v41, %v624_v46  ;;  %v934_v49 = vpop.f32.mrb[2].mxu1 }
 0x122   : > { %v627_v51 = vpop.f32.mrb[3].mxu1 }
 0x123   : > { %v639_v52 = vadd.f32 %v625_v48, %v305_v45  ;;  %v628_v53 = vadd.f32 %v898_v47, %v627_v51 }
 0x125   : > { %643 = vst [vmem:[#allocation2] sm:$0xff] %v639_v52  ;;  %v640_v54 = vadd.f32 %v628_v53, %v306_v50  ;;  %v899_v55 = vpop.f32.mrb[4].mxu0 }
 0x126   : > { %v900_v56 = vpop.f32.mrb[5].mxu0 }
 0x127   : > { %644 = vst [vmem:[#allocation2 + $0x8] sm:$0xff] %v640_v54  ;;  %v901_v57 = vadd.f32 %v900_v56, %v899_v55  ;;  %v902_v58 = vpop.f32.mrb[6].mxu0 }
 0x128   : > { %v903_v60 = vpop.f32.mrb[7].mxu0 }
 0x129   : > { %v633_v61 = vadd.f32 %v933_v43, %v901_v57  ;;  %v904_v62 = vadd.f32 %v903_v60, %v902_v58  ;;  %650 = sbr.rel (%p851_p11) target bundleno = 318 (0x13e), region = 66 }
 0x12b   : > { %v641_v0 = vadd.f32 %v633_v61, %v307_v59  ;;  %v636_v1 = vadd.f32 %v934_v49, %v904_v62 }
 0x12c   : > { %v651_v3 = vld [vmem:[#allocation2] sm:$0xff] (!%p851_p11) }
 0x12d   : > { %645 = vst [vmem:[#allocation2 + $0x10] sm:$0xff] %v641_v0  ;;  %v642_v2 = vadd.f32 %v636_v1, %v308_v63  ;;  %v662_v6 = vadd.f32 (!%p851_p11), %v852_v5, %v651_v3 }
 0x12e   : > { %v652_v4 = vld [vmem:[#allocation2 + $0x8] sm:$0xff] (!%p851_p11) }
 0x12f   : > { %646 = vst [vmem:[#allocation2 + $0x18] sm:$0xff] %v642_v2  ;;  %v663_v7 = vadd.f32 (!%p851_p11), %v852_v5, %v652_v4  ;;  %v666_v12 = vmax.f32 (!%p851_p11), %v662_v6, 0.0 }
 0x131   : > { %v667_v13 = vmax.f32 %v663_v7, 0.0 }
 0x133   : > { %v869_v16 = vpack.c.bf16 %v667_v13, %v666_v12 }
 0x134   : > { %v653_v8 = vld [vmem:[#allocation2 + $0x10] sm:$0xff] }
 0x135   : > { %v664_v10 = vadd.f32 %v852_v5, %v653_v8  ;;  %870 = vst [vmem:[%s1184_s3] sm:$0xff] %v869_v16  }
 0x136   : > { %v654_v9 = vld [vmem:[#allocation2 + $0x18] sm:$0xff] }
 0x137   : > { %v665_v11 = vadd.f32 %v852_v5, %v654_v9  ;;  %v668_v14 = vmax.f32 %v664_v10, 0.0 }
 0x139   : > { %v669_v15 = vmax.f32 %v665_v11, 0.0 }
 0x13b   : > { %v874_v17 = vpack.c.bf16 %v669_v15, %v668_v14 }
 0x13d   : > { %876 = vst [vmem:[%s1184_s3 + $0x8] sm:$0xff] %v874_v17  }
 0x13e PF: > { %s13_s16 = sadd.s32 1, %s1048_s16   ;;  %s1185_s12 = smov %s1036_s13 }
 0x13f   : > { %p10_p12 = scmp.ge.s32.totalorder %s13_s16, 5   ;;  %s1186_s13 = smov %s1106_s20 }
 0x140   : > { %s1187_s14 = smov %s1044_s15  ;;  %s1188_s15 = smov %s1190_s17 }
 0x141   :  { %12 = sbr.rel (!%p10_p12) target bundleno = 3 (0x3), region = 113 }

// kernel: encoder_cnn_forward.10
= control target key start
LH: loop header
LB: loop body
LE: loop exit
PB: predicated region body
PF: predicated region fallthrough
CT: control target
= control target key end

     0   :  { %s2371_s12 = smov 0   ;;  %s2373_s13 = smov 0   ;;  %s2935_s0 = inlined_call_operand.vmem [shape: bf16[32,256], index: 0, kind: input, shape index: {}]   ;;  %s2936_s1 = inlined_call_operand.vmem [shape: bf16[256,2048], index: 1, kind: input, shape index: {}]   ;;  %s2937_s2 = inlined_call_operand.vmem [shape: f32[1,2048], index: 2, kind: input, shape index: {}]   ;;  %s2938_s3 = inlined_call_operand.vmem [shape: bf16[32,2048], index: 3, kind: output, shape index: {}]  }
   0x1   :  { %s2375_s14 = smov 0   ;;  %s2377_s15 = smov 0  }
   0x2   :  { %s2379_s16 = smov 0  }
   0x3 LB: > { %s28_s17 = sadd.s32 1, %s2345_s15  ;;  %s2082_s18 = sadd.s32 4294967295, %s2349_s16   ;;  %s2349_s16 = sphi %s2379_s16, %s13_s16   ;;  %s2345_s15 = sphi %s2377_s15, %s2943_s15   ;;  %s2341_s14 = sphi %s2375_s14, %s2942_s14   ;;  %s2337_s13 = sphi %s2373_s13, %s2941_s13   ;;  %s2333_s12 = sphi %s2371_s12, %s2940_s12  }
   0x4   : > { %p30_p0 = scmp.ge.s32.totalorder %s28_s17, 2  ;;  %p76_p1 = scmp.ne.s32.totalorder %s2337_s13, %s2333_s12 }
   0x5   : > { %p77_p2 = scmp.eq.s32.totalorder %s2349_s16, 0  ;;  %p134_p4 = scmp.eq.s32.totalorder %s2082_s18, 1 }
   0x6   : > { %s2945_s17 = smov (%p30_p0, %s28_s17), 0  ;;  %s69_s20 = sadd.s32 1, %s2337_s13 }
   0x7   : > { %p78_p3 = por %p77_p2, %p76_p1  ;;  %s65_s19 = ssub.s32 %s2345_s15, %s2945_s17 }
   0x8   : > { %p67_p5 = scmp.eq.s32.totalorder %s65_s19, 0  ;;  %p2406_p6 = por %p134_p4, %p76_p1 }
   0x9   : > { %p2086_p7 = scmp.ge.s32.totalorder %s2349_s16, 2 }
   0xa   : > { %s2411_s22 = scalar_select %p67_p5, %s2337_s13, %s69_s20  }
   0xb   : > { %171 = sbr.rel (%p2086_p7) target bundleno = 86 (0x56), region = 20 }
  0x12   : > { %174 = sbr.rel (!%p78_p3) target bundleno = 86 (0x56), region = 24  ;;  %s176_s23 = sand.u32 (%p78_p3), 1, %s2337_s13  }
  0x13   : > { %s2247_s24 = sshll.u32 (%p78_p3), %s2345_s15, 5  ;;  %s2087_s25 = sshll.u32 (%p78_p3), %s176_s23, 10 }
  0x14   : > { %s2419_s28 = scalar_lea.vmem (%p78_p3), %s2936_s1, %s2247_s24  ;;  %s2424_s29 = scalar_lea.vmem (%p78_p3), [#allocation3], %s2087_s25 }
  0x15   : > { %v197_v0 = vld [vmem:[%s2419_s28] sm:$0xff] (%p78_p3)  ;;  %v199_v1 = vld [vmem:[%s2419_s28 + $0x8] sm:$0xff] (%p78_p3)  ;;  %v201_v2 = vld [vmem:[%s2419_s28 + $0x10] sm:$0xff] (%p78_p3) }
  0x16   : > { %198 = vst [vmem:[%s2424_s29] sm:$0xff] (%p78_p3), %v197_v0  ;;  %200 = vst [vmem:[%s2424_s29 + $0x8] sm:$0xff] (%p78_p3), %v199_v1  ;;  %v203_v3 = vld [vmem:[%s2419_s28 + $0x18] sm:$0xff] (%p78_p3)  ;;  %v205_v4 = vld [vmem:[%s2419_s28 + $0x40] sm:$0xff] (%p78_p3) }
  0x17   : > { %202 = vst [vmem:[%s2424_s29 + $0x10] sm:$0xff] (%p78_p3), %v201_v2  ;;  %v207_v5 = vld [vmem:[%s2419_s28 + $0x48] sm:$0xff] (%p78_p3)  ;;  %204 = vst [vmem:[%s2424_s29 + $0x18] sm:$0xff] (%p78_p3), %v203_v3  ;;  %v209_v6 = vld [vmem:[%s2419_s28 + $0x50] sm:$0xff] (%p78_p3) }
  0x18   : > { %206 = vst [vmem:[%s2424_s29 + $0x20] sm:$0xff] (%p78_p3), %v205_v4  ;;  %208 = vst [vmem:[%s2424_s29 + $0x28] sm:$0xff] (%p78_p3), %v207_v5  ;;  %v211_v7 = vld [vmem:[%s2419_s28 + $0x58] sm:$0xff] (%p78_p3)  ;;  %v213_v8 = vld [vmem:[%s2419_s28 + $0x80] sm:$0xff] (%p78_p3) }
  0x19   : > { %210 = vst [vmem:[%s2424_s29 + $0x30] sm:$0xff] %v209_v6  ;;  %212 = vst [vmem:[%s2424_s29 + $0x38] sm:$0xff] %v211_v7  ;;  %v215_v9 = vld [vmem:[%s2419_s28 + $0x88] sm:$0xff]  ;;  %v217_v10 = vld [vmem:[%s2419_s28 + $0x90] sm:$0xff] }
  0x1a   : > { %214 = vst [vmem:[%s2424_s29 + $0x40] sm:$0xff] %v213_v8  ;;  %v219_v11 = vld [vmem:[%s2419_s28 + $0x98] sm:$0xff]  ;;  %216 = vst [vmem:[%s2424_s29 + $0x48] sm:$0xff] %v215_v9  ;;  %v221_v12 = vld [vmem:[%s2419_s28 + $0xc0] sm:$0xff] }
  0x1b   : > { %218 = vst [vmem:[%s2424_s29 + $0x50] sm:$0xff] %v217_v10  ;;  %220 = vst [vmem:[%s2424_s29 + $0x58] sm:$0xff] %v219_v11  ;;  %v223_v13 = vld [vmem:[%s2419_s28 + $0xc8] sm:$0xff]  ;;  %v225_v14 = vld [vmem:[%s2419_s28 + $0xd0] sm:$0xff] }
  0x1c   : > { %222 = vst [vmem:[%s2424_s29 + $0x60] sm:$0xff] %v221_v12  ;;  %224 = vst [vmem:[%s2424_s29 + $0x68] sm:$0xff] %v223_v13  ;;  %v227_v15 = vld [vmem:[%s2419_s28 + $0xd8] sm:$0xff]  ;;  %v229_v16 = vld [vmem:[%s2419_s28 + $0x100] sm:$0xff] }
  0x1d   : > { %226 = vst [vmem:[%s2424_s29 + $0x70] sm:$0xff] %v225_v14  ;;  %v231_v17 = vld [vmem:[%s2419_s28 + $0x108] sm:$0xff]  ;;  %228 = vst [vmem:[%s2424_s29 + $0x78] sm:$0xff] %v227_v15  ;;  %v233_v18 = vld [vmem:[%s2419_s28 + $0x110] sm:$0xff] }
  0x1e   : > { %230 = vst [vmem:[%s2424_s29 + $0x80] sm:$0xff] %v229_v16  ;;  %232 = vst [vmem:[%s2424_s29 + $0x88] sm:$0xff] %v231_v17  ;;  %v235_v19 = vld [vmem:[%s2419_s28 + $0x118] sm:$0xff]  ;;  %v237_v20 = vld [vmem:[%s2419_s28 + $0x140] sm:$0xff] }
  0x1f   : > { %234 = vst [vmem:[%s2424_s29 + $0x90] sm:$0xff] %v233_v18  ;;  %236 = vst [vmem:[%s2424_s29 + $0x98] sm:$0xff] %v235_v19  ;;  %v239_v21 = vld [vmem:[%s2419_s28 + $0x148] sm:$0xff]  ;;  %v241_v22 = vld [vmem:[%s2419_s28 + $0x150] sm:$0xff] }
  0x20   : > { %238 = vst [vmem:[%s2424_s29 + $0xa0] sm:$0xff] %v237_v20  ;;  %v243_v23 = vld [vmem:[%s2419_s28 + $0x158] sm:$0xff]  ;;  %240 = vst [vmem:[%s2424_s29 + $0xa8] sm:$0xff] %v239_v21  ;;  %v245_v24 = vld [vmem:[%s2419_s28 + $0x180] sm:$0xff] }
  0x21   : > { %242 = vst [vmem:[%s2424_s29 + $0xb0] sm:$0xff] %v241_v22  ;;  %244 = vst [vmem:[%s2424_s29 + $0xb8] sm:$0xff] %v243_v23  ;;  %v247_v25 = vld [vmem:[%s2419_s28 + $0x188] sm:$0xff]  ;;  %v249_v26 = vld [vmem:[%s2419_s28 + $0x190] sm:$0xff] }
  0x22   : > { %246 = vst [vmem:[%s2424_s29 + $0xc0] sm:$0xff] %v245_v24  ;;  %248 = vst [vmem:[%s2424_s29 + $0xc8] sm:$0xff] %v247_v25  ;;  %v251_v27 = vld [vmem:[%s2419_s28 + $0x198] sm:$0xff]  ;;  %v253_v28 = vld [vmem:[%s2419_s28 + $0x1c0] sm:$0xff] }
  0x23   : > { %250 = vst [vmem:[%s2424_s29 + $0xd0] sm:$0xff] %v249_v26  ;;  %v255_v29 = vld [vmem:[%s2419_s28 + $0x1c8] sm:$0xff]  ;;  %252 = vst [vmem:[%s2424_s29 + $0xd8] sm:$0xff] %v251_v27  ;;  %v257_v30 = vld [vmem:[%s2419_s28 + $0x1d0] sm:$0xff] }
  0x24   : > { %254 = vst [vmem:[%s2424_s29 + $0xe0] sm:$0xff] %v253_v28  ;;  %256 = vst [vmem:[%s2424_s29 + $0xe8] sm:$0xff] %v255_v29  ;;  %v259_v31 = vld [vmem:[%s2419_s28 + $0x1d8] sm:$0xff]  ;;  %v261_v32 = vld [vmem:[%s2419_s28 + $0x200] sm:$0xff] }
  0x25   : > { %258 = vst [vmem:[%s2424_s29 + $0xf0] sm:$0xff] %v257_v30  ;;  %260 = vst [vmem:[%s2424_s29 + $0xf8] sm:$0xff] %v259_v31  ;;  %v263_v33 = vld [vmem:[%s2419_s28 + $0x208] sm:$0xff]  ;;  %v265_v34 = vld [vmem:[%s2419_s28 + $0x210] sm:$0xff] }
  0x26   : > { %262 = vst [vmem:[%s2424_s29 + $0x100] sm:$0xff] %v261_v32  ;;  %v267_v35 = vld [vmem:[%s2419_s28 + $0x218] sm:$0xff]  ;;  %264 = vst [vmem:[%s2424_s29 + $0x108] sm:$0xff] %v263_v33  ;;  %v269_v36 = vld [vmem:[%s2419_s28 + $0x240] sm:$0xff] }
  0x27   : > { %266 = vst [vmem:[%s2424_s29 + $0x110] sm:$0xff] %v265_v34  ;;  %268 = vst [vmem:[%s2424_s29 + $0x118] sm:$0xff] %v267_v35  ;;  %v271_v37 = vld [vmem:[%s2419_s28 + $0x248] sm:$0xff]  ;;  %v273_v38 = vld [vmem:[%s2419_s28 + $0x250] sm:$0xff] }
  0x28   : > { %270 = vst [vmem:[%s2424_s29 + $0x120] sm:$0xff] %v269_v36  ;;  %272 = vst [vmem:[%s2424_s29 + $0x128] sm:$0xff] %v271_v37  ;;  %v275_v39 = vld [vmem:[%s2419_s28 + $0x258] sm:$0xff]  ;;  %v277_v40 = vld [vmem:[%s2419_s28 + $0x280] sm:$0xff] }
  0x29   : > { %274 = vst [vmem:[%s2424_s29 + $0x130] sm:$0xff] %v273_v38  ;;  %v279_v41 = vld [vmem:[%s2419_s28 + $0x288] sm:$0xff]  ;;  %276 = vst [vmem:[%s2424_s29 + $0x138] sm:$0xff] %v275_v39  ;;  %v281_v42 = vld [vmem:[%s2419_s28 + $0x290] sm:$0xff] }
  0x2a   : > { %278 = vst [vmem:[%s2424_s29 + $0x140] sm:$0xff] %v277_v40  ;;  %280 = vst [vmem:[%s2424_s29 + $0x148] sm:$0xff] %v279_v41  ;;  %v283_v43 = vld [vmem:[%s2419_s28 + $0x298] sm:$0xff]  ;;  %v285_v44 = vld [vmem:[%s2419_s28 + $0x2c0] sm:$0xff] }
  0x2b   : > { %282 = vst [vmem:[%s2424_s29 + $0x150] sm:$0xff] %v281_v42  ;;  %284 = vst [vmem:[%s2424_s29 + $0x158] sm:$0xff] %v283_v43  ;;  %v287_v45 = vld [vmem:[%s2419_s28 + $0x2c8] sm:$0xff]  ;;  %v289_v46 = vld [vmem:[%s2419_s28 + $0x2d0] sm:$0xff] }
  0x2c   : > { %286 = vst [vmem:[%s2424_s29 + $0x160] sm:$0xff] %v285_v44  ;;  %v291_v47 = vld [vmem:[%s2419_s28 + $0x2d8] sm:$0xff]  ;;  %288 = vst [vmem:[%s2424_s29 + $0x168] sm:$0xff] %v287_v45  ;;  %v293_v48 = vld [vmem:[%s2419_s28 + $0x300] sm:$0xff] }
  0x2d   : > { %290 = vst [vmem:[%s2424_s29 + $0x170] sm:$0xff] %v289_v46  ;;  %292 = vst [vmem:[%s2424_s29 + $0x178] sm:$0xff] %v291_v47  ;;  %v295_v49 = vld [vmem:[%s2419_s28 + $0x308] sm:$0xff]  ;;  %v297_v50 = vld [vmem:[%s2419_s28 + $0x310] sm:$0xff] }
  0x2e   : > { %294 = vst [vmem:[%s2424_s29 + $0x180] sm:$0xff] %v293_v48  ;;  %296 = vst [vmem:[%s2424_s29 + $0x188] sm:$0xff] %v295_v49  ;;  %v299_v51 = vld [vmem:[%s2419_s28 + $0x318] sm:$0xff]  ;;  %v301_v52 = vld [vmem:[%s2419_s28 + $0x340] sm:$0xff] }
  0x2f   : > { %298 = vst [vmem:[%s2424_s29 + $0x190] sm:$0xff] %v297_v50  ;;  %v303_v53 = vld [vmem:[%s2419_s28 + $0x348] sm:$0xff]  ;;  %300 = vst [vmem:[%s2424_s29 + $0x198] sm:$0xff] %v299_v51  ;;  %v305_v54 = vld [vmem:[%s2419_s28 + $0x350] sm:$0xff] }
  0x30   : > { %302 = vst [vmem:[%s2424_s29 + $0x1a0] sm:$0xff] %v301_v52  ;;  %304 = vst [vmem:[%s2424_s29 + $0x1a8] sm:$0xff] %v303_v53  ;;  %v307_v55 = vld [vmem:[%s2419_s28 + $0x358] sm:$0xff]  ;;  %v309_v56 = vld [vmem:[%s2419_s28 + $0x380] sm:$0xff] }
  0x31   : > { %306 = vst [vmem:[%s2424_s29 + $0x1b0] sm:$0xff] %v305_v54  ;;  %308 = vst [vmem:[%s2424_s29 + $0x1b8] sm:$0xff] %v307_v55  ;;  %v311_v57 = vld [vmem:[%s2419_s28 + $0x388] sm:$0xff]  ;;  %v313_v58 = vld [vmem:[%s2419_s28 + $0x390] sm:$0xff] }
  0x32   : > { %310 = vst [vmem:[%s2424_s29 + $0x1c0] sm:$0xff] %v309_v56  ;;  %v315_v59 = vld [vmem:[%s2419_s28 + $0x398] sm:$0xff]  ;;  %312 = vst [vmem:[%s2424_s29 + $0x1c8] sm:$0xff] %v311_v57  ;;  %v317_v60 = vld [vmem:[%s2419_s28 + $0x3c0] sm:$0xff] }
  0x33   : > { %314 = vst [vmem:[%s2424_s29 + $0x1d0] sm:$0xff] %v313_v58  ;;  %316 = vst [vmem:[%s2424_s29 + $0x1d8] sm:$0xff] %v315_v59  ;;  %v319_v61 = vld [vmem:[%s2419_s28 + $0x3c8] sm:$0xff]  ;;  %v321_v62 = vld [vmem:[%s2419_s28 + $0x3d0] sm:$0xff] }
  0x34   : > { %318 = vst [vmem:[%s2424_s29 + $0x1e0] sm:$0xff] %v317_v60  ;;  %320 = vst [vmem:[%s2424_s29 + $0x1e8] sm:$0xff] %v319_v61  ;;  %v323_v63 = vld [vmem:[%s2419_s28 + $0x3d8] sm:$0xff]  ;;  %v325_v0 = vld [vmem:[%s2419_s28 + $0x400] sm:$0xff] }
  0x35   : > { %322 = vst [vmem:[%s2424_s29 + $0x1f0] sm:$0xff] %v321_v62  ;;  %v327_v1 = vld [vmem:[%s2419_s28 + $0x408] sm:$0xff]  ;;  %324 = vst [vmem:[%s2424_s29 + $0x1f8] sm:$0xff] %v323_v63  ;;  %v329_v2 = vld [vmem:[%s2419_s28 + $0x410] sm:$0xff] }
  0x36   : > { %326 = vst [vmem:[%s2424_s29 + $0x200] sm:$0xff] %v325_v0  ;;  %328 = vst [vmem:[%s2424_s29 + $0x208] sm:$0xff] %v327_v1  ;;  %v331_v3 = vld [vmem:[%s2419_s28 + $0x418] sm:$0xff]  ;;  %v333_v4 = vld [vmem:[%s2419_s28 + $0x440] sm:$0xff] }
  0x37   : > { %330 = vst [vmem:[%s2424_s29 + $0x210] sm:$0xff] %v329_v2  ;;  %332 = vst [vmem:[%s2424_s29 + $0x218] sm:$0xff] %v331_v3  ;;  %v335_v5 = vld [vmem:[%s2419_s28 + $0x448] sm:$0xff]  ;;  %v337_v6 = vld [vmem:[%s2419_s28 + $0x450] sm:$0xff] }
  0x38   : > { %334 = vst [vmem:[%s2424_s29 + $0x220] sm:$0xff] %v333_v4  ;;  %v339_v7 = vld [vmem:[%s2419_s28 + $0x458] sm:$0xff]  ;;  %336 = vst [vmem:[%s2424_s29 + $0x228] sm:$0xff] %v335_v5  ;;  %v341_v8 = vld [vmem:[%s2419_s28 + $0x480] sm:$0xff] }
  0x39   : > { %338 = vst [vmem:[%s2424_s29 + $0x230] sm:$0xff] %v337_v6  ;;  %340 = vst [vmem:[%s2424_s29 + $0x238] sm:$0xff] %v339_v7  ;;  %v343_v9 = vld [vmem:[%s2419_s28 + $0x488] sm:$0xff]  ;;  %v345_v10 = vld [vmem:[%s2419_s28 + $0x490] sm:$0xff] }
  0x3a   : > { %342 = vst [vmem:[%s2424_s29 + $0x240] sm:$0xff] %v341_v8  ;;  %344 = vst [vmem:[%s2424_s29 + $0x248] sm:$0xff] %v343_v9  ;;  %v347_v11 = vld [vmem:[%s2419_s28 + $0x498] sm:$0xff]  ;;  %v349_v12 = vld [vmem:[%s2419_s28 + $0x4c0] sm:$0xff] }
  0x3b   : > { %346 = vst [vmem:[%s2424_s29 + $0x250] sm:$0xff] %v345_v10  ;;  %v351_v13 = vld [vmem:[%s2419_s28 + $0x4c8] sm:$0xff]  ;;  %348 = vst [vmem:[%s2424_s29 + $0x258] sm:$0xff] %v347_v11  ;;  %v353_v14 = vld [vmem:[%s2419_s28 + $0x4d0] sm:$0xff] }
  0x3c   : > { %350 = vst [vmem:[%s2424_s29 + $0x260] sm:$0xff] %v349_v12  ;;  %352 = vst [vmem:[%s2424_s29 + $0x268] sm:$0xff] %v351_v13  ;;  %v355_v15 = vld [vmem:[%s2419_s28 + $0x4d8] sm:$0xff]  ;;  %v357_v16 = vld [vmem:[%s2419_s28 + $0x500] sm:$0xff] }
  0x3d   : > { %354 = vst [vmem:[%s2424_s29 + $0x270] sm:$0xff] %v353_v14  ;;  %356 = vst [vmem:[%s2424_s29 + $0x278] sm:$0xff] %v355_v15  ;;  %v359_v17 = vld [vmem:[%s2419_s28 + $0x508] sm:$0xff]  ;;  %v361_v18 = vld [vmem:[%s2419_s28 + $0x510] sm:$0xff] }
  0x3e   : > { %358 = vst [vmem:[%s2424_s29 + $0x280] sm:$0xff] %v357_v16  ;;  %v363_v19 = vld [vmem:[%s2419_s28 + $0x518] sm:$0xff]  ;;  %360 = vst [vmem:[%s2424_s29 + $0x288] sm:$0xff] %v359_v17  ;;  %v365_v20 = vld [vmem:[%s2419_s28 + $0x540] sm:$0xff] }
  0x3f   : > { %362 = vst [vmem:[%s2424_s29 + $0x290] sm:$0xff] %v361_v18  ;;  %364 = vst [vmem:[%s2424_s29 + $0x298] sm:$0xff] %v363_v19  ;;  %v367_v21 = vld [vmem:[%s2419_s28 + $0x548] sm:$0xff]  ;;  %v369_v22 = vld [vmem:[%s2419_s28 + $0x550] sm:$0xff] }
  0x40   : > { %366 = vst [vmem:[%s2424_s29 + $0x2a0] sm:$0xff] %v365_v20  ;;  %368 = vst [vmem:[%s2424_s29 + $0x2a8] sm:$0xff] %v367_v21  ;;  %v371_v23 = vld [vmem:[%s2419_s28 + $0x558] sm:$0xff]  ;;  %v373_v24 = vld [vmem:[%s2419_s28 + $0x580] sm:$0xff] }
  0x41   : > { %370 = vst [vmem:[%s2424_s29 + $0x2b0] sm:$0xff] %v369_v22  ;;  %v375_v25 = vld [vmem:[%s2419_s28 + $0x588] sm:$0xff]  ;;  %372 = vst [vmem:[%s2424_s29 + $0x2b8] sm:$0xff] %v371_v23  ;;  %v377_v26 = vld [vmem:[%s2419_s28 + $0x590] sm:$0xff] }
  0x42   : > { %374 = vst [vmem:[%s2424_s29 + $0x2c0] sm:$0xff] %v373_v24  ;;  %376 = vst [vmem:[%s2424_s29 + $0x2c8] sm:$0xff] %v375_v25  ;;  %v379_v27 = vld [vmem:[%s2419_s28 + $0x598] sm:$0xff]  ;;  %v381_v28 = vld [vmem:[%s2419_s28 + $0x5c0] sm:$0xff] }
  0x43   : > { %378 = vst [vmem:[%s2424_s29 + $0x2d0] sm:$0xff] %v377_v26  ;;  %380 = vst [vmem:[%s2424_s29 + $0x2d8] sm:$0xff] %v379_v27  ;;  %v383_v29 = vld [vmem:[%s2419_s28 + $0x5c8] sm:$0xff]  ;;  %v385_v30 = vld [vmem:[%s2419_s28 + $0x5d0] sm:$0xff] }
  0x44   : > { %382 = vst [vmem:[%s2424_s29 + $0x2e0] sm:$0xff] %v381_v28  ;;  %v387_v31 = vld [vmem:[%s2419_s28 + $0x5d8] sm:$0xff]  ;;  %384 = vst [vmem:[%s2424_s29 + $0x2e8] sm:$0xff] %v383_v29  ;;  %v389_v32 = vld [vmem:[%s2419_s28 + $0x600] sm:$0xff] }
  0x45   : > { %386 = vst [vmem:[%s2424_s29 + $0x2f0] sm:$0xff] %v385_v30  ;;  %388 = vst [vmem:[%s2424_s29 + $0x2f8] sm:$0xff] %v387_v31  ;;  %v391_v33 = vld [vmem:[%s2419_s28 + $0x608] sm:$0xff]  ;;  %v393_v34 = vld [vmem:[%s2419_s28 + $0x610] sm:$0xff] }
  0x46   : > { %390 = vst [vmem:[%s2424_s29 + $0x300] sm:$0xff] %v389_v32  ;;  %392 = vst [vmem:[%s2424_s29 + $0x308] sm:$0xff] %v391_v33  ;;  %v395_v35 = vld [vmem:[%s2419_s28 + $0x618] sm:$0xff]  ;;  %v397_v36 = vld [vmem:[%s2419_s28 + $0x640] sm:$0xff] }
  0x47   : > { %394 = vst [vmem:[%s2424_s29 + $0x310] sm:$0xff] %v393_v34  ;;  %v399_v37 = vld [vmem:[%s2419_s28 + $0x648] sm:$0xff]  ;;  %396 = vst [vmem:[%s2424_s29 + $0x318] sm:$0xff] %v395_v35  ;;  %v401_v38 = vld [vmem:[%s2419_s28 + $0x650] sm:$0xff] }
  0x48   : > { %398 = vst [vmem:[%s2424_s29 + $0x320] sm:$0xff] %v397_v36  ;;  %400 = vst [vmem:[%s2424_s29 + $0x328] sm:$0xff] %v399_v37  ;;  %v403_v39 = vld [vmem:[%s2419_s28 + $0x658] sm:$0xff]  ;;  %v405_v40 = vld [vmem:[%s2419_s28 + $0x680] sm:$0xff] }
  0x49   : > { %402 = vst [vmem:[%s2424_s29 + $0x330] sm:$0xff] %v401_v38  ;;  %404 = vst [vmem:[%s2424_s29 + $0x338] sm:$0xff] %v403_v39  ;;  %v407_v41 = vld [vmem:[%s2419_s28 + $0x688] sm:$0xff]  ;;  %v409_v42 = vld [vmem:[%s2419_s28 + $0x690] sm:$0xff] }
  0x4a   : > { %406 = vst [vmem:[%s2424_s29 + $0x340] sm:$0xff] %v405_v40  ;;  %v411_v43 = vld [vmem:[%s2419_s28 + $0x698] sm:$0xff]  ;;  %408 = vst [vmem:[%s2424_s29 + $0x348] sm:$0xff] %v407_v41  ;;  %v413_v44 = vld [vmem:[%s2419_s28 + $0x6c0] sm:$0xff] }
  0x4b   : > { %410 = vst [vmem:[%s2424_s29 + $0x350] sm:$0xff] %v409_v42  ;;  %412 = vst [vmem:[%s2424_s29 + $0x358] sm:$0xff] %v411_v43  ;;  %v415_v45 = vld [vmem:[%s2419_s28 + $0x6c8] sm:$0xff]  ;;  %v417_v46 = vld [vmem:[%s2419_s28 + $0x6d0] sm:$0xff] }
  0x4c   : > { %414 = vst [vmem:[%s2424_s29 + $0x360] sm:$0xff] %v413_v44  ;;  %416 = vst [vmem:[%s2424_s29 + $0x368] sm:$0xff] %v415_v45  ;;  %v419_v47 = vld [vmem:[%s2419_s28 + $0x6d8] sm:$0xff]  ;;  %v421_v48 = vld [vmem:[%s2419_s28 + $0x700] sm:$0xff] }
  0x4d   : > { %418 = vst [vmem:[%s2424_s29 + $0x370] sm:$0xff] %v417_v46  ;;  %v423_v49 = vld [vmem:[%s2419_s28 + $0x708] sm:$0xff]  ;;  %420 = vst [vmem:[%s2424_s29 + $0x378] sm:$0xff] %v419_v47  ;;  %v425_v50 = vld [vmem:[%s2419_s28 + $0x710] sm:$0xff] }
  0x4e   : > { %422 = vst [vmem:[%s2424_s29 + $0x380] sm:$0xff] %v421_v48  ;;  %424 = vst [vmem:[%s2424_s29 + $0x388] sm:$0xff] %v423_v49  ;;  %v427_v51 = vld [vmem:[%s2419_s28 + $0x718] sm:$0xff]  ;;  %v429_v52 = vld [vmem:[%s2419_s28 + $0x740] sm:$0xff] }
  0x4f   : > { %426 = vst [vmem:[%s2424_s29 + $0x390] sm:$0xff] %v425_v50  ;;  %428 = vst [vmem:[%s2424_s29 + $0x398] sm:$0xff] %v427_v51  ;;  %v431_v53 = vld [vmem:[%s2419_s28 + $0x748] sm:$0xff]  ;;  %v433_v54 = vld [vmem:[%s2419_s28 + $0x750] sm:$0xff] }
  0x50   : > { %430 = vst [vmem:[%s2424_s29 + $0x3a0] sm:$0xff] %v429_v52  ;;  %v435_v55 = vld [vmem:[%s2419_s28 + $0x758] sm:$0xff]  ;;  %432 = vst [vmem:[%s2424_s29 + $0x3a8] sm:$0xff] %v431_v53  ;;  %v437_v56 = vld [vmem:[%s2419_s28 + $0x780] sm:$0xff] }
  0x51   : > { %434 = vst [vmem:[%s2424_s29 + $0x3b0] sm:$0xff] %v433_v54  ;;  %436 = vst [vmem:[%s2424_s29 + $0x3b8] sm:$0xff] %v435_v55  ;;  %v439_v57 = vld [vmem:[%s2419_s28 + $0x788] sm:$0xff]  ;;  %v441_v58 = vld [vmem:[%s2419_s28 + $0x790] sm:$0xff] }
  0x52   : > { %438 = vst [vmem:[%s2424_s29 + $0x3c0] sm:$0xff] %v437_v56  ;;  %440 = vst [vmem:[%s2424_s29 + $0x3c8] sm:$0xff] %v439_v57  ;;  %v443_v59 = vld [vmem:[%s2419_s28 + $0x798] sm:$0xff]  ;;  %v445_v60 = vld [vmem:[%s2419_s28 + $0x7c0] sm:$0xff] }
  0x53   : > { %442 = vst [vmem:[%s2424_s29 + $0x3d0] sm:$0xff] %v441_v58  ;;  %v447_v61 = vld [vmem:[%s2419_s28 + $0x7c8] sm:$0xff]  ;;  %444 = vst [vmem:[%s2424_s29 + $0x3d8] sm:$0xff] %v443_v59  ;;  %v449_v62 = vld [vmem:[%s2419_s28 + $0x7d0] sm:$0xff] }
  0x54   : > { %446 = vst [vmem:[%s2424_s29 + $0x3e0] sm:$0xff] %v445_v60  ;;  %448 = vst [vmem:[%s2424_s29 + $0x3e8] sm:$0xff] %v447_v61  ;;  %v451_v63 = vld [vmem:[%s2419_s28 + $0x7d8] sm:$0xff] }
  0x55   : > { %450 = vst [vmem:[%s2424_s29 + $0x3f0] sm:$0xff] %v449_v62  ;;  %452 = vst [vmem:[%s2424_s29 + $0x3f8] sm:$0xff] %v451_v63 }
  0x56 PF: > { %p2090_p8 = scmp.ge.s32.totalorder %s2349_s16, 1  ;;  %p465_p9 = scmp.lt.s32.totalorder %s2349_s16, 3 }
  0x58   : > { %p466_p10 = pnand %p2090_p8, %p465_p9 }
  0x59   : > { %s472_s30 = sand.u32 (!%p466_p10), 1, %s2333_s12   ;;  %v2685_v0 = vld [vmem:[%s2935_s0 + $0x4] ss:$8 sps:$4 sm:$0xff] (!%p466_p10)   ;;  %s2093_s20 = sshll.u32 (!%p466_p10), %s2341_s14, 3 }
  0x5a   : > { %469 = sbr.rel (%p466_p10) target bundleno = 462 (0x1ce), region = 51  ;;  %s2091_s6 = sshll.u32 (!%p466_p10), %s472_s30, 10  ;;  %1421 = vmatprep.mubr.bf16.mxu0 (!%p466_p10), %v2685_v0  ;;  %1474 = vmatprep.mubr.bf16.mxu1 (!%p466_p10), %v2685_v0 }
  0x5b   : > { %s2691_s7 = scalar_lea.vmem (!%p466_p10), [#allocation3], %s2091_s6  ;;  %p523_p11 = scmp.lt.s32.totalorder (!%p466_p10), %s2093_s20, 15 }
  0x5c   : > { %v601_v1 = vld [vmem:[%s2691_s7] sm:$0xff] (!%p466_p10)  ;;  %v602_v3 = vld [vmem:[%s2691_s7 + $0x8] sm:$0xff] (!%p466_p10)  ;;  %s2092_s26 = sshll.u32 (!%p466_p10), %s472_s30, 7 }
  0x5d   : > { %v605_v2 = vld [vmem:[%s2691_s7 + $0x20] sm:$0xff] (!%p466_p10)  ;;  %v606_v5 = vld [vmem:[%s2691_s7 + $0x28] sm:$0xff] (!%p466_p10)  ;;  %s2864_s12 = scalar_lea.vmem (!%p466_p10), [#allocation4], %s2092_s26 }
  0x5e   : > { %v2099_v4 = vcombine.high (!%p466_p10), %v601_v1, %v605_v2  ;;  %v2098_v6 = vcombine.low (!%p466_p10), %v601_v1, %v605_v2  ;;  %v609_v7 = vld [vmem:[%s2691_s7 + $0x40] sm:$0xff] (!%p466_p10)  ;;  %v2101_v9 = vcombine.high (!%p466_p10), %v602_v3, %v606_v5  ;;  %v2100_v10 = vcombine.low (!%p466_p10), %v602_v3, %v606_v5  ;;  %v610_v12 = vld [vmem:[%s2691_s7 + $0x48] sm:$0xff] (!%p466_p10) }
  0x5f   : > { %v613_v8 = vld [vmem:[%s2691_s7 + $0x60] sm:$0xff] (!%p466_p10)  ;;  %v614_v13 = vld [vmem:[%s2691_s7 + $0x68] sm:$0xff] (!%p466_p10) }
  0x60   : > { %v2107_v11 = vcombine.high (!%p466_p10), %v609_v7, %v613_v8  ;;  %v617_v14 = vld [vmem:[%s2691_s7 + $0x80] sm:$0xff] (!%p466_p10)  ;;  %1389 = vmatprep.subr.bf16.mxu0 (!%p466_p10), %v2099_v4  ;;  %v2109_v15 = vcombine.high (!%p466_p10), %v610_v12, %v614_v13  ;;  %v618_v17 = vld [vmem:[%s2691_s7 + $0x88] sm:$0xff] (!%p466_p10)  ;;  %1442 = vmatprep.subr.bf16.mxu1 (!%p466_p10), %v2101_v9  ;;  %v2106_v19 = vcombine.low (!%p466_p10), %v609_v7, %v613_v8 }
  0x61   : > { %v621_v16 = vld [vmem:[%s2691_s7 + $0xa0] sm:$0xff]  ;;  %v622_v18 = vld [vmem:[%s2691_s7 + $0xa8] sm:$0xff]  ;;  %1390 = vmatpush1.bf16.msra.mxu0 %v2098_v6  ;;  %1443 = vmatpush1.bf16.msra.mxu1 %v2100_v10  ;;  %v2108_v20 = vcombine.low %v610_v12, %v614_v13  ;;  %s2947_s20 = smov (!%p523_p11, %s2093_s20), 15  ;;  %s2264_s27 = sshll.u32 (%p2406_p6), %s2341_s14, 5 }
  0x62   : > { %1391 = vmatprep.subr.bf16.mxu0 %v2107_v11  ;;  %v2115_v21 = vcombine.high %v617_v14, %v621_v16  ;;  %1444 = vmatprep.subr.bf16.mxu1 %v2109_v15  ;;  %v2117_v22 = vcombine.high %v618_v17, %v622_v18  ;;  %v625_v23 = vld [vmem:[%s2691_s7 + $0xc0] sm:$0xff]  ;;  %v626_v25 = vld [vmem:[%s2691_s7 + $0xc8] sm:$0xff]  ;;  %v2114_v27 = vcombine.low %v617_v14, %v621_v16  ;;  %s525_s25 = scalar_lea.vmem %s2937_s2, %s2947_s20  ;;  %s1930_s30 = scalar_lea.vmem (%p2406_p6), %s2938_s3, %s2264_s27 }
  0x63   : > { %v629_v24 = vld [vmem:[%s2691_s7 + $0xe0] sm:$0xff]  ;;  %v630_v26 = vld [vmem:[%s2691_s7 + $0xe8] sm:$0xff]  ;;  %v2116_v28 = vcombine.low %v618_v17, %v622_v18 }
  0x64   : > { %v2123_v29 = vcombine.high %v625_v23, %v629_v24  ;;  %v2125_v30 = vcombine.high %v626_v25, %v630_v26  ;;  %v633_v31 = vld [vmem:[%s2691_s7 + $0x100] sm:$0xff]  ;;  %v634_v33 = vld [vmem:[%s2691_s7 + $0x108] sm:$0xff]  ;;  %v2122_v35 = vcombine.low %v625_v23, %v629_v24  ;;  %v2124_v36 = vcombine.low %v626_v25, %v630_v26 }
  0x65   : > { %1392 = vmatpush1.bf16.msra.mxu0 %v2106_v19  ;;  %1445 = vmatpush1.bf16.msra.mxu1 %v2108_v20  ;;  %v637_v32 = vld [vmem:[%s2691_s7 + $0x120] sm:$0xff]  ;;  %v638_v34 = vld [vmem:[%s2691_s7 + $0x128] sm:$0xff] }
  0x66   : > { %1393 = vmatprep.subr.bf16.mxu0 %v2115_v21  ;;  %1446 = vmatprep.subr.bf16.mxu1 %v2117_v22  ;;  %v2131_v37 = vcombine.high %v633_v31, %v637_v32  ;;  %v2133_v38 = vcombine.high %v634_v33, %v638_v34  ;;  %v641_v39 = vld [vmem:[%s2691_s7 + $0x140] sm:$0xff]  ;;  %v642_v41 = vld [vmem:[%s2691_s7 + $0x148] sm:$0xff]  ;;  %v2130_v43 = vcombine.low %v633_v31, %v637_v32 }
  0x67   : > { %v645_v40 = vld [vmem:[%s2691_s7 + $0x160] sm:$0xff]  ;;  %v646_v42 = vld [vmem:[%s2691_s7 + $0x168] sm:$0xff]  ;;  %v2132_v44 = vcombine.low %v634_v33, %v638_v34 }
  0x68   : > { %v2139_v45 = vcombine.high %v641_v39, %v645_v40  ;;  %v2141_v46 = vcombine.high %v642_v41, %v646_v42  ;;  %v649_v47 = vld [vmem:[%s2691_s7 + $0x180] sm:$0xff]  ;;  %v650_v49 = vld [vmem:[%s2691_s7 + $0x188] sm:$0xff]  ;;  %v2138_v51 = vcombine.low %v641_v39, %v645_v40  ;;  %v2140_v52 = vcombine.low %v642_v41, %v646_v42 }
  0x69   : > { %1394 = vmatpush1.bf16.msra.mxu0 %v2114_v27  ;;  %1447 = vmatpush1.bf16.msra.mxu1 %v2116_v28  ;;  %v653_v48 = vld [vmem:[%s2691_s7 + $0x1a0] sm:$0xff]  ;;  %v654_v50 = vld [vmem:[%s2691_s7 + $0x1a8] sm:$0xff] }
  0x6a   : > { %1395 = vmatprep.subr.bf16.mxu0 %v2123_v29  ;;  %1448 = vmatprep.subr.bf16.mxu1 %v2125_v30  ;;  %v2147_v53 = vcombine.high %v649_v47, %v653_v48  ;;  %v2149_v54 = vcombine.high %v650_v49, %v654_v50  ;;  %v657_v55 = vld [vmem:[%s2691_s7 + $0x1c0] sm:$0xff]  ;;  %v658_v57 = vld [vmem:[%s2691_s7 + $0x1c8] sm:$0xff]  ;;  %v2146_v59 = vcombine.low %v649_v47, %v653_v48 }
  0x6b   : > { %v661_v56 = vld [vmem:[%s2691_s7 + $0x1e0] sm:$0xff]  ;;  %v662_v58 = vld [vmem:[%s2691_s7 + $0x1e8] sm:$0xff]  ;;  %v2148_v60 = vcombine.low %v650_v49, %v654_v50 }
  0x6c   : > { %v2155_v61 = vcombine.high %v657_v55, %v661_v56  ;;  %v2157_v62 = vcombine.high %v658_v57, %v662_v58  ;;  %v665_v63 = vld [vmem:[%s2691_s7 + $0x200] sm:$0xff]  ;;  %v666_v2 = vld [vmem:[%s2691_s7 + $0x208] sm:$0xff]  ;;  %v2154_v4 = vcombine.low %v657_v55, %v661_v56  ;;  %v2156_v5 = vcombine.low %v658_v57, %v662_v58 }
  0x6d   : > { %1396 = vmatpush1.bf16.msra.mxu0 %v2122_v35  ;;  %1449 = vmatpush1.bf16.msra.mxu1 %v2124_v36  ;;  %v669_v1 = vld [vmem:[%s2691_s7 + $0x220] sm:$0xff]  ;;  %v670_v3 = vld [vmem:[%s2691_s7 + $0x228] sm:$0xff] }
  0x6e   : > { %1397 = vmatprep.subr.bf16.mxu0 %v2131_v37  ;;  %1450 = vmatprep.subr.bf16.mxu1 %v2133_v38  ;;  %v2163_v6 = vcombine.high %v665_v63, %v669_v1  ;;  %v2165_v7 = vcombine.high %v666_v2, %v670_v3  ;;  %v673_v8 = vld [vmem:[%s2691_s7 + $0x240] sm:$0xff]  ;;  %v674_v10 = vld [vmem:[%s2691_s7 + $0x248] sm:$0xff]  ;;  %v2162_v12 = vcombine.low %v665_v63, %v669_v1  ;;  %v603_v1 = vld [vmem:[%s2691_s7 + $0x10] sm:$0xff] }
  0x6f   : > { %v677_v9 = vld [vmem:[%s2691_s7 + $0x260] sm:$0xff]  ;;  %v678_v11 = vld [vmem:[%s2691_s7 + $0x268] sm:$0xff]  ;;  %v2164_v13 = vcombine.low %v666_v2, %v670_v3  ;;  %v607_v2 = vld [vmem:[%s2691_s7 + $0x30] sm:$0xff] }
  0x70   : > { %v2171_v14 = vcombine.high %v673_v8, %v677_v9  ;;  %v2173_v15 = vcombine.high %v674_v10, %v678_v11  ;;  %v681_v16 = vld [vmem:[%s2691_s7 + $0x280] sm:$0xff]  ;;  %v682_v18 = vld [vmem:[%s2691_s7 + $0x288] sm:$0xff]  ;;  %v2170_v20 = vcombine.low %v673_v8, %v677_v9  ;;  %v2172_v21 = vcombine.low %v674_v10, %v678_v11  ;;  %v604_v3 = vld [vmem:[%s2691_s7 + $0x18] sm:$0xff] }
  0x71   : > { %1398 = vmatpush1.bf16.msra.mxu0 %v2130_v43  ;;  %1451 = vmatpush1.bf16.msra.mxu1 %v2132_v44  ;;  %v685_v17 = vld [vmem:[%s2691_s7 + $0x2a0] sm:$0xff]  ;;  %v686_v19 = vld [vmem:[%s2691_s7 + $0x2a8] sm:$0xff]  ;;  %v611_v9 = vld [vmem:[%s2691_s7 + $0x50] sm:$0xff] }
  0x72   : > { %1399 = vmatprep.subr.bf16.mxu0 %v2139_v45  ;;  %1452 = vmatprep.subr.bf16.mxu1 %v2141_v46  ;;  %v2179_v22 = vcombine.high %v681_v16, %v685_v17  ;;  %v2181_v23 = vcombine.high %v682_v18, %v686_v19  ;;  %v689_v24 = vld [vmem:[%s2691_s7 + $0x2c0] sm:$0xff]  ;;  %v690_v26 = vld [vmem:[%s2691_s7 + $0x2c8] sm:$0xff]  ;;  %v2178_v28 = vcombine.low %v681_v16, %v685_v17  ;;  %v615_v10 = vld [vmem:[%s2691_s7 + $0x70] sm:$0xff] }
  0x73   : > { %v693_v25 = vld [vmem:[%s2691_s7 + $0x2e0] sm:$0xff]  ;;  %v694_v27 = vld [vmem:[%s2691_s7 + $0x2e8] sm:$0xff]  ;;  %v2180_v29 = vcombine.low %v682_v18, %v686_v19  ;;  %v2111_v16 = vcombine.high %v611_v9, %v615_v10  ;;  %v619_v18 = vld [vmem:[%s2691_s7 + $0x90] sm:$0xff] }
  0x74   : > { %v2187_v30 = vcombine.high %v689_v24, %v693_v25  ;;  %v2189_v31 = vcombine.high %v690_v26, %v694_v27  ;;  %v697_v32 = vld [vmem:[%s2691_s7 + $0x300] sm:$0xff]  ;;  %v698_v34 = vld [vmem:[%s2691_s7 + $0x308] sm:$0xff]  ;;  %v2186_v36 = vcombine.low %v689_v24, %v693_v25  ;;  %v2188_v37 = vcombine.low %v690_v26, %v694_v27  ;;  %v623_v19 = vld [vmem:[%s2691_s7 + $0xb0] sm:$0xff] }
  0x75   : > { %1400 = vmatpush1.bf16.msra.mxu0 %v2138_v51  ;;  %1453 = vmatpush1.bf16.msra.mxu1 %v2140_v52  ;;  %v701_v33 = vld [vmem:[%s2691_s7 + $0x320] sm:$0xff]  ;;  %v702_v35 = vld [vmem:[%s2691_s7 + $0x328] sm:$0xff]  ;;  %v2119_v25 = vcombine.high %v619_v18, %v623_v19  ;;  %v627_v27 = vld [vmem:[%s2691_s7 + $0xd0] sm:$0xff] }
  0x76   : > { %1401 = vmatprep.subr.bf16.mxu0 %v2147_v53  ;;  %1454 = vmatprep.subr.bf16.mxu1 %v2149_v54  ;;  %v2195_v38 = vcombine.high %v697_v32, %v701_v33  ;;  %v2197_v39 = vcombine.high %v698_v34, %v702_v35  ;;  %v705_v40 = vld [vmem:[%s2691_s7 + $0x340] sm:$0xff]  ;;  %v706_v42 = vld [vmem:[%s2691_s7 + $0x348] sm:$0xff]  ;;  %v2194_v44 = vcombine.low %v697_v32, %v701_v33 }
  0x77   : > { %v709_v41 = vld [vmem:[%s2691_s7 + $0x360] sm:$0xff]  ;;  %v710_v43 = vld [vmem:[%s2691_s7 + $0x368] sm:$0xff]  ;;  %v2196_v45 = vcombine.low %v698_v34, %v702_v35  ;;  %v2118_v32 = vcombine.low %v619_v18, %v623_v19 }
  0x78   : > { %v2203_v46 = vcombine.high %v705_v40, %v709_v41  ;;  %v2205_v47 = vcombine.high %v706_v42, %v710_v43  ;;  %v713_v48 = vld [vmem:[%s2691_s7 + $0x380] sm:$0xff]  ;;  %v714_v50 = vld [vmem:[%s2691_s7 + $0x388] sm:$0xff]  ;;  %v2202_v52 = vcombine.low %v705_v40, %v709_v41  ;;  %v2204_v53 = vcombine.low %v706_v42, %v710_v43 }
  0x79   : > { %1402 = vmatpush1.bf16.msra.mxu0 %v2146_v59  ;;  %1455 = vmatpush1.bf16.msra.mxu1 %v2148_v60  ;;  %v717_v49 = vld [vmem:[%s2691_s7 + $0x3a0] sm:$0xff]  ;;  %v718_v51 = vld [vmem:[%s2691_s7 + $0x3a8] sm:$0xff] }
  0x7a   : > { %1403 = vmatprep.subr.bf16.mxu0 %v2155_v61  ;;  %1456 = vmatprep.subr.bf16.mxu1 %v2157_v62  ;;  %v2211_v54 = vcombine.high %v713_v48, %v717_v49  ;;  %v2213_v55 = vcombine.high %v714_v50, %v718_v51  ;;  %v721_v56 = vld [vmem:[%s2691_s7 + $0x3c0] sm:$0xff]  ;;  %v722_v58 = vld [vmem:[%s2691_s7 + $0x3c8] sm:$0xff]  ;;  %v2210_v60 = vcombine.low %v713_v48, %v717_v49 }
  0x7b   : > { %v725_v57 = vld [vmem:[%s2691_s7 + $0x3e0] sm:$0xff]  ;;  %v726_v59 = vld [vmem:[%s2691_s7 + $0x3e8] sm:$0xff]  ;;  %v2212_v61 = vcombine.low %v714_v50, %v718_v51 }
  0x7c   : > { %v2219_v62 = vcombine.high %v721_v56, %v725_v57  ;;  %v2221_v63 = vcombine.high %v722_v58, %v726_v59  ;;  %v2766_v11 = vld [vmem:[%s2935_s0] ss:$8 sps:$4 sm:$0xff]  }
  0x7d   : > { %1404 = vmatpush1.bf16.msra.mxu0 %v2154_v4  ;;  %1457 = vmatpush1.bf16.msra.mxu1 %v2156_v5  ;;  %v608_v4 = vld [vmem:[%s2691_s7 + $0x38] sm:$0xff]  ;;  %v2218_v5 = vcombine.low %v721_v56, %v725_v57 }
  0x7e   : > { %1405 = vmatprep.subr.bf16.mxu0 %v2163_v6  ;;  %1458 = vmatprep.subr.bf16.mxu1 %v2165_v7  ;;  %v2220_v6 = vcombine.low %v722_v58, %v726_v59  ;;  %v2103_v7 = vcombine.high %v603_v1, %v607_v2  ;;  %v2105_v8 = vcombine.high %v604_v3, %v608_v4  ;;  %v659_v59 = vld [vmem:[%s2691_s7 + $0x1d0] sm:$0xff] }
  0x81   : > { %1406 = vmatpush1.bf16.msra.mxu0 %v2162_v12  ;;  %1459 = vmatpush1.bf16.msra.mxu1 %v2164_v13  ;;  %v612_v12 = vld [vmem:[%s2691_s7 + $0x58] sm:$0xff] }
  0x82   : > { %1407 = vmatprep.subr.bf16.mxu0 %v2171_v14  ;;  %1460 = vmatprep.subr.bf16.mxu1 %v2173_v15  ;;  %v616_v13 = vld [vmem:[%s2691_s7 + $0x78] sm:$0xff]  ;;  %v2102_v14 = vcombine.low %v603_v1, %v607_v2  ;;  %v2104_v15 = vcombine.low %v604_v3, %v608_v4  ;;  %v667_v4 = vld [vmem:[%s2691_s7 + $0x210] sm:$0xff] }
  0x83   : > { %v2113_v17 = vcombine.high %v612_v12, %v616_v13  ;;  %v2112_v24 = vcombine.low %v612_v12, %v616_v13  ;;  %v675_v13 = vld [vmem:[%s2691_s7 + $0x250] sm:$0xff] }
  0x85   : > { %1408 = vmatpush1.bf16.msra.mxu0 %v2170_v20  ;;  %1461 = vmatpush1.bf16.msra.mxu1 %v2172_v21  ;;  %v2775_v20 = vld [vmem:[%s2935_s0 + $0x14] ss:$8 sps:$4 sm:$0xff]  }
  0x86   : > { %1409 = vmatprep.subr.bf16.mxu0 %v2179_v22  ;;  %1462 = vmatprep.subr.bf16.mxu1 %v2181_v23  ;;  %v620_v21 = vld [vmem:[%s2691_s7 + $0x98] sm:$0xff]  ;;  %v2110_v23 = vcombine.low %v611_v9, %v615_v10 }
  0x87   : > { %v624_v22 = vld [vmem:[%s2691_s7 + $0xb8] sm:$0xff] }
  0x88   : > { %v2121_v26 = vcombine.high %v620_v21, %v624_v22  ;;  %v2120_v33 = vcombine.low %v620_v21, %v624_v22  ;;  %v683_v22 = vld [vmem:[%s2691_s7 + $0x290] sm:$0xff] }
  0x89   : > { %1410 = vmatpush1.bf16.msra.mxu0 %v2178_v28  ;;  %1463 = vmatpush1.bf16.msra.mxu1 %v2180_v29  ;;  %v631_v28 = vld [vmem:[%s2691_s7 + $0xf0] sm:$0xff]  ;;  %v628_v29 = vld [vmem:[%s2691_s7 + $0xd8] sm:$0xff] }
  0x8a   : > { %1411 = vmatprep.subr.bf16.mxu0 %v2187_v30  ;;  %1464 = vmatprep.subr.bf16.mxu1 %v2189_v31  ;;  %v632_v30 = vld [vmem:[%s2691_s7 + $0xf8] sm:$0xff]  ;;  %v2127_v34 = vcombine.high %v627_v27, %v631_v28  ;;  %v2126_v40 = vcombine.low %v627_v27, %v631_v28 }
  0x8b   : > { %v2790_v31 = vld [vmem:[%s2935_s0 + $0x10] ss:$8 sps:$4 sm:$0xff]   ;;  %v2129_v35 = vcombine.high %v628_v29, %v632_v30  ;;  %v2128_v41 = vcombine.low %v628_v29, %v632_v30 }
  0x8c   : > { %v691_v30 = vld [vmem:[%s2691_s7 + $0x2d0] sm:$0xff] }
  0x8d   : > { %1412 = vmatpush1.bf16.msra.mxu0 %v2186_v36  ;;  %1465 = vmatpush1.bf16.msra.mxu1 %v2188_v37  ;;  %v635_v36 = vld [vmem:[%s2691_s7 + $0x110] sm:$0xff] }
  0x8e   : > { %1413 = vmatprep.subr.bf16.mxu0 %v2195_v38  ;;  %1466 = vmatprep.subr.bf16.mxu1 %v2197_v39  ;;  %v639_v37 = vld [vmem:[%s2691_s7 + $0x130] sm:$0xff]  ;;  %v636_v38 = vld [vmem:[%s2691_s7 + $0x118] sm:$0xff] }
  0x8f   : > { %v640_v39 = vld [vmem:[%s2691_s7 + $0x138] sm:$0xff]  ;;  %v2135_v42 = vcombine.high %v635_v36, %v639_v37  ;;  %v2134_v48 = vcombine.low %v635_v36, %v639_v37 }
  0x90   : > { %v2137_v43 = vcombine.high %v636_v38, %v640_v39  ;;  %v2136_v49 = vcombine.low %v636_v38, %v640_v39  ;;  %v699_v39 = vld [vmem:[%s2691_s7 + $0x310] sm:$0xff] }
  0x91   : > { %1414 = vmatpush1.bf16.msra.mxu0 %v2194_v44  ;;  %1467 = vmatpush1.bf16.msra.mxu1 %v2196_v45  ;;  %v643_v44 = vld [vmem:[%s2691_s7 + $0x150] sm:$0xff] }
  0x92   : > { %1415 = vmatprep.subr.bf16.mxu0 %v2203_v46  ;;  %1468 = vmatprep.subr.bf16.mxu1 %v2205_v47  ;;  %v647_v45 = vld [vmem:[%s2691_s7 + $0x170] sm:$0xff]  ;;  %v644_v46 = vld [vmem:[%s2691_s7 + $0x158] sm:$0xff] }
  0x93   : > { %v648_v47 = vld [vmem:[%s2691_s7 + $0x178] sm:$0xff]  ;;  %v2143_v50 = vcombine.high %v643_v44, %v647_v45  ;;  %v2142_v56 = vcombine.low %v643_v44, %v647_v45 }
  0x94   : > { %v2145_v51 = vcombine.high %v644_v46, %v648_v47 }
  0x95   : > { %1416 = vmatpush1.bf16.msra.mxu0 %v2202_v52  ;;  %1469 = vmatpush1.bf16.msra.mxu1 %v2204_v53  ;;  %v651_v52 = vld [vmem:[%s2691_s7 + $0x190] sm:$0xff] }
  0x96   : > { %1417 = vmatprep.subr.bf16.mxu0 %v2211_v54  ;;  %1470 = vmatprep.subr.bf16.mxu1 %v2213_v55  ;;  %v655_v53 = vld [vmem:[%s2691_s7 + $0x1b0] sm:$0xff]  ;;  %v652_v54 = vld [vmem:[%s2691_s7 + $0x198] sm:$0xff] }
  0x97   : > { %v656_v55 = vld [vmem:[%s2691_s7 + $0x1b8] sm:$0xff]  ;;  %v2151_v57 = vcombine.high %v651_v52, %v655_v53 }
  0x98   : > { %v2153_v58 = vcombine.high %v652_v54, %v656_v55  ;;  %v2152_v1 = vcombine.low %v652_v54, %v656_v55  ;;  %v715_v55 = vld [vmem:[%s2691_s7 + $0x390] sm:$0xff] }
  0x99   : > { %1418 = vmatpush1.bf16.msra.mxu0 %v2210_v60  ;;  %1471 = vmatpush1.bf16.msra.mxu1 %v2212_v61  ;;  %v663_v60 = vld [vmem:[%s2691_s7 + $0x1f0] sm:$0xff]  ;;  %v660_v61 = vld [vmem:[%s2691_s7 + $0x1d8] sm:$0xff] }
  0x9a   : > { %1419 = vmatprep.subr.bf16.mxu0 %v2219_v62  ;;  %1472 = vmatprep.subr.bf16.mxu1 %v2221_v63  ;;  %v664_v62 = vld [vmem:[%s2691_s7 + $0x1f8] sm:$0xff]  ;;  %v2150_v63 = vcombine.low %v651_v52, %v655_v53  ;;  %v2159_v2 = vcombine.high %v659_v59, %v663_v60 }
  0x9b   : > { %v2161_v3 = vcombine.high %v660_v61, %v664_v62  ;;  %v2160_v9 = vcombine.low %v660_v61, %v664_v62  ;;  %v723_v62 = vld [vmem:[%s2691_s7 + $0x3d0] sm:$0xff] }
  0x9d   : > { %1420 = vmatpush1.bf16.msra.mxu0 %v2218_v5  ;;  %1473 = vmatpush1.bf16.msra.mxu1 %v2220_v6  ;;  %v671_v5 = vld [vmem:[%s2691_s7 + $0x230] sm:$0xff]  ;;  %v668_v6 = vld [vmem:[%s2691_s7 + $0x218] sm:$0xff] }
  0x9e   : > { %1495 = vmatprep.subr.bf16.mxu0 %v2103_v7  ;;  %1548 = vmatprep.subr.bf16.mxu1 %v2105_v8  ;;  %v672_v7 = vld [vmem:[%s2691_s7 + $0x238] sm:$0xff]  ;;  %v2158_v8 = vcombine.low %v659_v59, %v663_v60  ;;  %v2167_v10 = vcombine.high %v667_v4, %v671_v5 }
  0x9f   : > { %v2169_v12 = vcombine.high %v668_v6, %v672_v7  ;;  %v2168_v18 = vcombine.low %v668_v6, %v672_v7 }
  0xa0   : > { %1422 = vmatmul.mubr.bf16.vlgmr.msra.gmra.mrb[0].mxu0 %v2766_v11  ;;  %1475 = vmatmul.mubr.bf16.vlgmr.msra.gmra.mrb[0].mxu1 %v2766_v11 }
  0xa1   : > { %1496 = vmatpush1.bf16.msra.mxu0 %v2102_v14  ;;  %1549 = vmatpush1.bf16.msra.mxu1 %v2104_v15  ;;  %v679_v14 = vld [vmem:[%s2691_s7 + $0x270] sm:$0xff]  ;;  %v676_v15 = vld [vmem:[%s2691_s7 + $0x258] sm:$0xff] }
  0xa2   : > { %1497 = vmatprep.subr.bf16.mxu0 %v2111_v16  ;;  %1550 = vmatprep.subr.bf16.mxu1 %v2113_v17  ;;  %v680_v16 = vld [vmem:[%s2691_s7 + $0x278] sm:$0xff]  ;;  %v2166_v17 = vcombine.low %v667_v4, %v671_v5  ;;  %v2175_v19 = vcombine.high %v675_v13, %v679_v14 }
  0xa3   : > { %1431 = vmatprep.mubr.bf16.mxu0 %v2775_v20  ;;  %1484 = vmatprep.mubr.bf16.mxu1 %v2775_v20  ;;  %v2177_v21 = vcombine.high %v676_v15, %v680_v16  ;;  %v2176_v27 = vcombine.low %v676_v15, %v680_v16 }
  0xa5   : > { %1498 = vmatpush1.bf16.msra.mxu0 %v2110_v23  ;;  %1551 = vmatpush1.bf16.msra.mxu1 %v2112_v24  ;;  %v687_v23 = vld [vmem:[%s2691_s7 + $0x2b0] sm:$0xff]  ;;  %v684_v24 = vld [vmem:[%s2691_s7 + $0x298] sm:$0xff] }
  0xa6   : > { %1499 = vmatprep.subr.bf16.mxu0 %v2119_v25  ;;  %1552 = vmatprep.subr.bf16.mxu1 %v2121_v26  ;;  %v688_v25 = vld [vmem:[%s2691_s7 + $0x2b8] sm:$0xff]  ;;  %v2174_v26 = vcombine.low %v675_v13, %v679_v14  ;;  %v2183_v28 = vcombine.high %v683_v22, %v687_v23 }
  0xa7   : > { %v2185_v29 = vcombine.high %v684_v24, %v688_v25  ;;  %v2184_v36 = vcombine.low %v684_v24, %v688_v25 }
  0xa8   : > { %1432 = vmatmul.mubr.bf16.gmra.mrb[4].mxu0 %v2790_v31  ;;  %1485 = vmatmul.mubr.bf16.gmra.mrb[4].mxu1 %v2790_v31 }
  0xa9   : > { %1500 = vmatpush1.bf16.msra.mxu0 %v2118_v32  ;;  %1553 = vmatpush1.bf16.msra.mxu1 %v2120_v33  ;;  %v695_v32 = vld [vmem:[%s2691_s7 + $0x2f0] sm:$0xff]  ;;  %v692_v33 = vld [vmem:[%s2691_s7 + $0x2d8] sm:$0xff] }
  0xaa   : > { %1501 = vmatprep.subr.bf16.mxu0 %v2127_v34  ;;  %1554 = vmatprep.subr.bf16.mxu1 %v2129_v35  ;;  %v696_v34 = vld [vmem:[%s2691_s7 + $0x2f8] sm:$0xff]  ;;  %v2182_v35 = vcombine.low %v683_v22, %v687_v23  ;;  %v2191_v37 = vcombine.high %v691_v30, %v695_v32 }
  0xab   : > { %1527 = vmatprep.mubr.bf16.mxu0 %v2685_v0  ;;  %1580 = vmatprep.mubr.bf16.mxu1 %v2685_v0  ;;  %v2144_v0 = vcombine.low %v644_v46, %v648_v47  ;;  %v2193_v38 = vcombine.high %v692_v33, %v696_v34  ;;  %v2192_v44 = vcombine.low %v692_v33, %v696_v34  ;;  %v707_v47 = vld [vmem:[%s2691_s7 + $0x350] sm:$0xff] }
  0xad   : > { %1502 = vmatpush1.bf16.msra.mxu0 %v2126_v40  ;;  %1555 = vmatpush1.bf16.msra.mxu1 %v2128_v41  ;;  %v703_v40 = vld [vmem:[%s2691_s7 + $0x330] sm:$0xff]  ;;  %v700_v41 = vld [vmem:[%s2691_s7 + $0x318] sm:$0xff] }
  0xae   : > { %1503 = vmatprep.subr.bf16.mxu0 %v2135_v42  ;;  %1556 = vmatprep.subr.bf16.mxu1 %v2137_v43  ;;  %v704_v42 = vld [vmem:[%s2691_s7 + $0x338] sm:$0xff]  ;;  %v2190_v43 = vcombine.low %v691_v30, %v695_v32  ;;  %v2199_v45 = vcombine.high %v699_v39, %v703_v40 }
  0xaf   : > { %v2201_v46 = vcombine.high %v700_v41, %v704_v42  ;;  %v2200_v52 = vcombine.low %v700_v41, %v704_v42 }
  0xb1   : > { %1504 = vmatpush1.bf16.msra.mxu0 %v2134_v48  ;;  %1557 = vmatpush1.bf16.msra.mxu1 %v2136_v49  ;;  %v711_v48 = vld [vmem:[%s2691_s7 + $0x370] sm:$0xff]  ;;  %v708_v49 = vld [vmem:[%s2691_s7 + $0x358] sm:$0xff] }
  0xb2   : > { %1505 = vmatprep.subr.bf16.mxu0 %v2143_v50  ;;  %1558 = vmatprep.subr.bf16.mxu1 %v2145_v51  ;;  %v712_v50 = vld [vmem:[%s2691_s7 + $0x378] sm:$0xff]  ;;  %v2198_v51 = vcombine.low %v699_v39, %v703_v40  ;;  %v2207_v53 = vcombine.high %v707_v47, %v711_v48 }
  0xb3   : > { %v2209_v54 = vcombine.high %v708_v49, %v712_v50  ;;  %v2208_v59 = vcombine.low %v708_v49, %v712_v50 }
  0xb5   : > { %1506 = vmatpush1.bf16.msra.mxu0 %v2142_v56  ;;  %1559 = vmatpush1.bf16.msra.mxu1 %v2144_v0  ;;  %v719_v56 = vld [vmem:[%s2691_s7 + $0x3b0] sm:$0xff]  ;;  %v716_v0 = vld [vmem:[%s2691_s7 + $0x398] sm:$0xff] }
  0xb6   : > { %1507 = vmatprep.subr.bf16.mxu0 %v2151_v57  ;;  %1560 = vmatprep.subr.bf16.mxu1 %v2153_v58  ;;  %v720_v57 = vld [vmem:[%s2691_s7 + $0x3b8] sm:$0xff]  ;;  %v2206_v58 = vcombine.low %v707_v47, %v711_v48  ;;  %v2215_v60 = vcombine.high %v715_v55, %v719_v56 }
  0xb7   : > { %v2217_v61 = vcombine.high %v716_v0, %v720_v57  ;;  %v2216_v4 = vcombine.low %v716_v0, %v720_v57 }
  0xb9   : > { %1508 = vmatpush1.bf16.msra.mxu0 %v2150_v63  ;;  %1561 = vmatpush1.bf16.msra.mxu1 %v2152_v1  ;;  %v727_v63 = vld [vmem:[%s2691_s7 + $0x3f0] sm:$0xff]  ;;  %v724_v1 = vld [vmem:[%s2691_s7 + $0x3d8] sm:$0xff] }
  0xba   : > { %1509 = vmatprep.subr.bf16.mxu0 %v2159_v2  ;;  %1562 = vmatprep.subr.bf16.mxu1 %v2161_v3  ;;  %v728_v2 = vld [vmem:[%s2691_s7 + $0x3f8] sm:$0xff]  ;;  %v2214_v3 = vcombine.low %v715_v55, %v719_v56  ;;  %v2223_v5 = vcombine.high %v723_v62, %v727_v63  ;;  %v2222_v7 = vcombine.low %v723_v62, %v727_v63 }
  0xbb   : > { %v2225_v6 = vcombine.high %v724_v1, %v728_v2 }
  0xbd   : > { %1510 = vmatpush1.bf16.msra.mxu0 %v2158_v8  ;;  %1563 = vmatpush1.bf16.msra.mxu1 %v2160_v9  ;;  %v2224_v8 = vcombine.low %v724_v1, %v728_v2  ;;  %v1702_v9 = vlaneseq }
  0xbe   : > { %1511 = vmatprep.subr.bf16.mxu0 %v2167_v10  ;;  %1564 = vmatprep.subr.bf16.mxu1 %v2169_v12 }
  0xbf   : > { %v1703_v10 = vshrl.u32 %v1702_v9, 7 }
  0xc1   : > { %1512 = vmatpush1.bf16.msra.mxu0 %v2166_v17  ;;  %1565 = vmatpush1.bf16.msra.mxu1 %v2168_v18  ;;  %v1720_v12 = vsub.s32 4, %v1703_v10  ;;  %v1728_v13 = vsub.s32 6, %v1703_v10  ;;  %v1724_v14 = vsub.s32 5, %v1703_v10  ;;  %v1732_v15 = vsub.s32 7, %v1703_v10 }
  0xc2   : > { %1513 = vmatprep.subr.bf16.mxu0 %v2175_v19  ;;  %1566 = vmatprep.subr.bf16.mxu1 %v2177_v21  ;;  %v1704_v18 = vsub.s32 0, %v1703_v10  ;;  %v1712_v19 = vsub.s32 2, %v1703_v10  ;;  %v1708_v21 = vsub.s32 1, %v1703_v10  ;;  %v1716_v22 = vsub.s32 3, %v1703_v10 }
  0xc5   : > { %1514 = vmatpush1.bf16.msra.mxu0 %v2174_v26  ;;  %1567 = vmatpush1.bf16.msra.mxu1 %v2176_v27 }
  0xc6   : > { %1515 = vmatprep.subr.bf16.mxu0 %v2183_v28  ;;  %1568 = vmatprep.subr.bf16.mxu1 %v2185_v29 }
  0xc9   : > { %1516 = vmatpush1.bf16.msra.mxu0 %v2182_v35  ;;  %1569 = vmatpush1.bf16.msra.mxu1 %v2184_v36 }
  0xca   : > { %1517 = vmatprep.subr.bf16.mxu0 %v2191_v37  ;;  %1570 = vmatprep.subr.bf16.mxu1 %v2193_v38 }
  0xcd   : > { %1518 = vmatpush1.bf16.msra.mxu0 %v2190_v43  ;;  %1571 = vmatpush1.bf16.msra.mxu1 %v2192_v44 }
  0xce   : > { %1519 = vmatprep.subr.bf16.mxu0 %v2199_v45  ;;  %1572 = vmatprep.subr.bf16.mxu1 %v2201_v46 }
  0xd1   : > { %1520 = vmatpush1.bf16.msra.mxu0 %v2198_v51  ;;  %1573 = vmatpush1.bf16.msra.mxu1 %v2200_v52 }
  0xd2   : > { %1521 = vmatprep.subr.bf16.mxu0 %v2207_v53  ;;  %1574 = vmatprep.subr.bf16.mxu1 %v2209_v54 }
  0xd5   : > { %1522 = vmatpush1.bf16.msra.mxu0 %v2206_v58  ;;  %1575 = vmatpush1.bf16.msra.mxu1 %v2208_v59 }
  0xd6   : > { %1523 = vmatprep.subr.bf16.mxu0 %v2215_v60  ;;  %1576 = vmatprep.subr.bf16.mxu1 %v2217_v61 }
  0xd9   : > { %1524 = vmatpush1.bf16.msra.mxu0 %v2214_v3  ;;  %1577 = vmatpush1.bf16.msra.mxu1 %v2216_v4 }
  0xda   : > { %1525 = vmatprep.subr.bf16.mxu0 %v2223_v5  ;;  %1578 = vmatprep.subr.bf16.mxu1 %v2225_v6 }
  0xdd   : > { %1526 = vmatpush1.bf16.msra.mxu0 %v2222_v7  ;;  %1579 = vmatpush1.bf16.msra.mxu1 %v2224_v8 }
  0xe0   : > { %1528 = vmatmul.mubr.bf16.vlgmr.msra.gmra.mrb[8].mxu0 %v2766_v11  ;;  %1581 = vmatmul.mubr.bf16.vlgmr.msra.gmra.mrb[8].mxu1 %v2766_v11  ;;  %v1700_v11 = vld [vmem:[%s525_s25] sm:$0xff] }
  0xe1   : > { %1537 = vmatprep.mubr.bf16.mxu0 %v2775_v20  ;;  %1590 = vmatprep.mubr.bf16.mxu1 %v2775_v20  ;;  %v2854_v16 = vrot.slane %v1700_v11, %v1720_v12  ;;  %v2856_v20 = vrot.slane %v1700_v11, %v1728_v13  ;;  %v2860_v17 = vrot.slane %v1700_v11, %v1732_v15 }
  0xe2   : > { %v1705_v23 = vrot.slane %v1700_v11, %v1704_v18  ;;  %v1713_v24 = vrot.slane %v1700_v11, %v1712_v19  ;;  %v1709_v25 = vrot.slane %v1700_v11, %v1708_v21  ;;  %v1717_v26 = vrot.slane %v1700_v11, %v1716_v22 }
  0xe8   : > { %1538 = vmatmul.mubr.bf16.gmra.mrb[12].mxu0 %v2790_v31  ;;  %1591 = vmatmul.mubr.bf16.gmra.mrb[12].mxu1 %v2790_v31  ;;  %v2858_v31 = vrot.slane %v1700_v11, %v1724_v14 }
 0x173   : > { %v1423_v27 = vpop.f32.mrb[0].mxu0  ;;  %v1476_v29 = vpop.f32.mrb[0].mxu1 }
 0x174   : > { %v1742_v28 = vadd.f32 %v1705_v23, %v1423_v27  ;;  %v1425_v30 = vpop.f32.mrb[1].mxu0  ;;  %v1744_v32 = vadd.f32 %v1713_v24, %v1476_v29  ;;  %v1478_v34 = vpop.f32.mrb[1].mxu1 }
 0x175   : > { %v1743_v33 = vadd.f32 %v1709_v25, %v1425_v30  ;;  %v1427_v35 = vpop.f32.mrb[2].mxu0  ;;  %v1745_v37 = vadd.f32 %v1717_v26, %v1478_v34  ;;  %v1480_v39 = vpop.f32.mrb[2].mxu1 }
 0x176   : > { %v1774_v36 = vmax.f32 %v1742_v28, 0.0  ;;  %v1750_v38 = vadd.f32 %v1705_v23, %v1427_v35  ;;  %v1429_v40 = vpop.f32.mrb[3].mxu0  ;;  %v1776_v41 = vmax.f32 %v1744_v32, 0.0  ;;  %v1752_v43 = vadd.f32 %v1713_v24, %v1480_v39  ;;  %v1482_v45 = vpop.f32.mrb[3].mxu1 }
 0x177   : > { %v1775_v42 = vmax.f32 %v1743_v33, 0.0  ;;  %v1751_v44 = vadd.f32 %v1709_v25, %v1429_v40  ;;  %v1777_v46 = vmax.f32 %v1745_v37, 0.0  ;;  %v1753_v48 = vadd.f32 %v1717_v26, %v1482_v45 }
 0x178   : > { %v1782_v47 = vmax.f32 %v1750_v38, 0.0  ;;  %v1784_v50 = vmax.f32 %v1752_v43, 0.0 }
 0x179   : > { %v2248_v49 = vpack.c.bf16 %v1775_v42, %v1774_v36  ;;  %v1783_v51 = vmax.f32 %v1751_v44, 0.0  ;;  %v2249_v52 = vpack.c.bf16 %v1777_v46, %v1776_v41  ;;  %v1785_v53 = vmax.f32 %v1753_v48, 0.0 }
 0x17b   : > { %1902 = vst [vmem:[%s2864_s12] sm:$0xff] %v2248_v49  ;;  %v2252_v54 = vpack.c.bf16 %v1783_v51, %v1782_v47  ;;  %v1433_v55 = vpop.f32.mrb[4].mxu0  ;;  %1903 = vst [vmem:[%s2864_s12 + $0x8] sm:$0xff] %v2249_v52  ;;  %v2253_v56 = vpack.c.bf16 %v1785_v53, %v1784_v50  ;;  %v1486_v57 = vpop.f32.mrb[4].mxu1 }
 0x17c   : > { %v1758_v0 = vadd.f32 %v1705_v23, %v1433_v55  ;;  %v1435_v58 = vpop.f32.mrb[5].mxu0  ;;  %v1760_v59 = vadd.f32 %v1713_v24, %v1486_v57  ;;  %v1488_v61 = vpop.f32.mrb[5].mxu1 }
 0x17d   : > { %1906 = vst [vmem:[%s2864_s12 + $0x20] sm:$0xff] %v2252_v54  ;;  %v1759_v60 = vadd.f32 %v1709_v25, %v1435_v58  ;;  %v1437_v62 = vpop.f32.mrb[6].mxu0  ;;  %1907 = vst [vmem:[%s2864_s12 + $0x28] sm:$0xff] %v2253_v56  ;;  %v1761_v1 = vadd.f32 %v1717_v26, %v1488_v61  ;;  %v1490_v3 = vpop.f32.mrb[6].mxu1 }
 0x17e   : > { %v1790_v63 = vmax.f32 %v1758_v0, 0.0  ;;  %v1766_v2 = vadd.f32 %v1705_v23, %v1437_v62  ;;  %v1439_v4 = vpop.f32.mrb[7].mxu0  ;;  %v1792_v5 = vmax.f32 %v1760_v59, 0.0  ;;  %v1768_v7 = vadd.f32 %v1713_v24, %v1490_v3  ;;  %v1492_v9 = vpop.f32.mrb[7].mxu1 }
 0x17f   : > { %v1791_v6 = vmax.f32 %v1759_v60, 0.0  ;;  %v1767_v8 = vadd.f32 %v1709_v25, %v1439_v4  ;;  %v1793_v10 = vmax.f32 %v1761_v1, 0.0  ;;  %v1769_v13 = vadd.f32 %v1717_v26, %v1492_v9 }
 0x180   : > { %v1798_v12 = vmax.f32 %v1766_v2, 0.0  ;;  %v1800_v14 = vmax.f32 %v1768_v7, 0.0 }
 0x181   : > { %v2256_v11 = vpack.c.bf16 %v1791_v6, %v1790_v63  ;;  %v1799_v15 = vmax.f32 %v1767_v8, 0.0  ;;  %v2257_v18 = vpack.c.bf16 %v1793_v10, %v1792_v5  ;;  %v1801_v19 = vmax.f32 %v1769_v13, 0.0 }
 0x183   : > { %1910 = vst [vmem:[%s2864_s12 + $0x40] sm:$0xff] %v2256_v11  ;;  %v2260_v21 = vpack.c.bf16 %v1799_v15, %v1798_v12  ;;  %1911 = vst [vmem:[%s2864_s12 + $0x48] sm:$0xff] %v2257_v18  ;;  %v2261_v22 = vpack.c.bf16 %v1801_v19, %v1800_v14 }
 0x184   : > { %v1951_v18 = vld [vmem:[%s2864_s12 + $0x20] sm:$0xff] (%p2406_p6)  ;;  %v1953_v19 = vld [vmem:[%s2864_s12 + $0x28] sm:$0xff] (%p2406_p6) }
 0x185   : > { %1914 = vst [vmem:[%s2864_s12 + $0x60] sm:$0xff] %v2260_v21  ;;  %1915 = vst [vmem:[%s2864_s12 + $0x68] sm:$0xff] %v2261_v22 }
 0x186   : > { %1952 = vst [vmem:[%s1930_s30 + $0x40] sm:$0xff] (%p2406_p6), %v1951_v18  ;;  %1954 = vst [vmem:[%s1930_s30 + $0x48] sm:$0xff] (%p2406_p6), %v1953_v19 }
 0x1b3   : > { %v1529_v23 = vpop.f32.mrb[8].mxu0  ;;  %v1582_v27 = vpop.f32.mrb[8].mxu1 }
 0x1b4   : > { %v1746_v24 = vadd.f32 %v2854_v16, %v1529_v23  ;;  %v1531_v25 = vpop.f32.mrb[9].mxu0  ;;  %v1748_v28 = vadd.f32 %v2856_v20, %v1582_v27  ;;  %v1584_v29 = vpop.f32.mrb[9].mxu1  ;;  %v1959_v23 = vld [vmem:[%s2864_s12 + $0x40] sm:$0xff] (%p2406_p6) }
 0x1b5   : > { %v1747_v26 = vadd.f32 %v2858_v31, %v1531_v25  ;;  %v1533_v30 = vpop.f32.mrb[10].mxu0  ;;  %v1749_v33 = vadd.f32 %v2860_v17, %v1584_v29  ;;  %v1586_v35 = vpop.f32.mrb[10].mxu1  ;;  %1960 = vst [vmem:[%s1930_s30 + $0x80] sm:$0xff] (%p2406_p6), %v1959_v23 }
 0x1b6   : > { %v1778_v32 = vmax.f32 %v1746_v24, 0.0  ;;  %v1754_v34 = vadd.f32 %v2854_v16, %v1533_v30  ;;  %v1535_v36 = vpop.f32.mrb[11].mxu0  ;;  %v1780_v37 = vmax.f32 %v1748_v28, 0.0  ;;  %v1756_v39 = vadd.f32 %v2856_v20, %v1586_v35  ;;  %v1588_v41 = vpop.f32.mrb[11].mxu1  ;;  %v1961_v24 = vld [vmem:[%s2864_s12 + $0x48] sm:$0xff] (%p2406_p6)  ;;  %v1967_v28 = vld [vmem:[%s2864_s12 + $0x60] sm:$0xff] (%p2406_p6) }
 0x1b7   : > { %v1779_v38 = vmax.f32 %v1747_v26, 0.0  ;;  %v1755_v40 = vadd.f32 %v2858_v31, %v1535_v36  ;;  %v1781_v42 = vmax.f32 %v1749_v33, 0.0  ;;  %v1757_v44 = vadd.f32 %v2860_v17, %v1588_v41  ;;  %1962 = vst [vmem:[%s1930_s30 + $0x88] sm:$0xff] (%p2406_p6), %v1961_v24  ;;  %v1969_v26 = vld [vmem:[%s2864_s12 + $0x68] sm:$0xff] (%p2406_p6)  ;;  %1968 = vst [vmem:[%s1930_s30 + $0xc0] sm:$0xff] (%p2406_p6), %v1967_v28 }
 0x1b8   : > { %v1786_v43 = vmax.f32 %v1754_v34, 0.0  ;;  %v1788_v46 = vmax.f32 %v1756_v39, 0.0  ;;  %1970 = vst [vmem:[%s1930_s30 + $0xc8] sm:$0xff] (%p2406_p6), %v1969_v26 }
 0x1b9   : > { %v2250_v45 = vpack.c.bf16 %v1779_v38, %v1778_v32  ;;  %v1787_v47 = vmax.f32 %v1755_v40, 0.0  ;;  %v2251_v48 = vpack.c.bf16 %v1781_v42, %v1780_v37  ;;  %v1789_v49 = vmax.f32 %v1757_v44, 0.0 }
 0x1bb   : > { %1904 = vst [vmem:[%s2864_s12 + $0x10] sm:$0xff] %v2250_v45  ;;  %v2254_v50 = vpack.c.bf16 %v1787_v47, %v1786_v43  ;;  %v1539_v51 = vpop.f32.mrb[12].mxu0  ;;  %1905 = vst [vmem:[%s2864_s12 + $0x18] sm:$0xff] %v2251_v48  ;;  %v2255_v52 = vpack.c.bf16 %v1789_v49, %v1788_v46  ;;  %v1592_v54 = vpop.f32.mrb[12].mxu1 }
 0x1bc   : > { %v1762_v53 = vadd.f32 %v2854_v16, %v1539_v51  ;;  %v1541_v55 = vpop.f32.mrb[13].mxu0  ;;  %v1764_v56 = vadd.f32 %v2856_v20, %v1592_v54  ;;  %v1594_v57 = vpop.f32.mrb[13].mxu1 }
 0x1bd   : > { %1908 = vst [vmem:[%s2864_s12 + $0x30] sm:$0xff] %v2254_v50  ;;  %v1763_v0 = vadd.f32 %v2858_v31, %v1541_v55  ;;  %v1543_v58 = vpop.f32.mrb[14].mxu0  ;;  %1909 = vst [vmem:[%s2864_s12 + $0x38] sm:$0xff] %v2255_v52  ;;  %v1765_v60 = vadd.f32 %v2860_v17, %v1594_v57  ;;  %v1596_v62 = vpop.f32.mrb[14].mxu1 }
 0x1be   : > { %v1794_v59 = vmax.f32 %v1762_v53, 0.0  ;;  %v1770_v61 = vadd.f32 %v2854_v16, %v1543_v58  ;;  %v1545_v63 = vpop.f32.mrb[15].mxu0  ;;  %v1796_v1 = vmax.f32 %v1764_v56, 0.0  ;;  %v1772_v3 = vadd.f32 %v2856_v20, %v1596_v62  ;;  %v1598_v5 = vpop.f32.mrb[15].mxu1  ;;  %v1943_v20 = vld [vmem:[%s2864_s12] sm:$0xff] (%p2406_p6) }
 0x1bf   : > { %v1795_v2 = vmax.f32 %v1763_v0, 0.0  ;;  %v1771_v4 = vadd.f32 %v2858_v31, %v1545_v63  ;;  %v1797_v6 = vmax.f32 %v1765_v60, 0.0  ;;  %v1773_v8 = vadd.f32 %v2860_v17, %v1598_v5  ;;  %1924 = sbr.rel (!%p2406_p6) target bundleno = 462 (0x1ce), region = 67  ;;  %v1945_v31 = vld [vmem:[%s2864_s12 + $0x8] sm:$0xff] (%p2406_p6)  ;;  %1944 = vst [vmem:[%s1930_s30] sm:$0xff] (%p2406_p6), %v1943_v20 }
 0x1c0   : > { %v1802_v7 = vmax.f32 %v1770_v61, 0.0  ;;  %v1804_v10 = vmax.f32 %v1772_v3, 0.0  ;;  %1946 = vst [vmem:[%s1930_s30 + $0x8] sm:$0xff] (%p2406_p6), %v1945_v31 }
 0x1c1   : > { %v2258_v9 = vpack.c.bf16 %v1795_v2, %v1794_v59  ;;  %v1803_v16 = vmax.f32 %v1771_v4, 0.0  ;;  %v2259_v12 = vpack.c.bf16 %v1797_v6, %v1796_v1  ;;  %v1805_v13 = vmax.f32 %v1773_v8, 0.0 }
 0x1c2   : > { %v1947_v17 = vld [vmem:[%s2864_s12 + $0x10] sm:$0xff] (%p2406_p6)  ;;  %v1949_v15 = vld [vmem:[%s2864_s12 + $0x18] sm:$0xff] (%p2406_p6) }
 0x1c3   : > { %1912 = vst [vmem:[%s2864_s12 + $0x50] sm:$0xff] %v2258_v9  ;;  %v2262_v11 = vpack.c.bf16 %v1803_v16, %v1802_v7  ;;  %1913 = vst [vmem:[%s2864_s12 + $0x58] sm:$0xff] %v2259_v12  ;;  %v2263_v14 = vpack.c.bf16 %v1805_v13, %v1804_v10 }
 0x1c4   : > { %1948 = vst [vmem:[%s1930_s30 + $0x10] sm:$0xff] (%p2406_p6), %v1947_v17  ;;  %1950 = vst [vmem:[%s1930_s30 + $0x18] sm:$0xff] (%p2406_p6), %v1949_v15  ;;  %v1955_v21 = vld [vmem:[%s2864_s12 + $0x30] sm:$0xff] (%p2406_p6)  ;;  %v1957_v22 = vld [vmem:[%s2864_s12 + $0x38] sm:$0xff] (%p2406_p6) }
 0x1c5   : > { %1916 = vst [vmem:[%s2864_s12 + $0x70] sm:$0xff] %v2262_v11  ;;  %1917 = vst [vmem:[%s2864_s12 + $0x78] sm:$0xff] %v2263_v14 }
 0x1c6   : > { %1956 = vst [vmem:[%s1930_s30 + $0x50] sm:$0xff] %v1955_v21  ;;  %1958 = vst [vmem:[%s1930_s30 + $0x58] sm:$0xff] %v1957_v22 }
 0x1ca   : > { %v1963_v27 = vld [vmem:[%s2864_s12 + $0x50] sm:$0xff]  ;;  %v1965_v25 = vld [vmem:[%s2864_s12 + $0x58] sm:$0xff] }
 0x1cb   : > { %1964 = vst [vmem:[%s1930_s30 + $0x90] sm:$0xff] %v1963_v27  ;;  %1966 = vst [vmem:[%s1930_s30 + $0x98] sm:$0xff] %v1965_v25 }
 0x1cc   : > { %v1971_v29 = vld [vmem:[%s2864_s12 + $0x70] sm:$0xff]  ;;  %v1973_v30 = vld [vmem:[%s2864_s12 + $0x78] sm:$0xff] }
 0x1cd   : > { %1972 = vst [vmem:[%s1930_s30 + $0xd0] sm:$0xff] %v1971_v29  ;;  %1974 = vst [vmem:[%s1930_s30 + $0xd8] sm:$0xff] %v1973_v30 }
 0x1ce PF: > { %s13_s16 = sadd.s32 1, %s2349_s16   ;;  %s2940_s12 = smov %s2337_s13 }
 0x1cf   : > { %p10_p12 = scmp.ge.s32.totalorder %s13_s16, 4   ;;  %s2941_s13 = smov %s2411_s22 }
 0x1d0   : > { %s2942_s14 = smov %s2345_s15  ;;  %s2943_s15 = smov %s2945_s17 }
 0x1d1   :  { %12 = sbr.rel (!%p10_p12) target bundleno = 3 (0x3), region = 127 }

// kernel: encoder_cnn_forward.11
= control target key start
LH: loop header
LB: loop body
LE: loop exit
PB: predicated region body
PF: predicated region fallthrough
CT: control target
= control target key end

     0   :  { %vm629_vm0 = vcmask 1041409   ;;  %s3249_s0 = inlined_call_operand.vmem [shape: bf16[2,16,2048], index: 0, kind: input, shape index: {}]   ;;  %s3250_s1 = inlined_call_operand.vmem [shape: f32[2048,128], index: 1, kind: input, shape index: {}]   ;;  %s3251_s2 = inlined_call_operand.vmem [shape: f32[1,128], index: 2, kind: input, shape index: {}]   ;;  %s3252_s3 = inlined_call_operand.hbm [shape: f32[2,128], index: 3, kind: output, shape index: {}]  }
   0x1   :  { %v357_v0 = vld [vmem:[%s3250_s1 + $0x80] sm:$0xff]  ;;  %v358_v1 = vld [vmem:[%s3250_s1 + $0x88] sm:$0xff]  ;;  %v359_v11 = vld [vmem:[%s3250_s1 + $0x90] sm:$0xff] }
   0x2   :  { %v389_v2 = vld [vmem:[%s3250_s1 + $0x180] sm:$0xff]  ;;  %v1532_v3 = vpack.c.bf16 %v358_v1, %v357_v0  ;;  %v390_v4 = vld [vmem:[%s3250_s1 + $0x188] sm:$0xff]  ;;  %v360_v13 = vld [vmem:[%s3250_s1 + $0x98] sm:$0xff] }
   0x3   :  { %v341_v5 = vld [vmem:[%s3250_s1] sm:$0xff]  ;;  %v342_v6 = vld [vmem:[%s3250_s1 + $0x8] sm:$0xff]  ;;  %v1564_v7 = vpack.c.bf16 %v390_v4, %v389_v2  ;;  %v391_v14 = vld [vmem:[%s3250_s1 + $0x190] sm:$0xff]  ;;  %v1536_v16 = vpack.c.bf16 %v360_v13, %v359_v11 }
   0x4   :  { %v1534_v8 = vpack.c.bf16 %v342_v6, %v341_v5  ;;  %v373_v9 = vld [vmem:[%s3250_s1 + $0x100] sm:$0xff]  ;;  %v374_v10 = vld [vmem:[%s3250_s1 + $0x108] sm:$0xff]  ;;  %1533 = vmatprep.subr.bf16.mxu0 %v1532_v3  ;;  %v392_v15 = vld [vmem:[%s3250_s1 + $0x198] sm:$0xff] }
   0x5   :  { %v1566_v12 = vpack.c.bf16 %v374_v10, %v373_v9  ;;  %1565 = vmatprep.subr.bf16.mxu1 %v1564_v7  ;;  %v1568_v17 = vpack.c.bf16 %v392_v15, %v391_v14  ;;  %v343_v18 = vld [vmem:[%s3250_s1 + $0x10] sm:$0xff]  ;;  %v344_v19 = vld [vmem:[%s3250_s1 + $0x18] sm:$0xff]  ;;  %v361_v23 = vld [vmem:[%s3250_s1 + $0xa0] sm:$0xff] }
   0x6   :  { %1535 = vmatpush3.bf16.msra.mxu0 %v1534_v8  ;;  %v375_v20 = vld [vmem:[%s3250_s1 + $0x110] sm:$0xff]  ;;  %v1538_v21 = vpack.c.bf16 %v344_v19, %v343_v18  ;;  %v376_v22 = vld [vmem:[%s3250_s1 + $0x118] sm:$0xff]  ;;  %v362_v24 = vld [vmem:[%s3250_s1 + $0xa8] sm:$0xff] }
   0x7   :  { %1567 = vmatpush3.bf16.msra.mxu1 %v1566_v12  ;;  %1537 = vmatprep.subr.bf16.mxu0 %v1536_v16  ;;  %v1570_v25 = vpack.c.bf16 %v376_v22, %v375_v20  ;;  %v1540_v26 = vpack.c.bf16 %v362_v24, %v361_v23  ;;  %v393_v27 = vld [vmem:[%s3250_s1 + $0x1a0] sm:$0xff]  ;;  %v394_v28 = vld [vmem:[%s3250_s1 + $0x1a8] sm:$0xff]  ;;  %v363_v35 = vld [vmem:[%s3250_s1 + $0xb0] sm:$0xff] }
   0x8   :  { %1569 = vmatprep.subr.bf16.mxu1 %v1568_v17  ;;  %v345_v29 = vld [vmem:[%s3250_s1 + $0x20] sm:$0xff]  ;;  %v1572_v30 = vpack.c.bf16 %v394_v28, %v393_v27  ;;  %v346_v31 = vld [vmem:[%s3250_s1 + $0x28] sm:$0xff]  ;;  %v364_v36 = vld [vmem:[%s3250_s1 + $0xb8] sm:$0xff] }
   0x9   :  { %v377_v32 = vld [vmem:[%s3250_s1 + $0x120] sm:$0xff]  ;;  %v378_v33 = vld [vmem:[%s3250_s1 + $0x128] sm:$0xff]  ;;  %v1542_v34 = vpack.c.bf16 %v346_v31, %v345_v29  ;;  %v395_v37 = vld [vmem:[%s3250_s1 + $0x1b0] sm:$0xff]  ;;  %v1544_v39 = vpack.c.bf16 %v364_v36, %v363_v35 }
   0xa   :  { %1539 = vmatpush3.bf16.msra.mxu0 %v1538_v21  ;;  %v1574_v38 = vpack.c.bf16 %v378_v33, %v377_v32  ;;  %v396_v40 = vld [vmem:[%s3250_s1 + $0x1b8] sm:$0xff]  ;;  %v347_v41 = vld [vmem:[%s3250_s1 + $0x30] sm:$0xff]  ;;  %v365_v46 = vld [vmem:[%s3250_s1 + $0xc0] sm:$0xff] }
   0xb   :  { %1571 = vmatpush3.bf16.msra.mxu1 %v1570_v25  ;;  %1541 = vmatprep.subr.bf16.mxu0 %v1540_v26  ;;  %v348_v42 = vld [vmem:[%s3250_s1 + $0x38] sm:$0xff]  ;;  %v1576_v43 = vpack.c.bf16 %v396_v40, %v395_v37  ;;  %v379_v44 = vld [vmem:[%s3250_s1 + $0x130] sm:$0xff]  ;;  %v366_v47 = vld [vmem:[%s3250_s1 + $0xc8] sm:$0xff] }
   0xc   :  { %1573 = vmatprep.subr.bf16.mxu1 %v1572_v30  ;;  %v380_v45 = vld [vmem:[%s3250_s1 + $0x138] sm:$0xff]  ;;  %v397_v48 = vld [vmem:[%s3250_s1 + $0x1c0] sm:$0xff]  ;;  %v398_v49 = vld [vmem:[%s3250_s1 + $0x1c8] sm:$0xff]  ;;  %v1546_v50 = vpack.c.bf16 %v348_v42, %v347_v41  ;;  %v1548_v55 = vpack.c.bf16 %v366_v47, %v365_v46 }
   0xd   :  { %v349_v51 = vld [vmem:[%s3250_s1 + $0x40] sm:$0xff]  ;;  %v350_v52 = vld [vmem:[%s3250_s1 + $0x48] sm:$0xff]  ;;  %v1578_v54 = vpack.c.bf16 %v380_v45, %v379_v44  ;;  %v367_v57 = vld [vmem:[%s3250_s1 + $0xd0] sm:$0xff]  ;;  %v1580_v59 = vpack.c.bf16 %v398_v49, %v397_v48 }
   0xe   :  { %1543 = vmatpush3.bf16.msra.mxu0 %v1542_v34  ;;  %v381_v53 = vld [vmem:[%s3250_s1 + $0x140] sm:$0xff]  ;;  %v382_v56 = vld [vmem:[%s3250_s1 + $0x148] sm:$0xff]  ;;  %v368_v58 = vld [vmem:[%s3250_s1 + $0xd8] sm:$0xff]  ;;  %v1550_v2 = vpack.c.bf16 %v350_v52, %v349_v51 }
   0xf   :  { %1575 = vmatpush3.bf16.msra.mxu1 %v1574_v38  ;;  %1545 = vmatprep.subr.bf16.mxu0 %v1544_v39  ;;  %v399_v60 = vld [vmem:[%s3250_s1 + $0x1d0] sm:$0xff]  ;;  %v400_v61 = vld [vmem:[%s3250_s1 + $0x1d8] sm:$0xff]  ;;  %v369_v3 = vld [vmem:[%s3250_s1 + $0xe0] sm:$0xff]  ;;  %v1582_v6 = vpack.c.bf16 %v382_v56, %v381_v53  ;;  %v1552_v7 = vpack.c.bf16 %v368_v58, %v367_v57 }
  0x10   :  { %1577 = vmatprep.subr.bf16.mxu1 %v1576_v43  ;;  %v351_v62 = vld [vmem:[%s3250_s1 + $0x50] sm:$0xff]  ;;  %v352_v63 = vld [vmem:[%s3250_s1 + $0x58] sm:$0xff]  ;;  %v370_v4 = vld [vmem:[%s3250_s1 + $0xe8] sm:$0xff]  ;;  %v1584_v11 = vpack.c.bf16 %v400_v61, %v399_v60 }
  0x11   :  { %v383_v0 = vld [vmem:[%s3250_s1 + $0x150] sm:$0xff]  ;;  %v384_v1 = vld [vmem:[%s3250_s1 + $0x158] sm:$0xff]  ;;  %v401_v5 = vld [vmem:[%s3250_s1 + $0x1e0] sm:$0xff]  ;;  %v1554_v15 = vpack.c.bf16 %v352_v63, %v351_v62  ;;  %v1556_v20 = vpack.c.bf16 %v370_v4, %v369_v3 }
  0x12   :  { %1547 = vmatpush3.bf16.msra.mxu0 %v1546_v50  ;;  %v402_v8 = vld [vmem:[%s3250_s1 + $0x1e8] sm:$0xff]  ;;  %v1995_v9 = vld [vmem:[%s3250_s1 + $0x60] sm:$0xff]  ;;  %v2013_v14 = vld [vmem:[%s3250_s1 + $0xf0] sm:$0xff]  ;;  %v1586_v16 = vpack.c.bf16 %v384_v1, %v383_v0 }
  0x13   :  { %1579 = vmatpush3.bf16.msra.mxu1 %v1578_v54  ;;  %1549 = vmatprep.subr.bf16.mxu0 %v1548_v55  ;;  %v354_v10 = vld [vmem:[%s3250_s1 + $0x68] sm:$0xff]  ;;  %v2003_v12 = vld [vmem:[%s3250_s1 + $0x160] sm:$0xff]  ;;  %v372_v17 = vld [vmem:[%s3250_s1 + $0xf8] sm:$0xff]  ;;  %v1588_v21 = vpack.c.bf16 %v402_v8, %v401_v5 }
  0x14   :  { %1581 = vmatprep.subr.bf16.mxu1 %v1580_v59  ;;  %v2008_v13 = vld [vmem:[%s3250_s1 + $0x168] sm:$0xff]  ;;  %v2021_v18 = vld [vmem:[%s3250_s1 + $0x1f0] sm:$0xff]  ;;  %v2026_v19 = vld [vmem:[%s3250_s1 + $0x1f8] sm:$0xff]  ;;  %v1558_v22 = vpack.c.bf16 %v354_v10, %v1995_v9  ;;  %v1560_v27 = vpack.c.bf16 %v372_v17, %v2013_v14 }
  0x15   :  { %v1590_v23 = vpack.c.bf16 %v2008_v13, %v2003_v12  ;;  %v2034_v24 = vld [vmem:[%s3250_s1 + $0x70] sm:$0xff]  ;;  %v2039_v25 = vld [vmem:[%s3250_s1 + $0x78] sm:$0xff]  ;;  %v1592_v28 = vpack.c.bf16 %v2026_v19, %v2021_v18  ;;  %v20_v31 = vld [vmem:[%s3249_s0] sm:$0xff] }
  0x16   :  { %1551 = vmatpush3.bf16.msra.mxu0 %v1550_v2  ;;  %v2044_v26 = vld [vmem:[%s3250_s1 + $0x170] sm:$0xff]  ;;  %v1562_v29 = vpack.c.bf16 %v2039_v25, %v2034_v24  ;;  %v2054_v30 = vld [vmem:[%s3250_s1 + $0x178] sm:$0xff]  ;;  %v28_v32 = vld [vmem:[%s3249_s0 + $0x40] sm:$0xff]  ;;  %v53_v36 = vunpack.c.h.bf16 %v20_v31  ;;  %v52_v39 = vunpack.c.l.bf16 %v20_v31 }
  0x17   :  { %1583 = vmatpush3.bf16.msra.mxu1 %v1582_v6  ;;  %1553 = vmatprep.subr.bf16.mxu0 %v1552_v7  ;;  %v1594_v33 = vpack.c.bf16 %v2054_v30, %v2044_v26  ;;  %v36_v34 = vld [vmem:[%s3249_s0 + $0x80] sm:$0xff]  ;;  %v69_v37 = vunpack.c.h.bf16 %v28_v32  ;;  %v21_v38 = vld [vmem:[%s3249_s0 + $0x8] sm:$0xff]  ;;  %v68_v46 = vunpack.c.l.bf16 %v28_v32 }
  0x18   :  { %1585 = vmatprep.subr.bf16.mxu1 %v1584_v11  ;;  %v44_v35 = vld [vmem:[%s3249_s0 + $0xc0] sm:$0xff]  ;;  %v85_v40 = vunpack.c.h.bf16 %v36_v34  ;;  %v29_v42 = vld [vmem:[%s3249_s0 + $0x48] sm:$0xff]  ;;  %v55_v45 = vunpack.c.h.bf16 %v21_v38  ;;  %v84_v52 = vunpack.c.l.bf16 %v36_v34  ;;  %v54_v58 = vunpack.c.l.bf16 %v21_v38 }
  0x19   :  { %v101_v41 = vunpack.c.h.bf16 %v44_v35  ;;  %v37_v43 = vld [vmem:[%s3249_s0 + $0x88] sm:$0xff]  ;;  %v123_v47 = vadd.f32 %v69_v37, %v53_v36  ;;  %v71_v48 = vunpack.c.h.bf16 %v29_v42  ;;  %v100_v53 = vunpack.c.l.bf16 %v44_v35  ;;  %v405_v37 = vld [vmem:[%s3250_s1 + $0x200] sm:$0xff] }
  0x1a   :  { %v45_v44 = vld [vmem:[%s3249_s0 + $0xc8] sm:$0xff]  ;;  %1555 = vmatpush3.bf16.msra.mxu0 %v1554_v15  ;;  %v87_v49 = vunpack.c.h.bf16 %v37_v43  ;;  %v116_v54 = vadd.f32 %v68_v46, %v52_v39  ;;  %v70_v62 = vunpack.c.l.bf16 %v29_v42  ;;  %v86_v2 = vunpack.c.l.bf16 %v37_v43  ;;  %v453_v43 = vld [vmem:[%s3250_s1 + $0x380] sm:$0xff] }
  0x1b   :  { %v103_v50 = vunpack.c.h.bf16 %v45_v44  ;;  %1587 = vmatpush3.bf16.msra.mxu1 %v1586_v16  ;;  %1557 = vmatprep.subr.bf16.mxu0 %v1556_v20  ;;  %v235_v51 = vadd.f32 %v101_v41, %v85_v40  ;;  %v124_v55 = vrot.slane %v123_v47, 4  ;;  %v137_v56 = vadd.f32 %v71_v48, %v55_v45  ;;  %v422_v32 = vld [vmem:[%s3250_s1 + $0x288] sm:$0xff]  ;;  %v423_v45 = vld [vmem:[%s3250_s1 + $0x290] sm:$0xff] }
  0x1c   :  { %1589 = vmatprep.subr.bf16.mxu1 %v1588_v21  ;;  %v117_v60 = vrot.slane %v116_v54, 4  ;;  %v228_v61 = vadd.f32 %v100_v53, %v84_v52  ;;  %v102_v6 = vunpack.c.l.bf16 %v45_v44  ;;  %v130_v10 = vadd.f32 %v70_v62, %v54_v58  ;;  %v406_v38 = vld [vmem:[%s3250_s1 + $0x208] sm:$0xff]  ;;  %v424_v52 = vld [vmem:[%s3250_s1 + $0x298] sm:$0xff]  ;;  %v2119_v53 = vld [vmem:[%s3250_s1 + $0x210] sm:$0xff] }
  0x1d   :  { %v249_v57 = vadd.f32 %v103_v50, %v87_v49  ;;  %v236_v59 = vrot.slane %v235_v51, 4  ;;  %v125_v63 = vadd.f32 %v124_v55, %v123_v47  ;;  %v138_v0 = vrot.slane %v137_v56, 4  ;;  %v454_v44 = vld [vmem:[%s3250_s1 + $0x388] sm:$0xff]  ;;  %v2106_v50 = vld [vmem:[%s3250_s1 + $0x300] sm:$0xff] }
  0x1e   :  { %1559 = vmatpush3.bf16.msra.mxu0 %v1558_v22  ;;  %v118_v4 = vadd.f32 %v117_v60, %v116_v54  ;;  %v229_v5 = vrot.slane %v228_v61, 4  ;;  %v242_v14 = vadd.f32 %v102_v6, %v86_v2  ;;  %v131_v18 = vrot.slane %v130_v10, 4  ;;  %v2124_v54 = vld [vmem:[%s3250_s1 + $0x218] sm:$0xff] }
  0x1f   :  { %v250_v1 = vrot.slane %v249_v57, 4  ;;  %1591 = vmatpush3.bf16.msra.mxu1 %v1590_v23  ;;  %1561 = vmatprep.subr.bf16.mxu0 %v1560_v27  ;;  %v237_v3 = vadd.f32 %v236_v59, %v235_v51  ;;  %v126_v7 = vrot.slane %v125_v63, 2  ;;  %v139_v8 = vadd.f32 %v138_v0, %v137_v56  ;;  %v2111_v51 = vld [vmem:[%s3250_s1 + $0x308] sm:$0xff]  ;;  %v2130_v59 = vld [vmem:[%s3250_s1 + $0x390] sm:$0xff]  ;;  %v2135_v60 = vld [vmem:[%s3250_s1 + $0x398] sm:$0xff] }
  0x20   :  { %1593 = vmatprep.subr.bf16.mxu1 %v1592_v28  ;;  %v119_v12 = vrot.slane %v118_v4, 2  ;;  %v230_v13 = vadd.f32 %v229_v5, %v228_v61  ;;  %v243_v22 = vrot.slane %v242_v14, 4  ;;  %v132_v26 = vadd.f32 %v131_v18, %v130_v10  ;;  %v2140_v61 = vld [vmem:[%s3250_s1 + $0x2a0] sm:$0xff]  ;;  %v2151_v2 = vld [vmem:[%s3250_s1 + $0x318] sm:$0xff]  ;;  %v2166_v5 = vld [vmem:[%s3250_s1 + $0x228] sm:$0xff] }
  0x21   :  { %v251_v9 = vadd.f32 %v250_v1, %v249_v57  ;;  %v238_v11 = vrot.slane %v237_v3, 2  ;;  %v127_v15 = vadd.f32 %v126_v7, %v125_v63  ;;  %v140_v16 = vrot.slane %v139_v8, 2  ;;  %v2146_v1 = vld [vmem:[%s3250_s1 + $0x310] sm:$0xff]  ;;  %v2177_v10 = vld [vmem:[%s3250_s1 + $0x3a8] sm:$0xff] }
  0x22   :  { %1563 = vmatpush3.bf16.msra.mxu0 %v1562_v29  ;;  %v120_v20 = vadd.f32 %v119_v12, %v118_v4  ;;  %v231_v21 = vrot.slane %v230_v13, 2  ;;  %v244_v31 = vadd.f32 %v243_v22, %v242_v14  ;;  %v421_v29 = vld [vmem:[%s3250_s1 + $0x280] sm:$0xff]  ;;  %v133_v36 = vrot.slane %v132_v26, 2  ;;  %v2187_v12 = vld [vmem:[%s3250_s1 + $0x328] sm:$0xff]  ;;  %v2197_v14 = vld [vmem:[%s3250_s1 + $0x2b8] sm:$0xff] }
  0x23   :  { %v252_v17 = vrot.slane %v251_v9, 2  ;;  %1595 = vmatpush3.bf16.msra.mxu1 %v1594_v33  ;;  %v239_v19 = vadd.f32 %v238_v11, %v237_v3  ;;  %v128_v23 = vrot.slane %v127_v15, 1  ;;  %v141_v24 = vadd.f32 %v140_v16, %v139_v8  ;;  %v2156_v3 = vld [vmem:[%s3250_s1 + $0x2a8] sm:$0xff]  ;;  %v2161_v4 = vld [vmem:[%s3250_s1 + $0x220] sm:$0xff]  ;;  %v2207_v16 = vld [vmem:[%s3250_s1 + $0x238] sm:$0xff] }
  0x24   :  { %v121_v28 = vrot.slane %v120_v20, 1  ;;  %v232_v30 = vadd.f32 %v231_v21, %v230_v13  ;;  %v245_v42 = vrot.slane %v244_v31, 2  ;;  %v134_v48 = vadd.f32 %v133_v36, %v132_v26  ;;  %v2182_v11 = vld [vmem:[%s3250_s1 + $0x320] sm:$0xff]  ;;  %v2192_v13 = vld [vmem:[%s3250_s1 + $0x2b0] sm:$0xff]  ;;  %v2227_v21 = vld [vmem:[%s3250_s1 + $0x338] sm:$0xff] }
  0x25   :  { %v253_v25 = vadd.f32 %v252_v17, %v251_v9  ;;  %v240_v27 = vrot.slane %v239_v19, 1  ;;  %v129_v33 = vadd.f32 %v128_v23, %v127_v15  ;;  %v142_v34 = vrot.slane %v141_v24, 1  ;;  %v2172_v9 = vld [vmem:[%s3250_s1 + $0x3a0] sm:$0xff]  ;;  %v2202_v15 = vld [vmem:[%s3250_s1 + $0x230] sm:$0xff]  ;;  %v2237_v23 = vld [vmem:[%s3250_s1 + $0x2c8] sm:$0xff] }
  0x26   :  { %v122_v40 = vadd.f32 %v121_v28, %v120_v20  ;;  %v233_v41 = vrot.slane %v232_v30, 1  ;;  %v1596_v49 = vpack.c.bf16 %v422_v32, %v421_v29  ;;  %v246_v57 = vadd.f32 %v245_v42, %v244_v31  ;;  %v2212_v18 = vld [vmem:[%s3250_s1 + $0x3b0] sm:$0xff]  ;;  %v2232_v22 = vld [vmem:[%s3250_s1 + $0x2c0] sm:$0xff]  ;;  %v2251_v28 = vld [vmem:[%s3250_s1 + $0x248] sm:$0xff] }
  0x27   :  { %v254_v35 = vrot.slane %v253_v25, 1  ;;  %v241_v39 = vadd.f32 %v240_v27, %v239_v19  ;;  %v143_v46 = vadd.f32 %v142_v34, %v141_v24  ;;  %v1598_v58 = vpack.c.bf16 %v406_v38, %v405_v37  ;;  %v2217_v19 = vld [vmem:[%s3250_s1 + $0x3b8] sm:$0xff]  ;;  %v2222_v20 = vld [vmem:[%s3250_s1 + $0x330] sm:$0xff]  ;;  %v2246_v27 = vld [vmem:[%s3250_s1 + $0x240] sm:$0xff] }
  0x28   :  { %v234_v56 = vadd.f32 %v233_v41, %v232_v30  ;;  %v135_v63 = vrot.slane %v134_v48, 1  ;;  %1597 = vmatprep.subr.bf16.mxu0 %v1596_v49  ;;  %v1628_v0 = vpack.c.bf16 %v454_v44, %v453_v43  ;;  %v247_v7 = vrot.slane %v246_v57, 1  ;;  %v2256_v30 = vld [vmem:[%s3250_s1 + $0x3c0] sm:$0xff]  ;;  %v2261_v31 = vld [vmem:[%s3250_s1 + $0x3c8] sm:$0xff]  ;;  %v2285_v36 = vld [vmem:[%s3250_s1 + $0x2d8] sm:$0xff] }
  0x29   :  { %v255_v47 = vadd.f32 %v254_v35, %v253_v25  ;;  %v631_v55 = vsel %vm629_vm0, %v241_v39, %v129_v33  ;;  %v1600_v8 = vpack.c.bf16 %v424_v52, %v423_v45  ;;  %v1630_v25 = vpack.c.bf16 %v2111_v51, %v2106_v50  ;;  %v2266_v29 = vld [vmem:[%s3250_s1 + $0x340] sm:$0xff]  ;;  %v2271_v32 = vld [vmem:[%s3250_s1 + $0x348] sm:$0xff]  ;;  %v2280_v35 = vld [vmem:[%s3250_s1 + $0x2d0] sm:$0xff] }
  0x2a   :  { %726 = vmatprep.mubr.f32.mxu0 %v631_v55  ;;  %v630_v6 = vsel %vm629_vm0, %v234_v56, %v122_v40  ;;  %v136_v17 = vadd.f32 %v135_v63, %v134_v48  ;;  %1629 = vmatprep.subr.bf16.mxu1 %v1628_v0  ;;  %v248_v24 = vadd.f32 %v247_v7, %v246_v57  ;;  %v2290_v37 = vld [vmem:[%s3250_s1 + $0x250] sm:$0xff]  ;;  %v2295_v38 = vld [vmem:[%s3250_s1 + $0x258] sm:$0xff] }
  0x2b   :  { %v633_v62 = vsel %vm629_vm0, %v255_v47, %v143_v46  ;;  %727 = vmatmul.mubr.f32.vlgmr.msra.gmra.mrb[0].mxu0 %v630_v6  ;;  %v1602_v26 = vpack.c.bf16 %v2124_v54, %v2119_v53  ;;  %v1632_v33 = vpack.c.bf16 %v2135_v60, %v2130_v59  ;;  %v1604_v34 = vpack.c.bf16 %v2156_v3, %v2140_v61  ;;  %v2305_v42 = vld [vmem:[%s3250_s1 + $0x3d0] sm:$0xff]  ;;  %v2324_v49 = vld [vmem:[%s3250_s1 + $0x3d8] sm:$0xff]  ;;  %v2357_v61 = vld [vmem:[%s3250_s1 + $0x2e0] sm:$0xff] }
  0x2c   :  { %796 = vmatprep.mubr.f32.mxu1 %v633_v62  ;;  %1599 = vmatpush3.bf16.msra.mxu0 %v1598_v58  ;;  %v632_v39 = vsel %vm629_vm0, %v248_v24, %v136_v17  ;;  %v1634_v40 = vpack.c.bf16 %v2151_v2, %v2146_v1  ;;  %v1606_v41 = vpack.c.bf16 %v2166_v5, %v2161_v4  ;;  %v22_v43 = vld [vmem:[%s3249_s0 + $0x10] sm:$0xff]  ;;  %v2334_v51 = vld [vmem:[%s3250_s1 + $0x358] sm:$0xff]  ;;  %v2362_v62 = vld [vmem:[%s3250_s1 + $0x2e8] sm:$0xff] }
  0x2d   :  { %1601 = vmatprep.subr.bf16.mxu0 %v1600_v8  ;;  %v30_v44 = vld [vmem:[%s3249_s0 + $0x50] sm:$0xff]  ;;  %797 = vmatmul.mubr.f32.vlgmr.msra.gmra.mrb[0].mxu1 %v632_v39  ;;  %v1636_v45 = vpack.c.bf16 %v2177_v10, %v2172_v9  ;;  %v1638_v46 = vpack.c.bf16 %v2187_v12, %v2182_v11  ;;  %v1608_v47 = vpack.c.bf16 %v2197_v14, %v2192_v13  ;;  %v57_v57 = vunpack.c.h.bf16 %v22_v43  ;;  %v2375_v4 = vld [vmem:[%s3249_s0 + $0x18] sm:$0xff]  ;;  %v2397_v13 = vld [vmem:[%s3250_s1 + $0x260] sm:$0xff] }
  0x2e   :  { %v1610_v48 = vpack.c.bf16 %v2207_v16, %v2202_v15  ;;  %v2329_v50 = vld [vmem:[%s3250_s1 + $0x350] sm:$0xff]  ;;  %1631 = vmatpush3.bf16.msra.mxu1 %v1630_v25  ;;  %v1640_v52 = vpack.c.bf16 %v2217_v19, %v2212_v18  ;;  %v1642_v53 = vpack.c.bf16 %v2227_v21, %v2222_v20  ;;  %v1612_v54 = vpack.c.bf16 %v2237_v23, %v2232_v22  ;;  %v2380_v5 = vld [vmem:[%s3249_s0 + $0x58] sm:$0xff]  ;;  %v2402_v14 = vld [vmem:[%s3250_s1 + $0x268] sm:$0xff] }
  0x2f   :  { %v38_v55 = vld [vmem:[%s3249_s0 + $0x90] sm:$0xff]  ;;  %1633 = vmatprep.subr.bf16.mxu1 %v1632_v33  ;;  %v1614_v58 = vpack.c.bf16 %v2251_v28, %v2246_v27  ;;  %v1644_v59 = vpack.c.bf16 %v2261_v31, %v2256_v30  ;;  %v1646_v60 = vpack.c.bf16 %v2271_v32, %v2266_v29  ;;  %v73_v63 = vunpack.c.h.bf16 %v30_v44  ;;  %v2385_v10 = vld [vmem:[%s3249_s0 + $0x98] sm:$0xff]  ;;  %v2407_v18 = vld [vmem:[%s3250_s1 + $0x3e0] sm:$0xff] }
  0x30   :  { %1603 = vmatpush3.bf16.msra.mxu0 %v1602_v26  ;;  %v46_v56 = vld [vmem:[%s3249_s0 + $0xd0] sm:$0xff]  ;;  %v1616_v0 = vpack.c.bf16 %v2285_v36, %v2280_v35  ;;  %v1618_v1 = vpack.c.bf16 %v2295_v38, %v2290_v37  ;;  %v1648_v2 = vpack.c.bf16 %v2324_v49, %v2305_v42  ;;  %v1650_v3 = vpack.c.bf16 %v2334_v51, %v2329_v50  ;;  %v2390_v11 = vld [vmem:[%s3249_s0 + $0xd8] sm:$0xff]  ;;  %v2412_v19 = vld [vmem:[%s3250_s1 + $0x3e8] sm:$0xff] }
  0x31   :  { %1605 = vmatprep.subr.bf16.mxu0 %v1604_v34  ;;  %v89_v6 = vunpack.c.h.bf16 %v38_v55  ;;  %v105_v7 = vunpack.c.h.bf16 %v46_v56  ;;  %v151_v8 = vadd.f32 %v73_v63, %v57_v57  ;;  %v56_v9 = vunpack.c.l.bf16 %v22_v43  ;;  %v435_v20 = vld [vmem:[%s3250_s1 + $0x2f0] sm:$0xff]  ;;  %v436_v21 = vld [vmem:[%s3250_s1 + $0x2f8] sm:$0xff]  ;;  %v2441_v30 = vld [vmem:[%s3250_s1 + $0x360] sm:$0xff] }
  0x32   :  { %1635 = vmatpush3.bf16.msra.mxu1 %v1634_v40  ;;  %v1620_v12 = vpack.c.bf16 %v2362_v62, %v2357_v61  ;;  %v72_v15 = vunpack.c.l.bf16 %v30_v44  ;;  %v88_v16 = vunpack.c.l.bf16 %v38_v55  ;;  %v104_v17 = vunpack.c.l.bf16 %v46_v56  ;;  %v2446_v31 = vld [vmem:[%s3250_s1 + $0x368] sm:$0xff]  ;;  %v2473_v32 = vld [vmem:[%s3250_s1 + $0x3f0] sm:$0xff]  ;;  %v468_v42 = vld [vmem:[%s3250_s1 + $0x3f8] sm:$0xff] }
  0x33   :  { %1637 = vmatprep.subr.bf16.mxu1 %v1636_v45  ;;  %v152_v22 = vrot.slane %v151_v8, 4  ;;  %v263_v23 = vadd.f32 %v105_v7, %v89_v6  ;;  %v59_v24 = vunpack.c.h.bf16 %v2375_v4  ;;  %v75_v25 = vunpack.c.h.bf16 %v2380_v5  ;;  %v485_v49 = vld [vmem:[%s3250_s1 + $0x480] sm:$0xff]  ;;  %v486_v61 = vld [vmem:[%s3250_s1 + $0x488] sm:$0xff]  ;;  %v2528_v50 = vld [vmem:[%s3250_s1 + $0x490] sm:$0xff] }
  0x34   :  { %1607 = vmatpush3.bf16.msra.mxu0 %v1606_v41  ;;  %v144_v26 = vadd.f32 %v72_v15, %v56_v9  ;;  %v256_v27 = vadd.f32 %v104_v17, %v88_v16  ;;  %v91_v28 = vunpack.c.h.bf16 %v2385_v10  ;;  %v107_v33 = vunpack.c.h.bf16 %v2390_v11 }
  0x35   :  { %1609 = vmatprep.subr.bf16.mxu0 %v1608_v47  ;;  %v1622_v34 = vpack.c.bf16 %v2402_v14, %v2397_v13  ;;  %v153_v35 = vadd.f32 %v152_v22, %v151_v8  ;;  %v264_v36 = vrot.slane %v263_v23, 4  ;;  %v165_v39 = vadd.f32 %v75_v25, %v59_v24  ;;  %v2457_v25 = vld [vmem:[%s3250_s1 + $0x270] sm:$0xff]  ;;  %v2537_v14 = vld [vmem:[%s3250_s1 + $0x500] sm:$0xff] }
  0x36   :  { %1639 = vmatpush3.bf16.msra.mxu1 %v1638_v46  ;;  %v1652_v40 = vpack.c.bf16 %v2412_v19, %v2407_v18  ;;  %v145_v41 = vrot.slane %v144_v26, 4  ;;  %v257_v43 = vrot.slane %v256_v27, 4  ;;  %v277_v44 = vadd.f32 %v107_v33, %v91_v28  ;;  %v488_v18 = vld [vmem:[%s3250_s1 + $0x498] sm:$0xff]  ;;  %v2550_v19 = vld [vmem:[%s3250_s1 + $0x410] sm:$0xff] }
  0x37   :  { %1641 = vmatprep.subr.bf16.mxu1 %v1640_v52  ;;  %v154_v45 = vrot.slane %v153_v35, 2  ;;  %v265_v47 = vadd.f32 %v264_v36, %v263_v23  ;;  %v166_v55 = vrot.slane %v165_v39, 4  ;;  %v58_v56 = vunpack.c.l.bf16 %v2375_v4  ;;  %v2491_v36 = vld [vmem:[%s3250_s1 + $0x370] sm:$0xff] }
  0x38   :  { %1611 = vmatpush3.bf16.msra.mxu0 %v1610_v48  ;;  %v146_v57 = vadd.f32 %v145_v41, %v144_v26  ;;  %v258_v63 = vadd.f32 %v257_v43, %v256_v27  ;;  %v278_v6 = vrot.slane %v277_v44, 4  ;;  %v74_v7 = vunpack.c.l.bf16 %v2380_v5  ;;  %v2462_v26 = vld [vmem:[%s3250_s1 + $0x278] sm:$0xff] }
  0x39   :  { %1613 = vmatprep.subr.bf16.mxu0 %v1612_v54  ;;  %v155_v46 = vadd.f32 %v154_v45, %v153_v35  ;;  %v266_v48 = vrot.slane %v265_v47, 2  ;;  %v167_v8 = vadd.f32 %v166_v55, %v165_v39  ;;  %v90_v9 = vunpack.c.l.bf16 %v2385_v10  ;;  %v2496_v39 = vld [vmem:[%s3250_s1 + $0x378] sm:$0xff]  ;;  %v2507_v45 = vld [vmem:[%s3250_s1 + $0x408] sm:$0xff] }
  0x3a   :  { %1643 = vmatpush3.bf16.msra.mxu1 %v1642_v53  ;;  %v147_v52 = vrot.slane %v146_v57, 2  ;;  %v259_v54 = vrot.slane %v258_v63, 2  ;;  %v279_v15 = vadd.f32 %v278_v6, %v277_v44  ;;  %v106_v4 = vunpack.c.l.bf16 %v2390_v11  ;;  %v2502_v44 = vld [vmem:[%s3250_s1 + $0x400] sm:$0xff]  ;;  %v2523_v6 = vld [vmem:[%s3250_s1 + $0x588] sm:$0xff] }
  0x3b   :  { %1645 = vmatprep.subr.bf16.mxu1 %v1644_v59  ;;  %v156_v5 = vrot.slane %v155_v46, 1  ;;  %v267_v16 = vadd.f32 %v266_v48, %v265_v47  ;;  %v168_v17 = vrot.slane %v167_v8, 2  ;;  %v158_v22 = vadd.f32 %v74_v7, %v58_v56 }
  0x3c   :  { %1615 = vmatpush3.bf16.msra.mxu0 %v1614_v58  ;;  %v148_v53 = vadd.f32 %v147_v52, %v146_v57  ;;  %v260_v58 = vadd.f32 %v259_v54, %v258_v63  ;;  %v280_v10 = vrot.slane %v279_v15, 2  ;;  %v270_v11 = vadd.f32 %v106_v4, %v90_v9  ;;  %v2518_v63 = vld [vmem:[%s3250_s1 + $0x580] sm:$0xff]  ;;  %v2566_v9 = vld [vmem:[%s3250_s1 + $0x598] sm:$0xff]  ;;  %v2571_v52 = vld [vmem:[%s3250_s1 + $0x510] sm:$0xff] }
  0x3d   :  { %1617 = vmatprep.subr.bf16.mxu0 %v1616_v0  ;;  %v157_v59 = vadd.f32 %v156_v5, %v155_v46  ;;  %v268_v0 = vrot.slane %v267_v16, 1  ;;  %v169_v23 = vadd.f32 %v168_v17, %v167_v8  ;;  %v159_v24 = vrot.slane %v158_v22, 4  ;;  %v2561_v8 = vld [vmem:[%s3250_s1 + $0x590] sm:$0xff]  ;;  %v2576_v54 = vld [vmem:[%s3250_s1 + $0x518] sm:$0xff]  ;;  %v2586_v4 = vld [vmem:[%s3250_s1 + $0x4a8] sm:$0xff] }
  0x3e   :  { %1647 = vmatpush3.bf16.msra.mxu1 %v1646_v60  ;;  %v149_v27 = vrot.slane %v148_v53, 1  ;;  %v261_v28 = vrot.slane %v260_v58, 1  ;;  %v281_v33 = vadd.f32 %v280_v10, %v279_v15  ;;  %v271_v35 = vrot.slane %v270_v11, 4  ;;  %v2581_v15 = vld [vmem:[%s3250_s1 + $0x4a0] sm:$0xff] }
  0x3f   :  { %1649 = vmatprep.subr.bf16.mxu1 %v1648_v2  ;;  %v1624_v29 = vpack.c.bf16 %v436_v21, %v435_v20  ;;  %v269_v37 = vadd.f32 %v268_v0, %v267_v16  ;;  %v170_v38 = vrot.slane %v169_v23, 1  ;;  %v160_v60 = vadd.f32 %v159_v24, %v158_v22  ;;  %v2591_v5 = vld [vmem:[%s3250_s1 + $0x420] sm:$0xff]  ;;  %v2596_v16 = vld [vmem:[%s3250_s1 + $0x428] sm:$0xff]  ;;  %v2636_v0 = vld [vmem:[%s3250_s1 + $0x4b8] sm:$0xff] }
  0x40   :  { %1619 = vmatpush3.bf16.msra.mxu0 %v1618_v1  ;;  %v1654_v1 = vpack.c.bf16 %v2446_v31, %v2441_v30  ;;  %v282_v62 = vrot.slane %v281_v33, 1  ;;  %v272_v2 = vadd.f32 %v271_v35, %v270_v11  ;;  %v150_v55 = vadd.f32 %v149_v27, %v148_v53  ;;  %v2601_v22 = vld [vmem:[%s3250_s1 + $0x5a0] sm:$0xff]  ;;  %v2606_v20 = vld [vmem:[%s3250_s1 + $0x5a8] sm:$0xff]  ;;  %v2646_v24 = vld [vmem:[%s3250_s1 + $0x438] sm:$0xff] }
  0x41   :  { %1621 = vmatprep.subr.bf16.mxu0 %v1620_v12  ;;  %v1626_v12 = vpack.c.bf16 %v2462_v26, %v2457_v25  ;;  %v635_v41 = vsel %vm629_vm0, %v269_v37, %v157_v59  ;;  %v171_v43 = vadd.f32 %v170_v38, %v169_v23  ;;  %v161_v47 = vrot.slane %v160_v60, 2  ;;  %v2611_v21 = vld [vmem:[%s3250_s1 + $0x520] sm:$0xff]  ;;  %v2616_v53 = vld [vmem:[%s3250_s1 + $0x528] sm:$0xff]  ;;  %v2631_v59 = vld [vmem:[%s3250_s1 + $0x4b0] sm:$0xff] }
  0x42   :  { %1651 = vmatpush3.bf16.msra.mxu1 %v1650_v3  ;;  %v262_v56 = vadd.f32 %v261_v28, %v260_v58  ;;  %v283_v57 = vadd.f32 %v282_v62, %v281_v33  ;;  %v273_v7 = vrot.slane %v272_v2, 2  ;;  %v1656_v51 = vpack.c.bf16 %v468_v42, %v2473_v32  ;;  %866 = vmatprep.mubr.f32.mxu0 %v635_v41  ;;  %v2621_v58 = vld [vmem:[%s3249_s0 + $0x20] sm:$0xff]  ;;  %v2641_v23 = vld [vmem:[%s3250_s1 + $0x430] sm:$0xff]  ;;  %v2659_v33 = vld [vmem:[%s3250_s1 + $0x5b8] sm:$0xff] }
  0x43   :  { %1653 = vmatprep.subr.bf16.mxu1 %v1652_v40  ;;  %v1660_v3 = vpack.c.bf16 %v486_v61, %v485_v49  ;;  %v162_v13 = vadd.f32 %v161_v47, %v160_v60  ;;  %v2555_v40 = vld [vmem:[%s3250_s1 + $0x418] sm:$0xff]  ;;  %v1658_v10 = vpack.c.bf16 %v2496_v39, %v2491_v36  ;;  %v1662_v30 = vpack.c.bf16 %v2507_v45, %v2502_v44  ;;  %v2654_v28 = vld [vmem:[%s3250_s1 + $0x5b0] sm:$0xff]  ;;  %v32_v35 = vld [vmem:[%s3249_s0 + $0x60] sm:$0xff] }
  0x44   :  { %1623 = vmatpush3.bf16.msra.mxu0 %v1622_v34  ;;  %v2542_v34 = vld [vmem:[%s3250_s1 + $0x508] sm:$0xff]  ;;  %v637_v46 = vsel %vm629_vm0, %v283_v57, %v171_v43  ;;  %v274_v48 = vadd.f32 %v273_v7, %v272_v2  ;;  %v634_v11 = vsel %vm629_vm0, %v262_v56, %v150_v55  ;;  %v1692_v25 = vpack.c.bf16 %v2523_v6, %v2518_v63  ;;  %v2671_v38 = vld [vmem:[%s3250_s1 + $0x530] sm:$0xff]  ;;  %v2676_v60 = vld [vmem:[%s3250_s1 + $0x538] sm:$0xff] }
  0x45   :  { %1625 = vmatprep.subr.bf16.mxu0 %v1624_v29  ;;  %936 = vmatprep.mubr.f32.mxu1 %v637_v46  ;;  %v163_v17 = vrot.slane %v162_v13, 1  ;;  %v1664_v27 = vpack.c.bf16 %v488_v18, %v2528_v50  ;;  %v1694_v32 = vpack.c.bf16 %v2542_v34, %v2537_v14  ;;  %v1666_v37 = vpack.c.bf16 %v2555_v40, %v2550_v19  ;;  %v2698_v36 = vld [vmem:[%s3250_s1 + $0x4c8] sm:$0xff]  ;;  %v48_v39 = vld [vmem:[%s3249_s0 + $0xe0] sm:$0xff] }
  0x46   :  { %1655 = vmatpush3.bf16.msra.mxu1 %v1654_v1  ;;  %v275_v31 = vrot.slane %v274_v48, 1  ;;  %v40_v1 = vld [vmem:[%s3249_s0 + $0xa0] sm:$0xff]  ;;  %v61_v42 = vunpack.c.h.bf16 %v2621_v58  ;;  %v1696_v49 = vpack.c.bf16 %v2566_v9, %v2561_v8  ;;  %v1698_v61 = vpack.c.bf16 %v2576_v54, %v2571_v52  ;;  %v2722_v63 = vld [vmem:[%s3250_s1 + $0x448] sm:$0xff] }
  0x47   :  { %1657 = vmatprep.subr.bf16.mxu1 %v1656_v51  ;;  %v164_v26 = vadd.f32 %v163_v17, %v162_v13  ;;  %v1668_v62 = vpack.c.bf16 %v2586_v4, %v2581_v15  ;;  %v1670_v2 = vpack.c.bf16 %v2596_v16, %v2591_v5  ;;  %v1700_v43 = vpack.c.bf16 %v2606_v20, %v2601_v22  ;;  %v2717_v57 = vld [vmem:[%s3250_s1 + $0x440] sm:$0xff]  ;;  %v2727_v7 = vld [vmem:[%s3249_s0 + $0x28] sm:$0xff] }
  0x48   :  { %1627 = vmatpush3.bf16.msra.mxu0 %v1626_v12  ;;  %v276_v29 = vadd.f32 %v275_v31, %v274_v48  ;;  %v2693_v12 = vld [vmem:[%s3250_s1 + $0x4c0] sm:$0xff]  ;;  %v1702_v44 = vpack.c.bf16 %v2616_v53, %v2611_v21  ;;  %v77_v45 = vunpack.c.h.bf16 %v32_v35  ;;  %v1672_v47 = vpack.c.bf16 %v2636_v0, %v2631_v59  ;;  %v33_v14 = vld [vmem:[%s3249_s0 + $0x68] sm:$0xff]  ;;  %v527_v53 = vld [vmem:[%s3250_s1 + $0x5d0] sm:$0xff] }
  0x49   :  { %1661 = vmatprep.subr.bf16.mxu0 %v1660_v3  ;;  %v1674_v55 = vpack.c.bf16 %v2646_v24, %v2641_v23  ;;  %v1704_v56 = vpack.c.bf16 %v2659_v33, %v2654_v28  ;;  %v93_v6 = vunpack.c.h.bf16 %v40_v1  ;;  %v1706_v50 = vpack.c.bf16 %v2676_v60, %v2671_v38  ;;  %v2739_v34 = vld [vmem:[%s3249_s0 + $0xa8] sm:$0xff]  ;;  %v2744_v18 = vld [vmem:[%s3250_s1 + $0x5c0] sm:$0xff] }
  0x4a   :  { %1659 = vmatpush3.bf16.msra.mxu1 %v1658_v10  ;;  %v636_v41 = vsel %vm629_vm0, %v276_v29, %v164_v26  ;;  %v1676_v51 = vpack.c.bf16 %v2698_v36, %v2693_v12  ;;  %v109_v3 = vunpack.c.h.bf16 %v48_v39  ;;  %v179_v13 = vadd.f32 %v77_v45, %v61_v42  ;;  %v2749_v19 = vld [vmem:[%s3250_s1 + $0x5c8] sm:$0xff]  ;;  %v2760_v54 = vld [vmem:[%s3250_s1 + $0x540] sm:$0xff] }
  0x4b   :  { %867 = vmatmul.mubr.f32.vlgmr.msra.gmra.mrb[2].mxu0 %v634_v11  ;;  %1693 = vmatprep.subr.bf16.mxu1 %v1692_v25  ;;  %v60_v40 = vunpack.c.l.bf16 %v2621_v58  ;;  %v76_v46 = vunpack.c.l.bf16 %v32_v35  ;;  %v92_v48 = vunpack.c.l.bf16 %v40_v1  ;;  %v108_v8 = vunpack.c.l.bf16 %v48_v39  ;;  %v49_v9 = vld [vmem:[%s3249_s0 + $0xe8] sm:$0xff]  ;;  %v2788_v39 = vld [vmem:[%s3250_s1 + $0x458] sm:$0xff]  ;;  %v497_v28 = vld [vmem:[%s3250_s1 + $0x4e0] sm:$0xff] }
  0x4c   :  { %1663 = vmatpush3.bf16.msra.mxu0 %v1662_v30  ;;  %v1678_v52 = vpack.c.bf16 %v2722_v63, %v2717_v57  ;;  %v2765_v15 = vld [vmem:[%s3250_s1 + $0x548] sm:$0xff]  ;;  %v180_v4 = vrot.slane %v179_v13, 4  ;;  %v291_v5 = vadd.f32 %v109_v3, %v93_v6  ;;  %v63_v16 = vunpack.c.h.bf16 %v2727_v7  ;;  %v2845_v60 = vld [vmem:[%s3250_s1 + $0x5e0] sm:$0xff] }
  0x4d   :  { %1665 = vmatprep.subr.bf16.mxu0 %v1664_v27  ;;  %937 = vmatmul.mubr.f32.vlgmr.msra.gmra.mrb[2].mxu1 %v636_v41  ;;  %v172_v17 = vadd.f32 %v76_v46, %v60_v40  ;;  %v284_v22 = vadd.f32 %v108_v8, %v92_v48  ;;  %v79_v20 = vunpack.c.h.bf16 %v33_v14  ;;  %v95_v58 = vunpack.c.h.bf16 %v2739_v34  ;;  %v498_v33 = vld [vmem:[%s3250_s1 + $0x4e8] sm:$0xff]  ;;  %v2825_v8 = vld [vmem:[%s3250_s1 + $0x558] sm:$0xff] }
  0x4e   :  { %1695 = vmatpush3.bf16.msra.mxu1 %v1694_v32  ;;  %v1708_v10 = vpack.c.bf16 %v2749_v19, %v2744_v18  ;;  %v181_v11 = vadd.f32 %v180_v4, %v179_v13  ;;  %v292_v30 = vrot.slane %v291_v5, 4  ;;  %v111_v31 = vunpack.c.h.bf16 %v49_v9  ;;  %v482_v38 = vld [vmem:[%s3250_s1 + $0x468] sm:$0xff]  ;;  %v499_v19 = vld [vmem:[%s3250_s1 + $0x4f0] sm:$0xff] }
  0x4f   :  { %1697 = vmatprep.subr.bf16.mxu1 %v1696_v49  ;;  %v1710_v59 = vpack.c.bf16 %v2765_v15, %v2760_v54  ;;  %v173_v0 = vrot.slane %v172_v17, 4  ;;  %v285_v25 = vrot.slane %v284_v22, 4  ;;  %v193_v26 = vadd.f32 %v79_v20, %v63_v16  ;;  %v530_v18 = vld [vmem:[%s3250_s1 + $0x5e8] sm:$0xff] }
  0x50   :  { %1667 = vmatpush3.bf16.msra.mxu0 %v1666_v37  ;;  %v182_v27 = vrot.slane %v181_v11, 2  ;;  %v293_v35 = vadd.f32 %v292_v30, %v291_v5  ;;  %v305_v29 = vadd.f32 %v111_v31, %v95_v58  ;;  %v62_v32 = vunpack.c.l.bf16 %v2727_v7  ;;  %v495_v37 = vld [vmem:[%s3250_s1 + $0x4d0] sm:$0xff]  ;;  %v481_v30 = vld [vmem:[%s3250_s1 + $0x460] sm:$0xff] }
  0x51   :  { %1669 = vmatprep.subr.bf16.mxu0 %v1668_v62  ;;  %v174_v1 = vadd.f32 %v173_v0, %v172_v17  ;;  %v286_v42 = vadd.f32 %v285_v25, %v284_v22  ;;  %v194_v49 = vrot.slane %v193_v26, 4  ;;  %v78_v62 = vunpack.c.l.bf16 %v33_v14  ;;  %v2862_v25 = vld [vmem:[%s3250_s1 + $0x560] sm:$0xff] }
  0x52   :  { %1699 = vmatpush3.bf16.msra.mxu1 %v1698_v61  ;;  %v496_v61 = vld [vmem:[%s3250_s1 + $0x4d8] sm:$0xff]  ;;  %v183_v41 = vadd.f32 %v182_v27, %v181_v11  ;;  %v306_v45 = vrot.slane %v305_v29, 4  ;;  %v110_v13 = vunpack.c.l.bf16 %v49_v9  ;;  %v1684_v11 = vpack.c.bf16 %v498_v33, %v497_v28  ;;  %v2872_v27 = vld [vmem:[%s3250_s1 + $0x470] sm:$0xff] }
  0x53   :  { %1701 = vmatprep.subr.bf16.mxu1 %v1700_v43  ;;  %v294_v43 = vrot.slane %v293_v35, 2  ;;  %v175_v6 = vrot.slane %v174_v1, 2  ;;  %v287_v7 = vrot.slane %v286_v42, 2  ;;  %v195_v3 = vadd.f32 %v194_v49, %v193_v26  ;;  %v2867_v26 = vld [vmem:[%s3250_s1 + $0x568] sm:$0xff] }
  0x54   :  { %1671 = vmatpush3.bf16.msra.mxu0 %v1670_v2  ;;  %v2783_v2 = vld [vmem:[%s3250_s1 + $0x450] sm:$0xff]  ;;  %v184_v14 = vrot.slane %v183_v41, 1  ;;  %v307_v46 = vadd.f32 %v306_v45, %v305_v29  ;;  %v186_v48 = vadd.f32 %v78_v62, %v62_v32  ;;  %v1686_v49 = vpack.c.bf16 %v482_v38, %v481_v30  ;;  %v2890_v62 = vld [vmem:[%s3250_s1 + $0x5f8] sm:$0xff] }
  0x55   :  { %1673 = vmatprep.subr.bf16.mxu0 %v1672_v47  ;;  %v94_v47 = vunpack.c.l.bf16 %v2739_v34  ;;  %v295_v40 = vadd.f32 %v294_v43, %v293_v35  ;;  %v1680_v34 = vpack.c.bf16 %v496_v61, %v495_v37  ;;  %v1682_v21 = vpack.c.bf16 %v2788_v39, %v2783_v2  ;;  %v2877_v35 = vld [vmem:[%s3250_s1 + $0x478] sm:$0xff]  ;;  %v2882_v29 = vld [vmem:[%s3250_s1 + $0x5f0] sm:$0xff]  ;;  %v550_v43 = vld [vmem:[%s3250_s1 + $0x688] sm:$0xff] }
  0x56   :  { %1703 = vmatpush3.bf16.msra.mxu1 %v1702_v44  ;;  %v196_v23 = vrot.slane %v195_v3, 2  ;;  %v528_v44 = vld [vmem:[%s3250_s1 + $0x5d8] sm:$0xff]  ;;  %v185_v12 = vadd.f32 %v184_v14, %v183_v41  ;;  %v176_v9 = vadd.f32 %v175_v6, %v174_v1  ;;  %v288_v4 = vadd.f32 %v287_v7, %v286_v42  ;;  %v2895_v61 = vld [vmem:[%s3250_s1 + $0x570] sm:$0xff]  ;;  %v549_v41 = vld [vmem:[%s3250_s1 + $0x680] sm:$0xff] }
  0x57   :  { %1705 = vmatprep.subr.bf16.mxu1 %v1704_v56  ;;  %v298_v24 = vadd.f32 %v110_v13, %v94_v47  ;;  %v296_v36 = vrot.slane %v295_v40, 1  ;;  %v187_v56 = vrot.slane %v186_v48, 4  ;;  %v1712_v58 = vpack.c.bf16 %v528_v44, %v527_v53  ;;  %v2900_v2 = vld [vmem:[%s3250_s1 + $0x578] sm:$0xff] }
  0x58   :  { %1675 = vmatpush3.bf16.msra.mxu0 %v1674_v55  ;;  %v308_v55 = vrot.slane %v307_v46, 2  ;;  %v197_v5 = vadd.f32 %v196_v23, %v195_v3  ;;  %v177_v32 = vrot.slane %v176_v9, 1  ;;  %v289_v37 = vrot.slane %v288_v4, 1 }
  0x59   :  { %1677 = vmatprep.subr.bf16.mxu0 %v1676_v51  ;;  %v2820_v51 = vld [vmem:[%s3250_s1 + $0x550] sm:$0xff]  ;;  %v299_v16 = vrot.slane %v298_v24, 4  ;;  %v297_v17 = vadd.f32 %v296_v36, %v295_v40  ;;  %v188_v20 = vadd.f32 %v187_v56, %v186_v48  ;;  %v1716_v15 = vpack.c.bf16 %v530_v18, %v2845_v60 }
  0x5a   :  { %1707 = vmatpush3.bf16.msra.mxu1 %v1706_v50  ;;  %v309_v22 = vadd.f32 %v308_v55, %v307_v46  ;;  %v198_v57 = vrot.slane %v197_v5, 1  ;;  %v1714_v50 = vpack.c.bf16 %v2825_v8, %v2820_v51 }
  0x5b   :  { %1709 = vmatprep.subr.bf16.mxu1 %v1708_v10  ;;  %v300_v63 = vadd.f32 %v299_v16, %v298_v24  ;;  %v639_v10 = vsel %vm629_vm0, %v297_v17, %v185_v12  ;;  %v189_v0 = vrot.slane %v188_v20, 2 }
  0x5c   :  { %1679 = vmatpush3.bf16.msra.mxu0 %v1678_v52  ;;  %v500_v52 = vld [vmem:[%s3250_s1 + $0x4f8] sm:$0xff]  ;;  %v310_v31 = vrot.slane %v309_v22, 1  ;;  %1006 = vmatprep.mubr.f32.mxu0 %v639_v10  ;;  %v199_v1 = vadd.f32 %v198_v57, %v197_v5 }
  0x5d   :  { %1681 = vmatprep.subr.bf16.mxu0 %v1680_v34  ;;  %v301_v42 = vrot.slane %v300_v63, 2  ;;  %v190_v54 = vadd.f32 %v189_v0, %v188_v20 }
  0x5e   :  { %1711 = vmatpush3.bf16.msra.mxu1 %v1710_v59  ;;  %v311_v39 = vadd.f32 %v310_v31, %v309_v22  ;;  %v1688_v59 = vpack.c.bf16 %v500_v52, %v499_v19 }
  0x5f   :  { %1713 = vmatprep.subr.bf16.mxu1 %v1712_v58  ;;  %v302_v45 = vadd.f32 %v301_v42, %v300_v63 }
  0x60   :  { %1683 = vmatpush3.bf16.msra.mxu0 %v1682_v21 }
  0x61   :  { %1685 = vmatprep.subr.bf16.mxu0 %v1684_v11 }
  0x62   :  { %8 = vsyncpa [#allocation4], 0  ;;  %v641_v47 = vsel %vm629_vm0, %v311_v39, %v199_v1  ;;  %v2913_v6 = vld [vmem:[%s3250_s1 + $0x600] sm:$0xff]  ;;  %v2918_v7 = vld [vmem:[%s3250_s1 + $0x608] sm:$0xff]  ;;  %v191_v14 = vrot.slane %v190_v54, 1  ;;  %v178_v21 = vadd.f32 %v177_v32, %v176_v9  ;;  %v290_v53 = vadd.f32 %v289_v37, %v288_v4  ;;  %1715 = vmatpush3.bf16.msra.mxu1 %v1714_v50  ;;  %s1815_s19 = smov [#allocation3]  }
  0x63   :  { %v2923_v3 = vld [vmem:[%s3250_s1 + $0x780] sm:$0xff]  ;;  %v2928_v13 = vld [vmem:[%s3250_s1 + $0x788] sm:$0xff]  ;;  %v2943_v48 = vld [vmem:[%s3249_s0 + $0x30] sm:$0xff]  ;;  %1076 = vmatprep.mubr.f32.mxu1 %v641_v47  ;;  %v303_v23 = vrot.slane %v302_v45, 1  ;;  %v1718_v36 = vpack.c.bf16 %v2867_v26, %v2862_v25  ;;  %v1690_v55 = vpack.c.bf16 %v2877_v35, %v2872_v27  ;;  %v1720_v56 = vpack.c.bf16 %v2890_v62, %v2882_v29  ;;  %1717 = vmatprep.subr.bf16.mxu1 %v1716_v15  ;;  %s1243_s20 = sshll.u32 %s1815_s19, 4  ;;  %s1244_s20 = int_to_ptr.vmem [resolvable:$true] %s1243_s20 }
  0x64   :  { %v2933_v40 = vld [vmem:[%s3250_s1 + $0x700] sm:$0xff]  ;;  %v2938_v46 = vld [vmem:[%s3250_s1 + $0x708] sm:$0xff]  ;;  %v2948_v34 = vld [vmem:[%s3249_s0 + $0x70] sm:$0xff]  ;;  %1687 = vmatpush3.bf16.msra.mxu0 %v1686_v49  ;;  %v1722_v4 = vpack.c.bf16 %v2900_v2, %v2895_v61  ;;  %v1724_v5 = vpack.c.bf16 %v550_v43, %v549_v41  ;;  %v65_v20 = vunpack.c.h.bf16 %v2943_v48  ;;  %v192_v11 = vadd.f32 %v191_v14, %v190_v54  ;;  %s1790_s21 = scalar_lea.vmem %s1244_s20, 32  ;;  %p1795_p1 = scmp.lt.s32.totalorder %s1244_s20, %s1244_s20 }
  0x65   :  { %v2953_v24 = vld [vmem:[%s3250_s1 + $0x690] sm:$0xff]  ;;  %v2958_v44 = vld [vmem:[%s3250_s1 + $0x698] sm:$0xff]  ;;  %1689 = vmatprep.subr.bf16.mxu0 %v1688_v59  ;;  %v3011_v22 = vld [vmem:[%s3250_s1 + $0x6a0] sm:$0xff]  ;;  %v81_v58 = vunpack.c.h.bf16 %v2948_v34  ;;  %v304_v30 = vadd.f32 %v303_v23, %v302_v45  ;;  %v638_v18 = vsel %vm629_vm0, %v290_v53, %v178_v21  ;;  %v1726_v19 = vpack.c.bf16 %v2918_v7, %v2913_v6  ;;  %p1791_p0 = scmp.ne.s32.totalorder %s1244_s20, %s1790_s21  ;;  %p1796_p2 = scmp.lt.s32.totalorder %s1790_s21, %s1790_s21 }
  0x66   :  { %v2963_v28 = vld [vmem:[%s3250_s1 + $0x610] sm:$0xff]  ;;  %v2984_v51 = vld [vmem:[%s3250_s1 + $0x618] sm:$0xff]  ;;  %v3018_v38 = vld [vmem:[%s3250_s1 + $0x6a8] sm:$0xff]  ;;  %v1756_v52 = vpack.c.bf16 %v2928_v13, %v2923_v3  ;;  %v1758_v10 = vpack.c.bf16 %v2938_v46, %v2933_v40  ;;  %1719 = vmatpush3.bf16.msra.mxu1 %v1718_v36  ;;  %v1728_v25 = vpack.c.bf16 %v2958_v44, %v2953_v24  ;;  %v64_v35 = vunpack.c.l.bf16 %v2943_v48 }
  0x67   :  { %v2968_v33 = vld [vmem:[%s3249_s0 + $0xb0] sm:$0xff]  ;;  %v2994_v9 = vld [vmem:[%s3250_s1 + $0x798] sm:$0xff]  ;;  %v3023_v60 = vld [vmem:[%s3250_s1 + $0x620] sm:$0xff]  ;;  %v1730_v26 = vpack.c.bf16 %v2984_v51, %v2963_v28  ;;  %1721 = vmatprep.subr.bf16.mxu1 %v1720_v56  ;;  %v1732_v37 = vpack.c.bf16 %v3018_v38, %v3011_v22  ;;  %v80_v42 = vunpack.c.l.bf16 %v2948_v34  ;;  %v640_v61 = vsel %vm629_vm0, %v304_v30, %v192_v11  ;;  %p1797_p3 = por %p1796_p2, %p1795_p1 }
  0x68   :  { %v2973_v12 = vld [vmem:[%s3249_s0 + $0xf0] sm:$0xff]  ;;  %v3006_v17 = vld [vmem:[%s3250_s1 + $0x718] sm:$0xff]  ;;  %v3028_v57 = vld [vmem:[%s3250_s1 + $0x628] sm:$0xff]  ;;  %v97_v63 = vunpack.c.h.bf16 %v2968_v33  ;;  %1691 = vmatpush3.bf16.msra.mxu0 %v1690_v55  ;;  %v207_v15 = vadd.f32 %v81_v58, %v65_v20  ;;  %v96_v43 = vunpack.c.l.bf16 %v2968_v33 }
  0x69   :  { %v2989_v8 = vld [vmem:[%s3250_s1 + $0x790] sm:$0xff]  ;;  %v113_v50 = vunpack.c.h.bf16 %v2973_v12  ;;  %v3042_v31 = vld [vmem:[%s3250_s1 + $0x7a0] sm:$0xff]  ;;  %v3047_v0 = vld [vmem:[%s3250_s1 + $0x7a8] sm:$0xff]  ;;  %1725 = vmatprep.subr.bf16.mxu0 %v1724_v5  ;;  %v1734_v1 = vpack.c.bf16 %v3028_v57, %v3023_v60  ;;  %v112_v45 = vunpack.c.l.bf16 %v2973_v12  ;;  %v200_v47 = vadd.f32 %v80_v42, %v64_v35  ;;  %p1798_p4 = pnand %p1797_p3, %p1791_p0 }
  0x6a   :  { %v3001_v16 = vld [vmem:[%s3250_s1 + $0x710] sm:$0xff]  ;;  %v1760_v27 = vpack.c.bf16 %v2994_v9, %v2989_v8  ;;  %v27_v29 = vld [vmem:[%s3249_s0 + $0x38] sm:$0xff]  ;;  %v1764_v2 = vpack.c.bf16 %v3047_v0, %v3042_v31  ;;  %v3078_v39 = vld [vmem:[%s3250_s1 + $0x720] sm:$0xff]  ;;  %1723 = vmatpush3.bf16.msra.mxu1 %v1722_v4  ;;  %v208_v7 = vrot.slane %v207_v15, 4 }
  0x6b   :  { %v1762_v32 = vpack.c.bf16 %v3006_v17, %v3001_v16  ;;  %v35_v49 = vld [vmem:[%s3249_s0 + $0x78] sm:$0xff]  ;;  %v3083_v54 = vld [vmem:[%s3250_s1 + $0x728] sm:$0xff]  ;;  %v319_v59 = vadd.f32 %v113_v50, %v97_v63  ;;  %1007 = vmatmul.mubr.f32.vlgmr.msra.gmra.mrb[4].mxu0 %v638_v18  ;;  %v67_v6 = vunpack.c.h.bf16 %v27_v29  ;;  %1757 = vmatprep.subr.bf16.mxu1 %v1756_v52  ;;  %v555_v46 = vld [vmem:[%s3250_s1 + $0x6b0] sm:$0xff]  ;;  %v312_v48 = vadd.f32 %v112_v45, %v96_v43 }
  0x6c   :  { %v43_v62 = vld [vmem:[%s3249_s0 + $0xb8] sm:$0xff]  ;;  %1727 = vmatpush3.bf16.msra.mxu0 %v1726_v19  ;;  %v83_v13 = vunpack.c.h.bf16 %v35_v49  ;;  %v1766_v40 = vpack.c.bf16 %v3083_v54, %v3078_v39  ;;  %v66_v21 = vunpack.c.l.bf16 %v27_v29  ;;  %v3101_v23 = vld [vmem:[%s3250_s1 + $0x630] sm:$0xff]  ;;  %v209_v44 = vadd.f32 %v208_v7, %v207_v15  ;;  %v557_v63 = vld [vmem:[%s3250_s1 + $0x6c0] sm:$0xff] }
  0x6d   :  { %v51_v41 = vld [vmem:[%s3249_s0 + $0xf8] sm:$0xff]  ;;  %v320_v3 = vrot.slane %v319_v59, 4  ;;  %v99_v14 = vunpack.c.h.bf16 %v43_v62  ;;  %1729 = vmatprep.subr.bf16.mxu0 %v1728_v25  ;;  %v82_v12 = vunpack.c.l.bf16 %v35_v49  ;;  %1077 = vmatmul.mubr.f32.vlgmr.msra.gmra.mrb[4].mxu1 %v640_v61  ;;  %v201_v36 = vrot.slane %v200_v47, 4  ;;  %v587_v58 = vld [vmem:[%s3250_s1 + $0x7b0] sm:$0xff]  ;;  %v558_v50 = vld [vmem:[%s3250_s1 + $0x6c8] sm:$0xff] }
  0x6e   :  { %v115_v34 = vunpack.c.h.bf16 %v51_v41  ;;  %v556_v53 = vld [vmem:[%s3250_s1 + $0x6b8] sm:$0xff]  ;;  %v221_v33 = vadd.f32 %v83_v13, %v67_v6  ;;  %v313_v55 = vrot.slane %v312_v48, 4  ;;  %v98_v51 = vunpack.c.l.bf16 %v43_v62  ;;  %1759 = vmatpush3.bf16.msra.mxu1 %v1758_v10  ;;  %v571_v25 = vld [vmem:[%s3250_s1 + $0x730] sm:$0xff]  ;;  %v541_v42 = vld [vmem:[%s3250_s1 + $0x640] sm:$0xff] }
  0x6f   :  { %v3106_v24 = vld [vmem:[%s3250_s1 + $0x638] sm:$0xff]  ;;  %v321_v28 = vadd.f32 %v320_v3, %v319_v59  ;;  %v210_v8 = vrot.slane %v209_v44, 2  ;;  %v114_v5 = vunpack.c.l.bf16 %v51_v41  ;;  %1761 = vmatprep.subr.bf16.mxu1 %v1760_v27  ;;  %v1736_v22 = vpack.c.bf16 %v556_v53, %v555_v46  ;;  %v542_v49 = vld [vmem:[%s3250_s1 + $0x648] sm:$0xff]  ;;  %v589_v60 = vld [vmem:[%s3250_s1 + $0x7c0] sm:$0xff] }
  0x70   :  { %v333_v56 = vadd.f32 %v115_v34, %v99_v14  ;;  %1731 = vmatpush3.bf16.msra.mxu0 %v1730_v26  ;;  %v222_v4 = vrot.slane %v221_v33, 4  ;;  %v1738_v20 = vpack.c.bf16 %v3106_v24, %v3101_v23  ;;  %v214_v30 = vadd.f32 %v82_v12, %v66_v21  ;;  %v588_v38 = vld [vmem:[%s3250_s1 + $0x7b8] sm:$0xff]  ;;  %v559_v41 = vld [vmem:[%s3250_s1 + $0x6d0] sm:$0xff]  ;;  %v574_v13 = vld [vmem:[%s3250_s1 + $0x748] sm:$0xff] }
  0x71   :  { %v322_v9 = vrot.slane %v321_v28, 2  ;;  %1733 = vmatprep.subr.bf16.mxu0 %v1732_v37  ;;  %v211_v18 = vadd.f32 %v210_v8, %v209_v44  ;;  %v326_v10 = vadd.f32 %v114_v5, %v98_v51  ;;  %v572_v26 = vld [vmem:[%s3250_s1 + $0x738] sm:$0xff]  ;;  %v202_v27 = vadd.f32 %v201_v36, %v200_v47  ;;  %v573_v47 = vld [vmem:[%s3250_s1 + $0x740] sm:$0xff]  ;;  %v543_v14 = vld [vmem:[%s3250_s1 + $0x650] sm:$0xff] }
  0x72   :  { %v334_v11 = vrot.slane %v333_v56, 4  ;;  %v223_v52 = vadd.f32 %v222_v4, %v221_v33  ;;  %v314_v35 = vadd.f32 %v313_v55, %v312_v48  ;;  %v215_v37 = vrot.slane %v214_v30, 4  ;;  %1763 = vmatpush3.bf16.msra.mxu1 %v1762_v32  ;;  %v560_v31 = vld [vmem:[%s3250_s1 + $0x6d8] sm:$0xff]  ;;  %v561_v44 = vld [vmem:[%s3250_s1 + $0x6e0] sm:$0xff]  ;;  %v575_v55 = vld [vmem:[%s3250_s1 + $0x750] sm:$0xff] }
  0x73   :  { %v323_v19 = vadd.f32 %v322_v9, %v321_v28  ;;  %v212_v62 = vrot.slane %v211_v18, 1  ;;  %v327_v59 = vrot.slane %v326_v10, 4  ;;  %1765 = vmatprep.subr.bf16.mxu1 %v1764_v2  ;;  %v1768_v16 = vpack.c.bf16 %v588_v38, %v587_v58  ;;  %v544_v46 = vld [vmem:[%s3250_s1 + $0x658] sm:$0xff]  ;;  %v562_v28 = vld [vmem:[%s3250_s1 + $0x6e8] sm:$0xff]  ;;  %v545_v8 = vld [vmem:[%s3250_s1 + $0x660] sm:$0xff] }
  0x74   :  { %v335_v29 = vadd.f32 %v334_v11, %v333_v56  ;;  %1735 = vmatpush3.bf16.msra.mxu0 %v1734_v1  ;;  %v224_v15 = vrot.slane %v223_v52, 2  ;;  %v1740_v17 = vpack.c.bf16 %v558_v50, %v557_v63  ;;  %v1770_v32 = vpack.c.bf16 %v572_v26, %v571_v25  ;;  %v590_v1 = vld [vmem:[%s3250_s1 + $0x7c8] sm:$0xff]  ;;  %v592_v24 = vld [vmem:[%s3250_s1 + $0x7d8] sm:$0xff]  ;;  %v563_v50 = vld [vmem:[%s3250_s1 + $0x6f0] sm:$0xff] }
  0x75   :  { %v324_v61 = vrot.slane %v323_v19, 1  ;;  %1737 = vmatprep.subr.bf16.mxu0 %v1736_v22  ;;  %v213_v0 = vadd.f32 %v212_v62, %v211_v18  ;;  %v1742_v45 = vpack.c.bf16 %v542_v49, %v541_v42  ;;  %v203_v6 = vrot.slane %v202_v27, 2  ;;  %v576_v51 = vld [vmem:[%s3250_s1 + $0x758] sm:$0xff]  ;;  %v546_v9 = vld [vmem:[%s3250_s1 + $0x668] sm:$0xff]  ;;  %v547_v26 = vld [vmem:[%s3250_s1 + $0x670] sm:$0xff] }
  0x76   :  { %v336_v57 = vrot.slane %v335_v29, 2  ;;  %v225_v43 = vadd.f32 %v224_v15, %v223_v52  ;;  %v315_v7 = vrot.slane %v314_v35, 2  ;;  %1767 = vmatpush3.bf16.msra.mxu1 %v1766_v40  ;;  %v216_v21 = vadd.f32 %v215_v37, %v214_v30  ;;  %v591_v40 = vld [vmem:[%s3250_s1 + $0x7d0] sm:$0xff]  ;;  %v593_v30 = vld [vmem:[%s3250_s1 + $0x7e0] sm:$0xff]  ;;  %v594_v63 = vld [vmem:[%s3250_s1 + $0x7e8] sm:$0xff] }
  0x77   :  { %v325_v2 = vadd.f32 %v324_v61, %v323_v19  ;;  %v328_v53 = vadd.f32 %v327_v59, %v326_v10  ;;  %1769 = vmatprep.subr.bf16.mxu1 %v1768_v16  ;;  %v1772_v39 = vpack.c.bf16 %v590_v1, %v589_v60  ;;  %v1744_v54 = vpack.c.bf16 %v560_v31, %v559_v41  ;;  %v564_v18 = vld [vmem:[%s3250_s1 + $0x6f8] sm:$0xff]  ;;  %v577_v10 = vld [vmem:[%s3250_s1 + $0x760] sm:$0xff]  ;;  %v578_v25 = vld [vmem:[%s3250_s1 + $0x768] sm:$0xff] }
  0x78   :  { %v337_v3 = vadd.f32 %v336_v57, %v335_v29  ;;  %1739 = vmatpush3.bf16.msra.mxu0 %v1738_v20  ;;  %v226_v34 = vrot.slane %v225_v43, 1  ;;  %v1774_v12 = vpack.c.bf16 %v574_v13, %v573_v47  ;;  %v1746_v36 = vpack.c.bf16 %v544_v46, %v543_v14  ;;  %v595_v61 = vld [vmem:[%s3250_s1 + $0x7f0] sm:$0xff]  ;;  %v596_v15 = vld [vmem:[%s3250_s1 + $0x7f8] sm:$0xff] }
  0x79   :  { %v643_v48 = vsel %vm629_vm0, %v325_v2, %v213_v0  ;;  %1741 = vmatprep.subr.bf16.mxu0 %v1740_v17  ;;  %v204_v4 = vadd.f32 %v203_v6, %v202_v27  ;;  %v316_v5 = vadd.f32 %v315_v7, %v314_v35  ;;  %v217_v22 = vrot.slane %v216_v21, 2  ;;  %v548_v27 = vld [vmem:[%s3250_s1 + $0x678] sm:$0xff]  ;;  %v579_v17 = vld [vmem:[%s3250_s1 + $0x770] sm:$0xff] }
  0x7a   :  { %v338_v23 = vrot.slane %v337_v3, 1  ;;  %1146 = vmatprep.mubr.f32.mxu0 %v643_v48  ;;  %v227_v33 = vadd.f32 %v226_v34, %v225_v43  ;;  %1771 = vmatpush3.bf16.msra.mxu1 %v1770_v32  ;;  %v329_v20 = vrot.slane %v328_v53, 2  ;;  %v1776_v58 = vpack.c.bf16 %v592_v24, %v591_v40  ;;  %v580_v60 = vld [vmem:[%s3250_s1 + $0x778] sm:$0xff] }
  0x7b   :  { %1773 = vmatprep.subr.bf16.mxu1 %v1772_v39  ;;  %v1748_v11 = vpack.c.bf16 %v562_v28, %v561_v44  ;;  %v1778_v19 = vpack.c.bf16 %v576_v51, %v575_v55  ;;  %v1750_v52 = vpack.c.bf16 %v546_v9, %v545_v8  ;;  %v205_v35 = vrot.slane %v204_v4, 1 }
  0x7c   :  { %v339_v56 = vadd.f32 %v338_v23, %v337_v3  ;;  %1743 = vmatpush3.bf16.msra.mxu0 %v1742_v45  ;;  %v317_v29 = vrot.slane %v316_v5, 1  ;;  %v218_v37 = vadd.f32 %v217_v22, %v216_v21  ;;  %v330_v42 = vadd.f32 %v329_v20, %v328_v53 }
  0x7d   :  { %1745 = vmatprep.subr.bf16.mxu0 %v1744_v54  ;;  %v1780_v49 = vpack.c.bf16 %v594_v63, %v593_v30  ;;  %v1752_v62 = vpack.c.bf16 %v564_v18, %v563_v50  ;;  %v1782_v59 = vpack.c.bf16 %v578_v25, %v577_v10  ;;  %v1754_v16 = vpack.c.bf16 %v548_v27, %v547_v26  ;;  %v1251_v50 = vld [vmem:[%s3251_s2] ss:$0 sm:$0xff] }
  0x7e   :  { %v645_v38 = vsel %vm629_vm0, %v339_v56, %v227_v33  ;;  %1775 = vmatpush3.bf16.msra.mxu1 %v1774_v12  ;;  %v206_v57 = vadd.f32 %v205_v35, %v204_v4  ;;  %v318_v32 = vadd.f32 %v317_v29, %v316_v5  ;;  %v219_v1 = vrot.slane %v218_v37, 1 }
  0x7f   :  { %1216 = vmatprep.mubr.f32.mxu1 %v645_v38  ;;  %1777 = vmatprep.subr.bf16.mxu1 %v1776_v58  ;;  %v331_v41 = vrot.slane %v330_v42, 1  ;;  %v1784_v31 = vpack.c.bf16 %v596_v15, %v595_v61  ;;  %v1786_v0 = vpack.c.bf16 %v580_v60, %v579_v17  ;;  %v1814_v6 = vmov 0.0  }
  0x80   :  { %1747 = vmatpush3.bf16.msra.mxu0 %v1746_v36  ;;  %v642_v2 = vsel %vm629_vm0, %v318_v32, %v206_v57  ;;  %v220_v43 = vadd.f32 %v219_v1, %v218_v37  ;;  %19 = vst [vmem:[#allocation2] sm:$0x3] %v1814_v6 }
  0x81   :  { %1749 = vmatprep.subr.bf16.mxu0 %v1748_v11  ;;  %v332_v45 = vadd.f32 %v331_v41, %v330_v42 }
  0x82   :  { %1779 = vmatpush3.bf16.msra.mxu1 %v1778_v19 }
  0x83   :  { %1781 = vmatprep.subr.bf16.mxu1 %v1780_v49  ;;  %v644_v47 = vsel %vm629_vm0, %v332_v45, %v220_v43 }
  0x84   :  { %1751 = vmatpush3.bf16.msra.mxu0 %v1750_v52 }
  0x85   :  { %1753 = vmatprep.subr.bf16.mxu0 %v1752_v62 }
  0x86   :  { %1783 = vmatpush3.bf16.msra.mxu1 %v1782_v59 }
  0x87   :  { %1785 = vmatprep.subr.bf16.mxu1 %v1784_v31  ;;  %v340_v30 = vld [vmem:[#allocation2] sm:$0x3] }
  0x88   :  { %1755 = vmatpush3.bf16.msra.mxu0 %v1754_v16 }
  0x8a   :  { %1787 = vmatpush3.bf16.msra.mxu1 %v1786_v0 }
  0x8b   :  { %1147 = vmatmul.mubr.f32.vlgmr.msra.gmra.mrb[6].mxu0 %v642_v2 }
  0x8d   :  { %1217 = vmatmul.mubr.f32.vlgmr.msra.gmra.mrb[6].mxu1 %v644_v47 }
  0xfe   :  { %v1284_v7 = vpop.f32.mrb[0].mxu0 }
  0xff   :  { %v1285_v3 = vpop.f32.mrb[1].mxu0 }
 0x100   :  { %v1286_v13 = vadd.f32 %v1285_v3, %v1284_v7  ;;  %v1319_v14 = vpop.f32.mrb[0].mxu1 }
 0x101   :  { %v1320_v46 = vpop.f32.mrb[1].mxu1 }
 0x102   :  { %v1321_v48 = vadd.f32 %v1320_v46, %v1319_v14 }
 0x104   :  { %v799_v34 = vadd.f32 %v1321_v48, %v1286_v13 }
 0x11e   :  { %v1354_v21 = vpop.f32.mrb[2].mxu0 }
 0x11f   :  { %v1355_v53 = vpop.f32.mrb[3].mxu0 }
 0x120   :  { %v1356_v39 = vadd.f32 %v1355_v53, %v1354_v21  ;;  %v1389_v40 = vpop.f32.mrb[2].mxu1 }
 0x121   :  { %v1390_v23 = vpop.f32.mrb[3].mxu1 }
 0x122   :  { %v869_v54 = vadd.f32 %v1356_v39, %v799_v34  ;;  %v1391_v24 = vadd.f32 %v1390_v23, %v1389_v40 }
 0x124   :  { %v939_v44 = vadd.f32 %v1391_v24, %v869_v54 }
 0x13e   :  { %v1424_v28 = vpop.f32.mrb[4].mxu0 }
 0x13f   :  { %v1425_v33 = vpop.f32.mrb[5].mxu0 }
 0x140   :  { %v1426_v12 = vadd.f32 %v1425_v33, %v1424_v28  ;;  %v1459_v55 = vpop.f32.mrb[4].mxu1 }
 0x141   :  { %v1460_v56 = vpop.f32.mrb[5].mxu1 }
 0x142   :  { %v1009_v36 = vadd.f32 %v1426_v12, %v939_v44  ;;  %v1461_v51 = vadd.f32 %v1460_v56, %v1459_v55 }
 0x144   :  { %v1079_v8 = vadd.f32 %v1461_v51, %v1009_v36 }
 0x15e   :  { %v1494_v9 = vpop.f32.mrb[6].mxu0 }
 0x15f   :  { %v1495_v4 = vpop.f32.mrb[7].mxu0 }
 0x160   :  { %v1496_v5 = vadd.f32 %v1495_v4, %v1494_v9  ;;  %v1529_v20 = vpop.f32.mrb[6].mxu1 }
 0x161   :  { %v1530_v58 = vpop.f32.mrb[7].mxu1 }
 0x162   :  { %v1149_v22 = vadd.f32 %v1496_v5, %v1079_v8  ;;  %v1531_v11 = vadd.f32 %v1530_v58, %v1529_v20 }
 0x164   :  { %v1219_v38 = vadd.f32 %v1531_v11, %v1149_v22 }
 0x166   :  { %v1222_v63 = vadd.f32 %v1219_v38, %v340_v30 }
 0x168   :  { %1223 = vst [vmem:[#allocation2] sm:$0x3] %v1222_v63 }
 0x16f   :  { %v1227_v18 = vld [vmem:[#allocation2] sm:$0x3] }
 0x170   :  { %v1235_v19 = vadd.f32 %v1251_v50, %v1227_v18 }
 0x172   :  { %1236 = vst [vmem:[#allocation3] sm:$0x3] %v1235_v19 }
 0x173   :  { %1801 = shalt.err (!%p1798_p4)
}
 0x174   :  { %s1802_s23 = scalar_lea.hbm %s3252_s3, 32 }
 0x175   :  { %p1803_p5 = scmp.ne.s32.totalorder %s3252_s3, %s1802_s23  ;;  %p1806_p6 = scmp.lt.u32.totalorder %s1802_s23, %s3252_s3 }
 0x177   :  { %p1808_p7 = pnand %p1806_p6, %p1803_p5 }
 0x179   :  { %1811 = shalt.err (!%p1808_p7)
}
 0x17a   :  { %1246 = dma.vmem_to_hbm [thread:$0]  %s1244_s20, 32, %s3252_s3, [#allocation4]  }
 0x17b   :  { %1812 = dma.done.wait [#allocation4], 32  }
 0x17c   :  { %1813 = vsyncadd [#allocation4], 4294967264 }
 0x17d   :  { %1250 = vsyncpa [#allocation4], 1 }

</bundles_post_ra>
